<compile_context>
chip_gen: v5e
topology: v5e:2x2
jax: 0.10.0
libtpu: 0.0.40
codegen_flags: <defaults>
</compile_context>

<pallas_src>
import jax
import jax.numpy as jnp
from jax.experimental import pallas as pl
from jax.experimental.pallas import tpu as pltpu

HIDDEN = 64
N_COLOR = 3
OUT3 = N_COLOR + 1              # rgb weights (3) + sigma (1)
PACKED_HIDDEN = 2 * HIDDEN      # [out_1 | out_2], lane-dense (128 lanes)
SMALL_W = 8                     # [rgb(3) | sigma(1) | c_w(3) | pad(1)]


def _mlp_render_kernel(feat_ref, w1_ref, b1_ref, w2p_ref, b2p_ref, w3p_ref, b3_ref,
                       hidden_ref, small_ref):
    x = feat_ref[...]                                                    # (TM, C)

    # layer1 + relu -> h1 (TM, 64), f32 accumulation on the MXU.
    h1 = jnp.dot(x, w1_ref[...], preferred_element_type=jnp.float32) + b1_ref[...]
    h1 = jnp.maximum(h1, 0.0)

    # Fused layer2 + packing:  W2' = [I_64 | W2],  b2' = [0 | b2]
    #   relu(h1 @ W2' + b2') = [relu(h1) | relu(h1 @ W2 + b2)] = [out_1 | out_2]
    # (relu(h1) == h1 since h1 >= 0).  One unmasked 128-lane dense store.
    packed = jnp.dot(h1.astype(w2p_ref.dtype), w2p_ref[...],
                     preferred_element_type=jnp.float32) + b2p_ref[...]
    packed = jnp.maximum(packed, 0.0)                                    # (TM, 128)
    hidden_ref[...] = packed.astype(hidden_ref.dtype)

    # Color head on the packed slab: W3' = [0 ; W3] so the out_1 half
    # contributes exactly zero.
    o3 = jnp.dot(packed.astype(w3p_ref.dtype), w3p_ref[...],
                 preferred_element_type=jnp.float32) + b3_ref[...]       # (TM, 4)

    sig = jax.nn.sigmoid(o3)                 # one EUP pass over all 4 lanes
    sp = jax.nn.softplus(o3 - 10.0)          # one EUP pass over all 4 lanes
    cw = sig[:, :N_COLOR]                    # rgb == c_w before normalization
    sigma = sp[:, N_COLOR:OUT3]              # (TM, 1)

    cw_n = cw / jnp.sum(cw, axis=-1, keepdims=True)
    cw_min = jnp.min(cw_n, axis=-1, keepdims=True)
    cw_max = jnp.max(cw_n, axis=-1, keepdims=True)
    # NOTE: matches the PyTorch reference exactly; rows whose three sigmoid
    # outputs are identical (e.g. zero-padded rows) produce NaN, as in torch.
    cw_norm = (cw_n - cw_min) / (cw_max - cw_min)

    # Single dense store for the small slab (pad lane zero-filled).
    small_ref[...] = jnp.concatenate(
        [cw, sigma, cw_norm, jnp.zeros_like(sigma)], axis=-1).astype(small_ref.dtype)


def _tpu_vmem_bytes():
    try:
        return int(pltpu.get_tpu_info().vmem_capacity_bytes)
    except Exception:
        return 64 * 1024 * 1024          # conservative default, safe on every gen


def _pick_tile_m(N, per_row_bytes, vmem_bytes, tile_m=None):
    """Largest power-of-two tile whose double-buffered in/out tiles fit the
    VMEM budget; generation-aware grid shaping."""
    if tile_m is not None:
        assert N % tile_m == 0, "N must be a multiple of tile_m"
        return tile_m
    budget = vmem_bytes // 2                        # headroom: weights + compiler scratch
    cap = max(8, budget // (2 * per_row_bytes))     # 2x double-buffered tiles
    cap = min(cap, 16384)
    tm = 1 << (int(cap).bit_length() - 1)           # power of two <= cap
    tm = min(tm, N)
    while tm > 8 and N % tm != 0:
        tm //= 2
    if N % tm != 0:
        return N                                    # single full-array tile (always legal)
    if vmem_bytes <= 64 * (1 << 20):
        # Likely v7x (2 TensorCores share the parallel axis): prefer an even
        # step count with >=2 steps per core, while tiles stay large enough
        # that per-step overhead remains negligible.
        steps = N // tm
        while tm >= 1024 and (steps < 4 or steps % 2 != 0):
            tm //= 2
            steps = N // tm
    return tm


def _vmem_limit_bytes(tm, C, io_bytes, vmem_bytes):
    per_row = (C + PACKED_HIDDEN) * io_bytes + SMALL_W * 4
    weights = ((C * HIDDEN + HIDDEN * PACKED_HIDDEN + PACKED_HIDDEN * OUT3) * io_bytes
               + (HIDDEN + PACKED_HIDDEN + OUT3) * 4)
    need = 2 * (tm * per_row + weights)             # 2x double buffering
    limit = int(1.5 * need) + (8 << 20)             # compiler-scratch headroom
    ceiling = int(0.75 * vmem_bytes)                # never exceed physical VMEM
    return max(32 << 20, min(limit, ceiling))


def _pack_params(params, io_dtype):
    """Pre-pack weights:  W2' = [I | W2],  b2' = [0 | b2],  W3' = [0 ; W3]."""
    w2 = params["w2"]
    w2p = jnp.concatenate([jnp.eye(HIDDEN, dtype=w2.dtype), w2], axis=1)      # (64,128)
    b2p = jnp.concatenate(
        [jnp.zeros((1, HIDDEN), params["b2"].dtype), params["b2"]], axis=1)   # (1,128)
    w3p = jnp.concatenate(
        [jnp.zeros((HIDDEN, OUT3), params["w3"].dtype), params["w3"]], axis=0)  # (128,4)
    # Weights follow io_dtype; biases stay f32 (added to f32 MXU accumulators).
    return (params["w1"].astype(io_dtype), params["b1"].astype(jnp.float32),
            w2p.astype(io_dtype), b2p.astype(jnp.float32),
            w3p.astype(io_dtype), params["b3"].astype(jnp.float32))


def mlp_render_fea_forward_packed(features, params, *, tile_m=None, io_dtype=None):
    """Preferred lane-dense interface (no wrapper-side re-slicing).

    Returns:
      hidden_slab: (N, 128) = [out_1 | out_2]                     (dtype = io_dtype)
      small_slab : (N, 8)   = [rgb(3) | sigma(1) | c_w(3) | pad]  (float32)
    """
    N, C = features.shape
    io_dtype = features.dtype if io_dtype is None else jnp.dtype(io_dtype)
    io_bytes = jnp.dtype(io_dtype).itemsize
    vmem_bytes = _tpu_vmem_bytes()
    per_row = (C + PACKED_HIDDEN) * io_bytes + SMALL_W * 4
    tm = _pick_tile_m(N, per_row, vmem_bytes, tile_m)

    feats = features.astype(io_dtype)
    w1, b1, w2p, b2p, w3p, b3 = _pack_params(params, io_dtype)

    row = lambda shape: pl.BlockSpec(shape, lambda i: (i, 0))
    rep = lambda shape: pl.BlockSpec(shape, lambda i: (0, 0))

    cost = pl.CostEstimate(
        flops=2 * N * (C * HIDDEN + HIDDEN * PACKED_HIDDEN + PACKED_HIDDEN * OUT3),
        transcendentals=8 * N,
        bytes_accessed=N * per_row
        + io_bytes * (C * HIDDEN + HIDDEN * PACKED_HIDDEN + PACKED_HIDDEN * OUT3),
    )

    hidden, small = pl.pallas_call(
        _mlp_render_kernel,
        out_shape=(
            jax.ShapeDtypeStruct((N, PACKED_HIDDEN), io_dtype),     # [out_1 | out_2]
            jax.ShapeDtypeStruct((N, SMALL_W), jnp.float32),        # [rgb|sigma|c_w|pad]
        ),
        grid_spec=pltpu.PrefetchScalarGridSpec(
            num_scalar_prefetch=0,
            grid=(N // tm,),
            in_specs=[
                row((tm, C)),
                rep((C, HIDDEN)), rep((1, HIDDEN)),
                rep((HIDDEN, PACKED_HIDDEN)), rep((1, PACKED_HIDDEN)),
                rep((PACKED_HIDDEN, OUT3)), rep((1, OUT3)),
            ],
            out_specs=[
                row((tm, PACKED_HIDDEN)),
                row((tm, SMALL_W)),
            ],
        ),
        compiler_params=pltpu.CompilerParams(
            dimension_semantics=("parallel",),
            vmem_limit_bytes=_vmem_limit_bytes(tm, C, io_bytes, vmem_bytes),
        ),
        cost_estimate=cost,
    )(feats, w1, b1, w2p, b2p, w3p, b3)
    return hidden, small


def mlp_render_fea_forward(features, params, *, tile_m=None, io_dtype=None):
    """PyTorch-shaped interface (rgb, sigma, out_1, out_2, c_w).

    NOTE: each slice below is an extra XLA copy that re-reads the packed slabs
    from HBM; production consumers should use mlp_render_fea_forward_packed
    and split at (or fuse into) the consumer.
    """
    hidden, small = mlp_render_fea_forward_packed(
        features, params, tile_m=tile_m, io_dtype=io_dtype)
    out1 = hidden[:, :HIDDEN]
    out2 = hidden[:, HIDDEN:]
    rgb = small[:, :N_COLOR]
    sigma = small[:, N_COLOR]
    c_w = small[:, N_COLOR + 1:2 * N_COLOR + 1]
    return rgb, sigma, out1, out2, c_w


def init_params(key, in_chanel):
    """Deterministic synthetic parameters (shapes match the torch module)."""
    k1, k2, k3 = jax.random.split(key, 3)
    scale = 0.1
    return {
        # stored pre-transposed: [in, out]
        "w1": scale * jax.random.normal(k1, (in_chanel, HIDDEN), jnp.float32),
        "b1": jnp.zeros((1, HIDDEN), jnp.float32) + 0.01,
        "w2": scale * jax.random.normal(k2, (HIDDEN, HIDDEN), jnp.float32),
        "b2": jnp.zeros((1, HIDDEN), jnp.float32) + 0.01,
        "w3": scale * jax.random.normal(k3, (HIDDEN, OUT3), jnp.float32),
        # torch.nn.init.constant_(self.color_weight.bias, 0)
        "b3": jnp.zeros((1, OUT3), jnp.float32),
    }


def reference_forward(features, params):
    """Pure-JAX reference matching the PyTorch forward."""
    h1 = jnp.maximum(features @ params["w1"] + params["b1"], 0.0)
    h2 = jnp.maximum(h1 @ params["w2"] + params["b2"], 0.0)
    o3 = h2 @ params["w3"] + params["b3"]
    cw = jax.nn.sigmoid(o3[:, :3])
    rgb = cw
    cw_n = cw / jnp.sum(cw, axis=-1, keepdims=True)
    cw_n = (cw_n - cw_n.min(axis=-1, keepdims=True)) / (
        cw_n.max(axis=-1, keepdims=True) - cw_n.min(axis=-1, keepdims=True))
    sigma = jax.nn.softplus(o3[:, 3:] - 10.0)[:, 0]
    return rgb, sigma, h1, h2, cw_n


if __name__ == "__main__":
    key = jax.random.PRNGKey(0)
    k_feat, k_param = jax.random.split(key)

    in_chanel = 32        # self.in_mlpC
    N = 256               # number of sample points (small demo shape)

    features = jax.random.normal(k_feat, (N, in_chanel), jnp.float32)
    params = init_params(k_param, in_chanel)

    # f32 path: validate against the pure-JAX reference (PyTorch-shaped outs).
    outs = jax.block_until_ready(mlp_render_fea_forward(features, params))
    refs = reference_forward(features, params)
    names = ("rgb", "sigma", "out_1", "out_2", "c_w")
    tols = {"c_w": 1e-3}   # c_w divides by (max-min); small denominator amplifies fp error
    for name, o, r in zip(names, outs, refs):
        assert o.shape == r.shape, (name, o.shape, r.shape)
        err = float(jnp.max(jnp.abs(o - r)))
        assert err <= tols.get(name, 1e-4), (name, err)

    # Optional bf16 I/O path (halves HBM traffic); packed-slab interface.
    # Precision of out_1/out_2/c_w changes, so only shape/finiteness checks.
    hid_bf16, small_bf16 = jax.block_until_ready(
        mlp_render_fea_forward_packed(features, params, io_dtype=jnp.bfloat16))
    assert hid_bf16.shape == (N, PACKED_HIDDEN) and hid_bf16.dtype == jnp.bfloat16
    assert small_bf16.shape == (N, SMALL_W)
    assert bool(jnp.all(jnp.isfinite(hid_bf16.astype(jnp.float32))))
    assert bool(jnp.all(jnp.isfinite(small_bf16[:, :OUT3])))

    print("KERNEL_OK")
</pallas_src>

<mosaic_0001>
module attributes {stable_mosaic.version = 11 : i64} {
  func.func @_mlp_render_kernel(%arg0: i32, %arg1: memref<256x32xf32, #tpu.memory_space<vmem>>, %arg2: memref<32x64xf32, #tpu.memory_space<vmem>>, %arg3: memref<1x64xf32, #tpu.memory_space<vmem>>, %arg4: memref<64x128xf32, #tpu.memory_space<vmem>>, %arg5: memref<1x128xf32, #tpu.memory_space<vmem>>, %arg6: memref<128x4xf32, #tpu.memory_space<vmem>>, %arg7: memref<1x4xf32, #tpu.memory_space<vmem>>, %arg8: memref<256x128xf32, #tpu.memory_space<vmem>>, %arg9: memref<256x8xf32, #tpu.memory_space<vmem>>) attributes {dimension_semantics = [#tpu.dimension_semantics<parallel>], iteration_bounds = array<i64: 1>, scalar_prefetch = 0 : i64, scratch_operands = 0 : i64, tpu.core_type = #tpu.core_type<tc>, window_params = [{transform_indices = @transform_0, window_bounds = array<i64: 256, 32>}, {pipeline_mode = #tpu.pipeline_mode<synchronous>, transform_indices = @transform_1, window_bounds = array<i64: 32, 64>}, {pipeline_mode = #tpu.pipeline_mode<synchronous>, transform_indices = @transform_2, window_bounds = array<i64: 1, 64>}, {pipeline_mode = #tpu.pipeline_mode<synchronous>, transform_indices = @transform_3, window_bounds = array<i64: 64, 128>}, {pipeline_mode = #tpu.pipeline_mode<synchronous>, transform_indices = @transform_4, window_bounds = array<i64: 1, 128>}, {pipeline_mode = #tpu.pipeline_mode<synchronous>, transform_indices = @transform_5, window_bounds = array<i64: 128, 4>}, {pipeline_mode = #tpu.pipeline_mode<synchronous>, transform_indices = @transform_6, window_bounds = array<i64: 1, 4>}, {transform_indices = @transform_7, window_bounds = array<i64: 256, 128>}, {transform_indices = @transform_8, window_bounds = array<i64: 256, 8>}]} {
    %c0 = arith.constant 0 : index
    %c0_0 = arith.constant 0 : index
    %0 = vector.load %arg1[%c0, %c0_0] : memref<256x32xf32, #tpu.memory_space<vmem>>, vector<256x32xf32>
    %c0_1 = arith.constant 0 : index
    %c0_2 = arith.constant 0 : index
    %1 = vector.load %arg2[%c0_1, %c0_2] : memref<32x64xf32, #tpu.memory_space<vmem>>, vector<32x64xf32>
    %cst = arith.constant dense<0.000000e+00> : vector<256x64xf32>
    %2 = tpu.matmul %0, %1, %cst {dimension_numbers = #tpu.dot_dimension_numbers<[1], [0], [0], [1], [0, 0, 1, 1], [], []>} : vector<256x32xf32>, vector<32x64xf32>, vector<256x64xf32> -> vector<256x64xf32>
    %c0_3 = arith.constant 0 : index
    %c0_4 = arith.constant 0 : index
    %3 = vector.load %arg3[%c0_3, %c0_4] : memref<1x64xf32, #tpu.memory_space<vmem>>, vector<1x64xf32>
    %4 = vector.broadcast %3 : vector<1x64xf32> to vector<256x64xf32>
    %5 = arith.addf %2, %4 : vector<256x64xf32>
    %cst_5 = arith.constant 0.000000e+00 : f32
    %6 = vector.broadcast %cst_5 : f32 to vector<256x64xf32>
    %7 = arith.maximumf %5, %6 : vector<256x64xf32>
    %c0_6 = arith.constant 0 : index
    %c0_7 = arith.constant 0 : index
    %8 = vector.load %arg4[%c0_6, %c0_7] : memref<64x128xf32, #tpu.memory_space<vmem>>, vector<64x128xf32>
    %cst_8 = arith.constant dense<0.000000e+00> : vector<256x128xf32>
    %9 = tpu.matmul %7, %8, %cst_8 {dimension_numbers = #tpu.dot_dimension_numbers<[1], [0], [0], [1], [0, 0, 1, 1], [], []>} : vector<256x64xf32>, vector<64x128xf32>, vector<256x128xf32> -> vector<256x128xf32>
    %c0_9 = arith.constant 0 : index
    %c0_10 = arith.constant 0 : index
    %10 = vector.load %arg5[%c0_9, %c0_10] : memref<1x128xf32, #tpu.memory_space<vmem>>, vector<1x128xf32>
    %11 = vector.broadcast %10 : vector<1x128xf32> to vector<256x128xf32>
    %12 = arith.addf %9, %11 : vector<256x128xf32>
    %cst_11 = arith.constant 0.000000e+00 : f32
    %13 = vector.broadcast %cst_11 : f32 to vector<256x128xf32>
    %14 = arith.maximumf %12, %13 : vector<256x128xf32>
    %c0_12 = arith.constant 0 : index
    %c0_13 = arith.constant 0 : index
    %15 = vector.load %arg8[%c0_12, %c0_13] : memref<256x128xf32, #tpu.memory_space<vmem>>, vector<256x128xf32>
    tpu.vector_store %arg8[%c0_12, %c0_13], %14 {strides = array<i32>} : memref<256x128xf32, #tpu.memory_space<vmem>>, vector<256x128xf32>,
    %c0_14 = arith.constant 0 : index
    %c0_15 = arith.constant 0 : index
    %16 = vector.load %arg6[%c0_14, %c0_15] : memref<128x4xf32, #tpu.memory_space<vmem>>, vector<128x4xf32>
    %cst_16 = arith.constant dense<0.000000e+00> : vector<256x4xf32>
    %17 = tpu.matmul %14, %16, %cst_16 {dimension_numbers = #tpu.dot_dimension_numbers<[1], [0], [0], [1], [0, 0, 1, 1], [], []>} : vector<256x128xf32>, vector<128x4xf32>, vector<256x4xf32> -> vector<256x4xf32>
    %c0_17 = arith.constant 0 : index
    %c0_18 = arith.constant 0 : index
    %18 = vector.load %arg7[%c0_17, %c0_18] : memref<1x4xf32, #tpu.memory_space<vmem>>, vector<1x4xf32>
    %19 = vector.broadcast %18 : vector<1x4xf32> to vector<256x4xf32>
    %20 = arith.addf %17, %19 : vector<256x4xf32>
    %21 = arith.negf %20 : vector<256x4xf32>
    %22 = math.exp %21 : vector<256x4xf32>
    %cst_19 = arith.constant 1.000000e+00 : f32
    %23 = vector.broadcast %cst_19 : f32 to vector<256x4xf32>
    %24 = arith.addf %23, %22 : vector<256x4xf32>
    %25 = arith.divf %23, %24 : vector<256x4xf32>
    %cst_20 = arith.constant 1.000000e+01 : f32
    %26 = vector.broadcast %cst_20 : f32 to vector<256x4xf32>
    %27 = arith.subf %20, %26 : vector<256x4xf32>
    %cst_21 = arith.constant 0.000000e+00 : f32
    %28 = vector.broadcast %cst_21 : f32 to vector<256x4xf32>
    %29 = arith.maximumf %27, %28 : vector<256x4xf32>
    %30 = vector.broadcast %cst_21 : f32 to vector<256x4xf32>
    %31 = arith.subf %27, %30 : vector<256x4xf32>
    %32 = arith.cmpf one, %31, %31 : vector<256x4xf32>
    %33 = vector.broadcast %cst_21 : f32 to vector<256x4xf32>
    %34 = arith.addf %27, %33 : vector<256x4xf32>
    %35 = math.absf %31 : vector<256x4xf32>
    %cst_22 = arith.constant 0.000000e+00 : f32
    %36 = vector.broadcast %cst_22 : f32 to vector<256x4xf32>
    %37 = arith.subf %36, %35 : vector<256x4xf32>
    %38 = math.exp %37 : vector<256x4xf32>
    %39 = math.log1p %38 : vector<256x4xf32>
    %40 = arith.addf %29, %39 : vector<256x4xf32>
    %41 = arith.select %32, %34, %40 : vector<256x4xi1>, vector<256x4xf32>
    %42 = vector.extract_strided_slice %25 {offsets = [0, 0], sizes = [256, 3], strides = [1, 1]} : vector<256x4xf32> to vector<256x3xf32>
    %43 = vector.extract_strided_slice %41 {offsets = [0, 3], sizes = [256, 1], strides = [1, 1]} : vector<256x4xf32> to vector<256x1xf32>
    %cst_23 = arith.constant dense<0.000000e+00> : vector<256xf32>
    %44 = vector.multi_reduction <add>, %42, %cst_23 [1] : vector<256x3xf32> to vector<256xf32>
    %45 = vector.shape_cast %44 : vector<256xf32> to vector<256x1xf32>
    %46 = vector.broadcast %45 : vector<256x1xf32> to vector<256x3xf32>
    %47 = arith.divf %42, %46 : vector<256x3xf32>
    %cst_24 = arith.constant dense<0x7F800000> : vector<256xf32>
    %48 = vector.multi_reduction <minimumf>, %47, %cst_24 [1] : vector<256x3xf32> to vector<256xf32>
    %49 = vector.shape_cast %48 : vector<256xf32> to vector<256x1xf32>
    %cst_25 = arith.constant dense<0xFF800000> : vector<256xf32>
    %50 = vector.multi_reduction <maximumf>, %47, %cst_25 [1] : vector<256x3xf32> to vector<256xf32>
    %51 = vector.shape_cast %50 : vector<256xf32> to vector<256x1xf32>
    %52 = vector.broadcast %49 : vector<256x1xf32> to vector<256x3xf32>
    %53 = arith.subf %47, %52 : vector<256x3xf32>
    %54 = arith.subf %51, %49 : vector<256x1xf32>
    %55 = vector.broadcast %54 : vector<256x1xf32> to vector<256x3xf32>
    %56 = arith.divf %53, %55 : vector<256x3xf32>
    %cst_26 = arith.constant 0.000000e+00 : f32
    %57 = vector.broadcast %cst_26 : f32 to vector<256x1xf32>
    %58 = tpu.concatenate %42, %43, %56, %57 in 1 : vector<256x3xf32>, vector<256x1xf32>, vector<256x3xf32>, vector<256x1xf32> -> vector<256x8xf32>
    %c0_27 = arith.constant 0 : index
    %c0_28 = arith.constant 0 : index
    %59 = vector.load %arg9[%c0_27, %c0_28] : memref<256x8xf32, #tpu.memory_space<vmem>>, vector<256x8xf32>
    tpu.vector_store %arg9[%c0_27, %c0_28], %58 {strides = array<i32>} : memref<256x8xf32, #tpu.memory_space<vmem>>, vector<256x8xf32>,
    return
  }
  func.func @transform_0(%arg0: i32) -> (i32, i32) {
    %c0_i32 = arith.constant 0 : i32
    %c0_i32_0 = arith.constant 0 : i32
    return %arg0, %c0_i32 : i32, i32
  }
  func.func @transform_1(%arg0: i32) -> (i32, i32) {
    %c0_i32 = arith.constant 0 : i32
    %c0_i32_0 = arith.constant 0 : i32
    %c0_i32_1 = arith.constant 0 : i32
    return %c0_i32, %c0_i32_0 : i32, i32
  }
  func.func @transform_2(%arg0: i32) -> (i32, i32) {
    %c0_i32 = arith.constant 0 : i32
    %c0_i32_0 = arith.constant 0 : i32
    %c0_i32_1 = arith.constant 0 : i32
    return %c0_i32, %c0_i32_0 : i32, i32
  }
  func.func @transform_3(%arg0: i32) -> (i32, i32) {
    %c0_i32 = arith.constant 0 : i32
    %c0_i32_0 = arith.constant 0 : i32
    %c0_i32_1 = arith.constant 0 : i32
    return %c0_i32, %c0_i32_0 : i32, i32
  }
  func.func @transform_4(%arg0: i32) -> (i32, i32) {
    %c0_i32 = arith.constant 0 : i32
    %c0_i32_0 = arith.constant 0 : i32
    %c0_i32_1 = arith.constant 0 : i32
    return %c0_i32, %c0_i32_0 : i32, i32
  }
  func.func @transform_5(%arg0: i32) -> (i32, i32) {
    %c0_i32 = arith.constant 0 : i32
    %c0_i32_0 = arith.constant 0 : i32
    %c0_i32_1 = arith.constant 0 : i32
    return %c0_i32, %c0_i32_0 : i32, i32
  }
  func.func @transform_6(%arg0: i32) -> (i32, i32) {
    %c0_i32 = arith.constant 0 : i32
    %c0_i32_0 = arith.constant 0 : i32
    %c0_i32_1 = arith.constant 0 : i32
    return %c0_i32, %c0_i32_0 : i32, i32
  }
  func.func @transform_7(%arg0: i32) -> (i32, i32) {
    %c0_i32 = arith.constant 0 : i32
    %c0_i32_0 = arith.constant 0 : i32
    return %arg0, %c0_i32 : i32, i32
  }
  func.func @transform_8(%arg0: i32) -> (i32, i32) {
    %c0_i32 = arith.constant 0 : i32
    %c0_i32_0 = arith.constant 0 : i32
    return %arg0, %c0_i32 : i32, i32
  }
}

</mosaic_0001>

<bundles_post_ra>
// kernel: tpu_custom_call.1
= control target key start
LH: loop header
LB: loop body
LE: loop exit
PB: predicated region body
PF: predicated region fallthrough
CT: control target
= control target key end

     0   :  { %s7222_s0 = inlined_call_operand.vmem [shape: f32[256,32], index: 0, kind: input, shape index: {}]   ;;  %s7223_s1 = inlined_call_operand.vmem [shape: f32[32,64], index: 1, kind: input, shape index: {}]   ;;  %s7224_s2 = inlined_call_operand.vmem [shape: f32[1,64], index: 2, kind: input, shape index: {}]   ;;  %s7225_s3 = inlined_call_operand.vmem [shape: f32[64,128], index: 3, kind: input, shape index: {}]   ;;  %s7226_s4 = inlined_call_operand.vmem [shape: f32[1,128], index: 4, kind: input, shape index: {}]   ;;  %s7227_s5 = inlined_call_operand.vmem [shape: f32[128,4], index: 5, kind: input, shape index: {}]   ;;  %s7228_s6 = inlined_call_operand.vmem [shape: f32[1,4], index: 6, kind: input, shape index: {}]   ;;  %s7229_s7 = inlined_call_operand.hbm [shape: f32[256,128], index: 7, kind: output, shape index: {0}]   ;;  %s7230_s8 = inlined_call_operand.vmem [shape: f32[256,8], index: 8, kind: output, shape index: {1}]  }
   0x1   :  { %v64_v0 = vld [vmem:[%s7223_s1 + $0x18] sm:$0xff]  ;;  %v63_v1 = vld [vmem:[%s7223_s1 + $0x10] sm:$0xff]  ;;  %v62_v2 = vld [vmem:[%s7223_s1 + $0x8] sm:$0xff] }
   0x2   :  { %178 = vmatpush.msra.mxu0 %v64_v0  ;;  %3668 = vmatpush.msra.mxu3 %v64_v0  ;;  %v61_v3 = vld [vmem:[%s7223_s1] sm:$0xff] }
   0x4   :  { %179 = vmatpush.msra.mxu0 %v63_v1  ;;  %3669 = vmatpush.msra.mxu3 %v63_v1 }
   0x5   :  { %14 = vsyncpa [#allocation3], 0  ;;  %v29_v4 = vld [vmem:[%s7222_s0] sm:$0xff]  ;;  %vm69_vm0 = vcmask 261120   ;;  %v30_v5 = vld [vmem:[%s7222_s0 + $0x8] sm:$0xff]  ;;  %vm323_vm1 = vcmask 523264  }
   0x6   :  { %180 = vmatpush.msra.mxu0 %v62_v2  ;;  %3670 = vmatpush.msra.mxu3 %v62_v2  ;;  %v31_v6 = vld [vmem:[%s7222_s0 + $0x10] sm:$0xff]  ;;  %v32_v7 = vld [vmem:[%s7222_s0 + $0x18] sm:$0xff]  ;;  %v33_v8 = vld [vmem:[%s7222_s0 + $0x20] sm:$0xff]  ;;  %vm1946_vm5 = vcmask 23552   ;;  %s3524_s14 = sshll.u32 %s7229_s7, 4  ;;  %s4116_s7 = smov 128   ;;  %s3525_s14 = int_to_ptr.hbm [resolvable:$true] %s3524_s14 }
   0x7   :  { %v34_v9 = vld [vmem:[%s7222_s0 + $0x28] sm:$0xff]  ;;  %v35_v10 = vld [vmem:[%s7222_s0 + $0x30] sm:$0xff]  ;;  %v36_v11 = vld [vmem:[%s7222_s0 + $0x38] sm:$0xff]  ;;  %s4117_s16 = smov 8  }
   0x8   :  { %181 = vmatpush.msra.mxu0 %v61_v3  ;;  %3671 = vmatpush.msra.mxu3 %v61_v3  ;;  %v37_v12 = vld [vmem:[%s7222_s0 + $0x40] sm:$0xff]  ;;  %v38_v13 = vld [vmem:[%s7222_s0 + $0x48] sm:$0xff]  ;;  %v39_v14 = vld [vmem:[%s7222_s0 + $0x50] sm:$0xff] }
   0x9   :  { %3540 = vmatmul.msk.f32.vlgmr.msra.gmra.mxu0 %vm69_vm0, %v29_v4  ;;  %v318_v15 = vld [vmem:[%s7225_s3 + $0x38] sm:$0xff]  ;;  %v317_v16 = vld [vmem:[%s7225_s3 + $0x30] sm:$0xff]  ;;  %v316_v17 = vld [vmem:[%s7225_s3 + $0x28] sm:$0xff] }
   0xa   :  { %428 = vmatpush.msra.mxu1 %v318_v15  ;;  %3672 = vmatpush.msrb.mxu3 %v318_v15  ;;  %v40_v18 = vld [vmem:[%s7222_s0 + $0x58] sm:$0xff]  ;;  %v315_v19 = vld [vmem:[%s7225_s3 + $0x20] sm:$0xff]  ;;  %v313_v21 = vld [vmem:[%s7225_s3 + $0x10] sm:$0xff] }
   0xb   :  { %v314_v20 = vld [vmem:[%s7225_s3 + $0x18] sm:$0xff]  ;;  %v41_v22 = vld [vmem:[%s7222_s0 + $0x60] sm:$0xff]  ;;  %v312_v23 = vld [vmem:[%s7225_s3 + $0x8] sm:$0xff] }
   0xc   :  { %429 = vmatpush.msra.mxu1 %v317_v16  ;;  %3673 = vmatpush.msrb.mxu3 %v317_v16  ;;  %v311_v24 = vld [vmem:[%s7225_s3] sm:$0xff]  ;;  %v42_v25 = vld [vmem:[%s7222_s0 + $0x68] sm:$0xff]  ;;  %v43_v26 = vld [vmem:[%s7222_s0 + $0x70] sm:$0xff]  ;;  %s4115_s3 = smov [#allocation2]  }
   0xd   :  { %v44_v27 = vld [vmem:[%s7222_s0 + $0x78] sm:$0xff]  ;;  %v4266_v28 = vld [vmem:[%s7224_s2] ss:$0 sm:$0xff]  ;;  %v46_v34 = vld [vmem:[%s7222_s0 + $0x88] sm:$0xff]  ;;  %s3522_s15 = sshll.u32 %s4115_s3, 4  ;;  %s3523_s15 = int_to_ptr.vmem [resolvable:$true] %s3522_s15 }
   0xe   :  { %430 = vmatpush.msra.mxu1 %v316_v17  ;;  %3674 = vmatpush.msrb.mxu3 %v316_v17  ;;  %v45_v30 = vld [vmem:[%s7222_s0 + $0x80] sm:$0xff]  ;;  %v47_v38 = vld [vmem:[%s7222_s0 + $0x90] sm:$0xff]  ;;  %v48_v42 = vld [vmem:[%s7222_s0 + $0x98] sm:$0xff] }
   0xf   :  { %v54_v45 = vld [vmem:[%s7222_s0 + $0xc8] sm:$0xff]  ;;  %v49_v47 = vld [vmem:[%s7222_s0 + $0xa0] sm:$0xff]  ;;  %v55_v50 = vld [vmem:[%s7222_s0 + $0xd0] sm:$0xff] }
  0x10   :  { %431 = vmatpush.msra.mxu1 %v315_v19  ;;  %3675 = vmatpush.msrb.mxu3 %v315_v19  ;;  %v50_v52 = vld [vmem:[%s7222_s0 + $0xa8] sm:$0xff]  ;;  %v56_v55 = vld [vmem:[%s7222_s0 + $0xd8] sm:$0xff]  ;;  %v51_v57 = vld [vmem:[%s7222_s0 + $0xb0] sm:$0xff] }
  0x11   :  { %3541 = vmatmul.msk.f32.gmra.mxu0 %vm69_vm0, %v30_v5  ;;  %3565 = vmatmul.msk.f32.vlgmr.msra.gmra.mxu3 %vm69_vm0, %v54_v45  ;;  %v57_v60 = vld [vmem:[%s7222_s0 + $0xe0] sm:$0xff]  ;;  %v52_v62 = vld [vmem:[%s7222_s0 + $0xb8] sm:$0xff]  ;;  %v58_v1 = vld [vmem:[%s7222_s0 + $0xe8] sm:$0xff] }
  0x12   :  { %432 = vmatpush.msra.mxu1 %v314_v20  ;;  %3676 = vmatpush.msrb.mxu3 %v314_v20  ;;  %v53_v3 = vld [vmem:[%s7222_s0 + $0xc0] sm:$0xff]  ;;  %v608_v15 = vld [vmem:[%s7227_s5 + $0x58] sm:$0xff]  ;;  %v606_v20 = vld [vmem:[%s7227_s5 + $0x48] sm:$0xff] }
  0x14   :  { %433 = vmatpush.msra.mxu1 %v313_v21  ;;  %3677 = vmatpush.msrb.mxu3 %v313_v21  ;;  %v605_v21 = vld [vmem:[%s7227_s5 + $0x40] sm:$0xff] }
  0x16   :  { %434 = vmatpush.msra.mxu1 %v312_v23  ;;  %3678 = vmatpush.msrb.mxu3 %v312_v23 }
  0x18   :  { %435 = vmatpush.msra.mxu1 %v311_v24  ;;  %3679 = vmatpush.msrb.mxu3 %v311_v24 }
  0x19   :  { %3542 = vmatmul.msk.f32.gmra.mxu0 %vm69_vm0, %v31_v6  ;;  %3566 = vmatmul.msk.f32.gmra.mxu3 %vm69_vm0, %v55_v50  ;;  %v59_v6 = vld [vmem:[%s7222_s0 + $0xf0] sm:$0xff] }
  0x21   :  { %3543 = vmatmul.msk.f32.gmra.mxu0 %vm69_vm0, %v32_v7  ;;  %3567 = vmatmul.msk.f32.gmra.mxu3 %vm69_vm0, %v56_v55  ;;  %v612_v7 = vld [vmem:[%s7227_s5 + $0x78] sm:$0xff] }
  0x22   :  { %617 = vmatpush.msra.mxu2 %v612_v7  ;;  %3680 = vmatpush.msra.mxu3 %v612_v7 }
  0x29   :  { %3544 = vmatmul.msk.f32.gmra.mxu0 %vm69_vm0, %v33_v8  ;;  %3568 = vmatmul.msk.f32.gmra.mxu3 %vm69_vm0, %v57_v60 }
  0x31   :  { %3545 = vmatmul.msk.f32.gmra.mxu0 %vm69_vm0, %v34_v9  ;;  %3569 = vmatmul.msk.f32.gmra.mxu3 %vm69_vm0, %v58_v1 }
  0x39   :  { %3546 = vmatmul.msk.f32.gmra.mxu0 %vm69_vm0, %v35_v10  ;;  %3570 = vmatmul.msk.f32.gmra.mxu3 %vm69_vm0, %v59_v6  ;;  %v611_v10 = vld [vmem:[%s7227_s5 + $0x70] sm:$0xff] }
  0x3a   :  { %618 = vmatpush.msra.mxu2 %v611_v10  ;;  %3681 = vmatpush.msra.mxu3 %v611_v10 }
  0x41   :  { %3547 = vmatmul.msk.f32.gmra.mxu0 %vm69_vm0, %v36_v11 }
  0x49   :  { %3548 = vmatmul.msk.f32.gmra.mxu0 %vm69_vm0, %v37_v12  ;;  %v610_v12 = vld [vmem:[%s7227_s5 + $0x68] sm:$0xff] }
  0x4a   :  { %619 = vmatpush.msra.mxu2 %v610_v12  ;;  %3682 = vmatpush.msra.mxu3 %v610_v12 }
  0x51   :  { %3549 = vmatmul.msk.f32.gmra.mxu0 %vm69_vm0, %v38_v13  ;;  %v609_v13 = vld [vmem:[%s7227_s5 + $0x60] sm:$0xff] }
  0x52   :  { %620 = vmatpush.msra.mxu2 %v609_v13  ;;  %3683 = vmatpush.msra.mxu3 %v609_v13 }
  0x54   :  { %621 = vmatpush.msra.mxu2 %v608_v15  ;;  %3684 = vmatpush.msra.mxu3 %v608_v15 }
  0x59   :  { %3550 = vmatmul.msk.f32.gmra.mxu0 %vm69_vm0, %v39_v14  ;;  %v60_v14 = vld [vmem:[%s7222_s0 + $0xf8] sm:$0xff] }
  0x5a   :  { %3571 = vmatmul.msk.f32.gmra.mxu3 %vm69_vm0, %v60_v14 }
  0x61   :  { %3551 = vmatmul.msk.f32.gmra.mxu0 %vm69_vm0, %v40_v18  ;;  %v607_v18 = vld [vmem:[%s7227_s5 + $0x50] sm:$0xff] }
  0x62   :  { %622 = vmatpush.msra.mxu2 %v607_v18  ;;  %3685 = vmatpush.msra.mxu3 %v607_v18 }
  0x64   :  { %623 = vmatpush.msra.mxu2 %v606_v20  ;;  %3686 = vmatpush.msra.mxu3 %v606_v20 }
  0x66   :  { %624 = vmatpush.msra.mxu2 %v605_v21  ;;  %3687 = vmatpush.msra.mxu3 %v605_v21 }
  0x69   :  { %3552 = vmatmul.msk.f32.gmra.mxu0 %vm69_vm0, %v41_v22  ;;  %v604_v22 = vld [vmem:[%s7227_s5 + $0x38] sm:$0xff] }
  0x6a   :  { %625 = vmatpush.msra.mxu2 %v604_v22  ;;  %3688 = vmatpush.msra.mxu3 %v604_v22 }
  0x71   :  { %3553 = vmatmul.msk.f32.gmra.mxu0 %vm69_vm0, %v42_v25  ;;  %v603_v25 = vld [vmem:[%s7227_s5 + $0x30] sm:$0xff] }
  0x72   :  { %626 = vmatpush.msra.mxu2 %v603_v25  ;;  %3689 = vmatpush.msra.mxu3 %v603_v25 }
  0x79   :  { %3554 = vmatmul.msk.f32.gmra.mxu0 %vm69_vm0, %v43_v26 }
  0x81   :  { %3555 = vmatmul.msk.f32.gmra.mxu0 %vm69_vm0, %v44_v27  ;;  %v602_v27 = vld [vmem:[%s7227_s5 + $0x28] sm:$0xff] }
  0x82   :  { %627 = vmatpush.msra.mxu2 %v602_v27  ;;  %3690 = vmatpush.msra.mxu3 %v602_v27 }
  0x86   :  { %v183_v29 = vpop.f32.mrf.mxu0 }
  0x87   :  { %v184_v31 = vadd.f32 %v4266_v28, %v183_v29  ;;  %v601_v29 = vld [vmem:[%s7227_s5 + $0x20] sm:$0xff] }
  0x88   :  { %628 = vmatpush.msra.mxu2 %v601_v29  ;;  %3691 = vmatpush.msra.mxu3 %v601_v29 }
  0x89   :  { %v279_v32 = vmax.f32 %v184_v31, 0.0  ;;  %3556 = vmatmul.msk.f32.gmra.mxu0 %vm69_vm0, %v45_v30  ;;  %v600_v30 = vld [vmem:[%s7227_s5 + $0x18] sm:$0xff] }
  0x8a   :  { %629 = vmatpush.msra.mxu2 %v600_v30  ;;  %3692 = vmatpush.msra.mxu3 %v600_v30 }
  0x8b   :  { %3572 = vmatmul.msk.f32.vlgmr.msra.gmra.mxu1 %vm323_vm1, %v279_v32 }
  0x8e   :  { %v186_v33 = vpop.f32.mrf.mxu0 }
  0x8f   :  { %v187_v35 = vadd.f32 %v4266_v28, %v186_v33  ;;  %v599_v33 = vld [vmem:[%s7227_s5 + $0x10] sm:$0xff] }
  0x90   :  { %630 = vmatpush.msra.mxu2 %v599_v33  ;;  %3693 = vmatpush.msra.mxu3 %v599_v33 }
  0x91   :  { %v280_v36 = vmax.f32 %v187_v35, 0.0  ;;  %3557 = vmatmul.msk.f32.gmra.mxu0 %vm69_vm0, %v46_v34  ;;  %v598_v35 = vld [vmem:[%s7227_s5 + $0x8] sm:$0xff] }
  0x92   :  { %631 = vmatpush.msra.mxu2 %v598_v35  ;;  %3694 = vmatpush.msra.mxu3 %v598_v35 }
  0x93   :  { %3573 = vmatmul.msk.f32.gmra.mxu1 %vm323_vm1, %v280_v36  ;;  %v597_v36 = vld [vmem:[%s7227_s5] sm:$0xff] }
  0x94   :  { %632 = vmatpush.msra.mxu2 %v597_v36  ;;  %3695 = vmatpush.msra.mxu3 %v597_v36  ;;  %v258_v10 = vpop.f32.mrf.mxu3 }
  0x95   :  { %v259_v13 = vadd.f32 %v4266_v28, %v258_v10 }
  0x96   :  { %v189_v37 = vpop.f32.mrf.mxu0 }
  0x97   :  { %v190_v39 = vadd.f32 %v4266_v28, %v189_v37  ;;  %v304_v15 = vmax.f32 %v259_v13, 0.0 }
  0x99   :  { %v281_v40 = vmax.f32 %v190_v39, 0.0  ;;  %3558 = vmatmul.msk.f32.gmra.mxu0 %vm69_vm0, %v47_v38  ;;  %3597 = vmatmul.msk.f32.vlgmr.msrb.gmra.mxu3 %vm323_vm1, %v304_v15 }
  0x9b   :  { %3574 = vmatmul.msk.f32.gmra.mxu1 %vm323_vm1, %v281_v40 }
  0x9e   :  { %v192_v41 = vpop.f32.mrf.mxu0 }
  0x9f   :  { %v193_v43 = vadd.f32 %v4266_v28, %v192_v41 }
  0xa1   :  { %v282_v44 = vmax.f32 %v193_v43, 0.0  ;;  %3559 = vmatmul.msk.f32.gmra.mxu0 %vm69_vm0, %v48_v42 }
  0xa3   :  { %3575 = vmatmul.msk.f32.gmra.mxu1 %vm323_vm1, %v282_v44 }
  0xa6   :  { %v195_v46 = vpop.f32.mrf.mxu0 }
  0xa7   :  { %v196_v48 = vadd.f32 %v4266_v28, %v195_v46  ;;  %v4415_v46 = vld [vmem:[%s7226_s4] ss:$0 sm:$0xff] }
  0xa9   :  { %v283_v49 = vmax.f32 %v196_v48, 0.0  ;;  %3560 = vmatmul.msk.f32.gmra.mxu0 %vm69_vm0, %v49_v47 }
  0xab   :  { %3576 = vmatmul.msk.f32.gmra.mxu1 %vm323_vm1, %v283_v49 }
  0xae   :  { %v198_v51 = vpop.f32.mrf.mxu0 }
  0xaf   :  { %v199_v53 = vadd.f32 %v4266_v28, %v198_v51 }
  0xb1   :  { %v284_v54 = vmax.f32 %v199_v53, 0.0  ;;  %3561 = vmatmul.msk.f32.gmra.mxu0 %vm69_vm0, %v50_v52 }
  0xb3   :  { %3577 = vmatmul.msk.f32.gmra.mxu1 %vm323_vm1, %v284_v54 }
  0xb6   :  { %v201_v56 = vpop.f32.mrf.mxu0 }
  0xb7   :  { %v202_v58 = vadd.f32 %v4266_v28, %v201_v56 }
  0xb9   :  { %v285_v59 = vmax.f32 %v202_v58, 0.0  ;;  %3562 = vmatmul.msk.f32.gmra.mxu0 %vm69_vm0, %v51_v57 }
  0xbb   :  { %3578 = vmatmul.msk.f32.gmra.mxu1 %vm323_vm1, %v285_v59 }
  0xbe   :  { %v204_v61 = vpop.f32.mrf.mxu0 }
  0xbf   :  { %v205_v63 = vadd.f32 %v4266_v28, %v204_v61 }
  0xc1   :  { %v286_v0 = vmax.f32 %v205_v63, 0.0  ;;  %3563 = vmatmul.msk.f32.gmra.mxu0 %vm69_vm0, %v52_v62 }
  0xc3   :  { %3579 = vmatmul.msk.f32.gmra.mxu1 %vm323_vm1, %v286_v0 }
  0xc6   :  { %v207_v2 = vpop.f32.mrf.mxu0 }
  0xc7   :  { %v208_v4 = vadd.f32 %v4266_v28, %v207_v2 }
  0xc9   :  { %v287_v5 = vmax.f32 %v208_v4, 0.0  ;;  %3564 = vmatmul.msk.f32.gmra.mxu0 %vm69_vm0, %v53_v3 }
  0xcb   :  { %3580 = vmatmul.msk.f32.gmra.mxu1 %vm323_vm1, %v287_v5 }
  0xce   :  { %v210_v8 = vpop.f32.mrf.mxu0 }
  0xcf   :  { %v211_v9 = vadd.f32 %v4266_v28, %v210_v8 }
  0xd1   :  { %v288_v11 = vmax.f32 %v211_v9, 0.0 }
  0xd3   :  { %3581 = vmatmul.msk.f32.gmra.mxu1 %vm323_vm1, %v288_v11 }
  0xd6   :  { %v213_v16 = vpop.f32.mrf.mxu0 }
  0xd7   :  { %v214_v17 = vadd.f32 %v4266_v28, %v213_v16 }
  0xd9   :  { %v289_v19 = vmax.f32 %v214_v17, 0.0 }
  0xdb   :  { %3582 = vmatmul.msk.f32.gmra.mxu1 %vm323_vm1, %v289_v19  ;;  %v261_v19 = vpop.f32.mrf.mxu3 }
  0xdc   :  { %v262_v22 = vadd.f32 %v4266_v28, %v261_v19  ;;  %v4469_v19 = vld [vmem:[%s7228_s6] ss:$0 sm:$0xff] }
  0xde   :  { %v216_v23 = vpop.f32.mrf.mxu0 }
  0xdf   :  { %v217_v24 = vadd.f32 %v4266_v28, %v216_v23 }
  0xe1   :  { %v290_v26 = vmax.f32 %v217_v24, 0.0  ;;  %v305_v24 = vmax.f32 %v262_v22, 0.0 }
  0xe3   :  { %3583 = vmatmul.msk.f32.gmra.mxu1 %vm323_vm1, %v290_v26  ;;  %3598 = vmatmul.msk.f32.gmra.mxu3 %vm323_vm1, %v305_v24  ;;  %v264_v29 = vpop.f32.mrf.mxu3 }
  0xe6   :  { %v219_v31 = vpop.f32.mrf.mxu0 }
  0xe7   :  { %v220_v32 = vadd.f32 %v4266_v28, %v219_v31 }
  0xe9   :  { %v291_v34 = vmax.f32 %v220_v32, 0.0  ;;  %v265_v32 = vadd.f32 %v4266_v28, %v264_v29 }
  0xeb   :  { %3584 = vmatmul.msk.f32.gmra.mxu1 %vm323_vm1, %v291_v34  ;;  %v306_v34 = vmax.f32 %v265_v32, 0.0 }
  0xed   :  { %3599 = vmatmul.msk.f32.gmra.mxu3 %vm323_vm1, %v306_v34 }
  0xee   :  { %v222_v37 = vpop.f32.mrf.mxu0 }
  0xef   :  { %v223_v38 = vadd.f32 %v4266_v28, %v222_v37 }
  0xf1   :  { %v292_v39 = vmax.f32 %v223_v38, 0.0  ;;  %v267_v38 = vpop.f32.mrf.mxu3 }
  0xf3   :  { %3585 = vmatmul.msk.f32.gmra.mxu1 %vm323_vm1, %v292_v39 }
  0xf6   :  { %v225_v40 = vpop.f32.mrf.mxu0 }
  0xf7   :  { %v226_v41 = vadd.f32 %v4266_v28, %v225_v40 }
  0xf9   :  { %v293_v42 = vmax.f32 %v226_v41, 0.0  ;;  %v268_v41 = vadd.f32 %v4266_v28, %v267_v38 }
  0xfb   :  { %3586 = vmatmul.msk.f32.gmra.mxu1 %vm323_vm1, %v293_v42 }
  0xfe   :  { %v228_v43 = vpop.f32.mrf.mxu0 }
  0xff   :  { %v229_v44 = vadd.f32 %v4266_v28, %v228_v43  ;;  %v307_v43 = vmax.f32 %v268_v41, 0.0 }
 0x101   :  { %v294_v45 = vmax.f32 %v229_v44, 0.0  ;;  %3600 = vmatmul.msk.f32.gmra.mxu3 %vm323_vm1, %v307_v43 }
 0x103   :  { %3587 = vmatmul.msk.f32.gmra.mxu1 %vm323_vm1, %v294_v45 }
 0x106   :  { %v231_v47 = vpop.f32.mrf.mxu0 }
 0x107   :  { %v232_v48 = vadd.f32 %v4266_v28, %v231_v47 }
 0x108   :  { %v437_v49 = vpop.f32.mrf.mxu1 }
 0x109   :  { %v295_v50 = vmax.f32 %v232_v48, 0.0  ;;  %v438_v51 = vadd.f32 %v4415_v46, %v437_v49  ;;  %v270_v48 = vpop.f32.mrf.mxu3 }
 0x10b   :  { %3588 = vmatmul.msk.f32.gmra.mxu1 %vm323_vm1, %v295_v50  ;;  %v533_v52 = vmax.f32 %v438_v51, 0.0  ;;  %v271_v51 = vadd.f32 %v4266_v28, %v270_v48 }
 0x10d   :  { %565 = vst [vmem:[#allocation2] sm:$0xff] %v533_v52  ;;  %633 = vmatmul.f32.vlgmr.msra.gmra.mxu2 %v533_v52 }
 0x10e   :  { %v234_v53 = vpop.f32.mrf.mxu0 }
 0x10f   :  { %v235_v54 = vadd.f32 %v4266_v28, %v234_v53  ;;  %v308_v53 = vmax.f32 %v271_v51, 0.0 }
 0x110   :  { %v440_v55 = vpop.f32.mrf.mxu1 }
 0x111   :  { %v296_v56 = vmax.f32 %v235_v54, 0.0  ;;  %v441_v57 = vadd.f32 %v4415_v46, %v440_v55  ;;  %3601 = vmatmul.msk.f32.gmra.mxu3 %vm323_vm1, %v308_v53  ;;  %v273_v55 = vpop.f32.mrf.mxu3 }
 0x113   :  { %v534_v58 = vmax.f32 %v441_v57, 0.0  ;;  %3589 = vmatmul.msk.f32.gmra.mxu1 %vm323_vm1, %v296_v56  ;;  %v274_v57 = vadd.f32 %v4266_v28, %v273_v55 }
 0x115   :  { %566 = vst [vmem:[#allocation2 + $0x8] sm:$0xff] %v534_v58  ;;  %636 = vmatmul.f32.gmra.mxu2 %v534_v58 }
 0x116   :  { %v237_v59 = vpop.f32.mrf.mxu0 }
 0x117   :  { %v238_v60 = vadd.f32 %v4266_v28, %v237_v59  ;;  %v309_v59 = vmax.f32 %v274_v57, 0.0 }
 0x118   :  { %v443_v61 = vpop.f32.mrf.mxu1 }
 0x119   :  { %v297_v62 = vmax.f32 %v238_v60, 0.0  ;;  %v444_v63 = vadd.f32 %v4415_v46, %v443_v61  ;;  %3602 = vmatmul.msk.f32.gmra.mxu3 %vm323_vm1, %v309_v59  ;;  %v276_v61 = vpop.f32.mrf.mxu3 }
 0x11b   :  { %v535_v0 = vmax.f32 %v444_v63, 0.0  ;;  %3590 = vmatmul.msk.f32.gmra.mxu1 %vm323_vm1, %v297_v62  ;;  %v277_v63 = vadd.f32 %v4266_v28, %v276_v61 }
 0x11d   :  { %567 = vst [vmem:[#allocation2 + $0x10] sm:$0xff] %v535_v0  ;;  %639 = vmatmul.f32.gmra.mxu2 %v535_v0 }
 0x11e   :  { %v240_v1 = vpop.f32.mrf.mxu0 }
 0x11f   :  { %v241_v2 = vadd.f32 %v4266_v28, %v240_v1  ;;  %v310_v1 = vmax.f32 %v277_v63, 0.0 }
 0x120   :  { %v446_v3 = vpop.f32.mrf.mxu1 }
 0x121   :  { %v298_v4 = vmax.f32 %v241_v2, 0.0  ;;  %v447_v5 = vadd.f32 %v4415_v46, %v446_v3  ;;  %3603 = vmatmul.msk.f32.gmra.mxu3 %vm323_vm1, %v310_v1 }
 0x123   :  { %v536_v6 = vmax.f32 %v447_v5, 0.0  ;;  %3591 = vmatmul.msk.f32.gmra.mxu1 %vm323_vm1, %v298_v4 }
 0x125   :  { %568 = vst [vmem:[#allocation2 + $0x18] sm:$0xff] %v536_v6  ;;  %642 = vmatmul.f32.gmra.mxu2 %v536_v6 }
 0x126   :  { %v243_v7 = vpop.f32.mrf.mxu0 }
 0x127   :  { %v244_v8 = vadd.f32 %v4266_v28, %v243_v7 }
 0x128   :  { %v449_v9 = vpop.f32.mrf.mxu1 }
 0x129   :  { %v299_v11 = vmax.f32 %v244_v8, 0.0  ;;  %v450_v12 = vadd.f32 %v4415_v46, %v449_v9 }
 0x12b   :  { %v537_v14 = vmax.f32 %v450_v12, 0.0  ;;  %3592 = vmatmul.msk.f32.gmra.mxu1 %vm323_vm1, %v299_v11 }
 0x12d   :  { %569 = vst [vmem:[#allocation2 + $0x20] sm:$0xff] %v537_v14  ;;  %645 = vmatmul.f32.gmra.mxu2 %v537_v14 }
 0x12e   :  { %v246_v16 = vpop.f32.mrf.mxu0 }
 0x12f   :  { %v247_v17 = vadd.f32 %v4266_v28, %v246_v16 }
 0x130   :  { %v452_v18 = vpop.f32.mrf.mxu1 }
 0x131   :  { %v300_v20 = vmax.f32 %v247_v17, 0.0  ;;  %v453_v21 = vadd.f32 %v4415_v46, %v452_v18 }
 0x133   :  { %v538_v23 = vmax.f32 %v453_v21, 0.0  ;;  %3593 = vmatmul.msk.f32.gmra.mxu1 %vm323_vm1, %v300_v20 }
 0x135   :  { %570 = vst [vmem:[#allocation2 + $0x28] sm:$0xff] %v538_v23  ;;  %648 = vmatmul.f32.gmra.mxu2 %v538_v23 }
 0x136   :  { %v249_v25 = vpop.f32.mrf.mxu0 }
 0x137   :  { %v250_v26 = vadd.f32 %v4266_v28, %v249_v25 }
 0x138   :  { %v455_v27 = vpop.f32.mrf.mxu1 }
 0x139   :  { %v301_v30 = vmax.f32 %v250_v26, 0.0  ;;  %v456_v31 = vadd.f32 %v4415_v46, %v455_v27 }
 0x13b   :  { %v539_v33 = vmax.f32 %v456_v31, 0.0  ;;  %3594 = vmatmul.msk.f32.gmra.mxu1 %vm323_vm1, %v301_v30 }
 0x13d   :  { %571 = vst [vmem:[#allocation2 + $0x30] sm:$0xff] %v539_v33  ;;  %651 = vmatmul.f32.gmra.mxu2 %v539_v33 }
 0x13e   :  { %v252_v35 = vpop.f32.mrf.mxu0 }
 0x13f   :  { %v253_v36 = vadd.f32 %v4266_v28, %v252_v35 }
 0x140   :  { %v458_v37 = vpop.f32.mrf.mxu1 }
 0x141   :  { %v302_v39 = vmax.f32 %v253_v36, 0.0  ;;  %v459_v40 = vadd.f32 %v4415_v46, %v458_v37 }
 0x143   :  { %v540_v42 = vmax.f32 %v459_v40, 0.0  ;;  %3595 = vmatmul.msk.f32.gmra.mxu1 %vm323_vm1, %v302_v39 }
 0x145   :  { %572 = vst [vmem:[#allocation2 + $0x38] sm:$0xff] %v540_v42  ;;  %654 = vmatmul.f32.gmra.mxu2 %v540_v42 }
 0x146   :  { %v255_v44 = vpop.f32.mrf.mxu0 }
 0x147   :  { %v256_v45 = vadd.f32 %v4266_v28, %v255_v44 }
 0x148   :  { %v461_v47 = vpop.f32.mrf.mxu1 }
 0x149   :  { %v303_v49 = vmax.f32 %v256_v45, 0.0  ;;  %v462_v50 = vadd.f32 %v4415_v46, %v461_v47 }
 0x14b   :  { %v541_v52 = vmax.f32 %v462_v50, 0.0  ;;  %3596 = vmatmul.msk.f32.gmra.mxu1 %vm323_vm1, %v303_v49 }
 0x14d   :  { %573 = vst [vmem:[#allocation2 + $0x40] sm:$0xff] %v541_v52  ;;  %657 = vmatmul.f32.gmra.mxu2 %v541_v52 }
 0x150   :  { %v464_v54 = vpop.f32.mrf.mxu1 }
 0x151   :  { %v465_v56 = vadd.f32 %v4415_v46, %v464_v54 }
 0x153   :  { %v542_v58 = vmax.f32 %v465_v56, 0.0 }
 0x155   :  { %574 = vst [vmem:[#allocation2 + $0x48] sm:$0xff] %v542_v58  ;;  %660 = vmatmul.f32.gmra.mxu2 %v542_v58 }
 0x158   :  { %v467_v60 = vpop.f32.mrf.mxu1 }
 0x159   :  { %v468_v62 = vadd.f32 %v4415_v46, %v467_v60 }
 0x15b   :  { %v543_v0 = vmax.f32 %v468_v62, 0.0 }
 0x15d   :  { %575 = vst [vmem:[#allocation2 + $0x50] sm:$0xff] %v543_v0  ;;  %663 = vmatmul.f32.gmra.mxu2 %v543_v0 }
 0x160   :  { %v470_v2 = vpop.f32.mrf.mxu1 }
 0x161   :  { %v471_v3 = vadd.f32 %v4415_v46, %v470_v2 }
 0x163   :  { %v544_v4 = vmax.f32 %v471_v3, 0.0 }
 0x165   :  { %576 = vst [vmem:[#allocation2 + $0x58] sm:$0xff] %v544_v4  ;;  %666 = vmatmul.f32.gmra.mxu2 %v544_v4 }
 0x168   :  { %v473_v5 = vpop.f32.mrf.mxu1 }
 0x169   :  { %v474_v6 = vadd.f32 %v4415_v46, %v473_v5 }
 0x16b   :  { %v545_v7 = vmax.f32 %v474_v6, 0.0 }
 0x16d   :  { %577 = vst [vmem:[#allocation2 + $0x60] sm:$0xff] %v545_v7  ;;  %669 = vmatmul.f32.gmra.mxu2 %v545_v7 }
 0x170   :  { %v476_v8 = vpop.f32.mrf.mxu1 }
 0x171   :  { %v477_v28 = vadd.f32 %v4415_v46, %v476_v8 }
 0x173   :  { %v546_v9 = vmax.f32 %v477_v28, 0.0  ;;  %v512_v28 = vpop.f32.mrf.mxu3 }
 0x175   :  { %578 = vst [vmem:[#allocation2 + $0x68] sm:$0xff] %v546_v9  ;;  %672 = vmatmul.f32.gmra.mxu2 %v546_v9 }
 0x178   :  { %v479_v10 = vpop.f32.mrf.mxu1 }
 0x179   :  { %v480_v11 = vadd.f32 %v4415_v46, %v479_v10 }
 0x17b   :  { %v547_v12 = vmax.f32 %v480_v11, 0.0 }
 0x17d   :  { %579 = vst [vmem:[#allocation2 + $0x70] sm:$0xff] %v547_v12  ;;  %675 = vmatmul.f32.gmra.mxu2 %v547_v12 }
 0x180   :  { %v482_v13 = vpop.f32.mrf.mxu1 }
 0x181   :  { %v483_v14 = vadd.f32 %v4415_v46, %v482_v13 }
 0x183   :  { %v548_v15 = vmax.f32 %v483_v14, 0.0 }
 0x185   :  { %580 = vst [vmem:[#allocation2 + $0x78] sm:$0xff] %v548_v15  ;;  %678 = vmatmul.f32.gmra.mxu2 %v548_v15  ;;  %v4506_v15 = vadd.f32 %v4415_v46, %v512_v28 }
 0x188   :  { %v485_v16 = vpop.f32.mrf.mxu1 }
 0x189   :  { %v486_v17 = vadd.f32 %v4415_v46, %v485_v16 }
 0x18b   :  { %v549_v18 = vmax.f32 %v486_v17, 0.0 }
 0x18d   :  { %581 = vst [vmem:[#allocation2 + $0x80] sm:$0xff] %v549_v18  ;;  %681 = vmatmul.f32.gmra.mxu2 %v549_v18 }
 0x190   :  { %v488_v20 = vpop.f32.mrf.mxu1  ;;  %v634_v21 = vpop.f32.mrf.mxu2 }
 0x191   :  { %v489_v22 = vadd.f32 %v4415_v46, %v488_v20  ;;  %v4473_v23 = vadd.f32 %v4469_v19, %v634_v21 }
 0x193   :  { %v550_v24 = vmax.f32 %v489_v22, 0.0  ;;  %v3604_v25 = vmul.f32 -1.442695, %v4473_v23 }
 0x195   :  { %582 = vst [vmem:[#allocation2 + $0x88] sm:$0xff] %v550_v24  ;;  %3703 = vpow2.f32 %v3604_v25  ;;  %684 = vmatmul.f32.gmra.mxu2 %v550_v24 }
 0x198   :  { %v491_v26 = vpop.f32.mrf.mxu1  ;;  %v637_v27 = vpop.f32.mrf.mxu2 }
 0x199   :  { %v492_v29 = vadd.f32 %v4415_v46, %v491_v26  ;;  %v4478_v30 = vadd.f32 %v4469_v19, %v637_v27  ;;  %v558_v26 = vmax.f32 %v4506_v15, 0.0 }
 0x19b   :  { %v3704_v31 = vpop.eup %3703  ;;  %v551_v32 = vmax.f32 %v492_v29, 0.0  ;;  %v3605_v33 = vmul.f32 -1.442695, %v4478_v30  ;;  %590 = vst [vmem:[#allocation2 + $0xc8] sm:$0xff] %v558_v26 }
 0x19c   :  { %v826_v34 = vadd.f32 1.0, %v3704_v31 }
 0x19d   :  { %583 = vst [vmem:[#allocation2 + $0x90] sm:$0xff] %v551_v32  ;;  %3705 = vpow2.f32 %v3605_v33  ;;  %687 = vmatmul.f32.gmra.mxu2 %v551_v32 }
 0x19e   :  { %3707 = vrcp.f32 %v826_v34  ;;  %v869_v52 = vand.u32 2147483648, %v826_v34  ;;  %v867_v53 = vand.u32 2147483647, %v826_v34  ;;  %vm863_vm3 = vweird.f32 %v826_v34 }
 0x1a0   :  { %v494_v35 = vpop.f32.mrf.mxu1  ;;  %v640_v36 = vpop.f32.mrf.mxu2  ;;  %v870_v60 = vor.u32 1.1754944e-38, %v869_v52  ;;  %vm868_vm6 = vcmp.eq.f32.partialorder %v867_v53, 8.507059e+37 }
 0x1a1   :  { %v495_v37 = vadd.f32 %v4415_v46, %v494_v35  ;;  %v4483_v38 = vadd.f32 %v4469_v19, %v640_v36 }
 0x1a3   :  { %v3706_v39 = vpop.eup %3705  ;;  %v552_v40 = vmax.f32 %v495_v37, 0.0  ;;  %v3606_v41 = vmul.f32 -1.442695, %v4483_v38 }
 0x1a4   :  { %v3708_v42 = vpop.eup %3707  ;;  %v827_v43 = vadd.f32 1.0, %v3706_v39 }
 0x1a5   :  { %584 = vst [vmem:[#allocation2 + $0x98] sm:$0xff] %v552_v40  ;;  %3709 = vpow2.f32 %v3606_v41  ;;  %690 = vmatmul.f32.gmra.mxu2 %v552_v40  ;;  %v859_v44 = vmul.f32 %v3708_v42, %v826_v34  ;;  %vm864_vm2 = vweird.f32 %v3708_v42  ;;  %v515_v34 = vpop.f32.mrf.mxu3 }
 0x1a6   :  { %3711 = vrcp.f32 %v827_v43  ;;  %vm865_vm4 = vmor %vm863_vm3, %vm864_vm2  ;;  %v884_v7 = vand.u32 2147483648, %v827_v43  ;;  %v882_v8 = vand.u32 2147483647, %v827_v43  ;;  %vm878_vm8 = vweird.f32 %v827_v43 }
 0x1a7   :  { %v860_v45 = vsub.f32 1.0, %v859_v44 }
 0x1a8   :  { %v497_v47 = vpop.f32.mrf.mxu1  ;;  %v643_v48 = vpop.f32.mrf.mxu2  ;;  %v885_v16 = vor.u32 1.1754944e-38, %v884_v7  ;;  %vm883_vm10 = vcmp.eq.f32.partialorder %v882_v8, 8.507059e+37 }
 0x1a9   :  { %v498_v49 = vadd.f32 %v4415_v46, %v497_v47  ;;  %v4488_v50 = vadd.f32 %v4469_v19, %v643_v48  ;;  %v861_v51 = vmul.f32 %v3708_v42, %v860_v45 }
 0x1ab   :  { %7302 = vst [vmem:[#allocation5_spill] sm:$0xff] %v4488_v50  ;;  %v3710_v54 = vpop.eup %3709  ;;  %v553_v55 = vmax.f32 %v498_v49, 0.0  ;;  %v3607_v56 = vmul.f32 -1.442695, %v4488_v50  ;;  %v862_v59 = vadd.f32 %v3708_v42, %v861_v51 }
 0x1ac   :  { %v3712_v57 = vpop.eup %3711  ;;  %v4491_v58 = vadd.f32 1.0, %v3710_v54 }
 0x1ad   :  { %585 = vst [vmem:[#allocation2 + $0xa0] sm:$0xff] %v553_v55  ;;  %3713 = vpow2.f32 %v3607_v56  ;;  %693 = vmatmul.f32.gmra.mxu2 %v553_v55  ;;  %v874_v61 = vmul.f32 %v3712_v57, %v827_v43  ;;  %v866_v62 = vsel %vm865_vm4, %v3708_v42, %v862_v59  ;;  %vm879_vm7 = vweird.f32 %v3712_v57  ;;  %v518_v59 = vpop.f32.mrf.mxu3 }
 0x1ae   :  { %3715 = vrcp.f32 %v4491_v58  ;;  %v4494_v63 = vsel %vm868_vm6, %v870_v60, %v866_v62  ;;  %vm880_vm9 = vmor %vm878_vm8, %vm879_vm7  ;;  %v899_v32 = vand.u32 2147483648, %v4491_v58  ;;  %v897_v33 = vand.u32 2147483647, %v4491_v58 }
 0x1af   :  { %v875_v0 = vsub.f32 1.0, %v874_v61  ;;  %v1947_v3 = vsel %vm1946_vm5, %v4494_v63, 0.0  ;;  %vm893_vm12 = vweird.f32 %v4491_v58  ;;  %v4528_v42 = vadd.f32 %v4415_v46, %v515_v34 }
 0x1b0   :  { %v500_v1 = vpop.f32.mrf.mxu1  ;;  %v646_v2 = vpop.f32.mrf.mxu2  ;;  %1948 = vadd.xlane.f32.xlu0 %v1947_v3  ;;  %v900_v43 = vor.u32 1.1754944e-38, %v899_v32  ;;  %vm898_vm14 = vcmp.eq.f32.partialorder %v897_v33, 8.507059e+37  ;;  %v4551_v3 = vadd.f32 %v4415_v46, %v518_v59 }
 0x1b1   :  { %v501_v4 = vadd.f32 %v4415_v46, %v500_v1  ;;  %v4500_v5 = vadd.f32 %v4469_v19, %v646_v2  ;;  %v876_v6 = vmul.f32 %v3712_v57, %v875_v0  ;;  %v559_v53 = vmax.f32 %v4528_v42, 0.0 }
 0x1b3   :  { %v3714_v9 = vpop.eup %3713  ;;  %v554_v10 = vmax.f32 %v501_v4, 0.0  ;;  %v3608_v11 = vmul.f32 -1.442695, %v4500_v5  ;;  %v877_v14 = vadd.f32 %v3712_v57, %v876_v6  ;;  %591 = vst [vmem:[#allocation2 + $0xd0] sm:$0xff] %v559_v53 }
 0x1b4   :  { %v3716_v12 = vpop.eup %3715  ;;  %v4503_v13 = vadd.f32 1.0, %v3714_v9 }
 0x1b5   :  { %586 = vst [vmem:[#allocation2 + $0xa8] sm:$0xff] %v554_v10  ;;  %3717 = vpow2.f32 %v3608_v11  ;;  %696 = vmatmul.f32.gmra.mxu2 %v554_v10  ;;  %v889_v17 = vmul.f32 %v3716_v12, %v4491_v58  ;;  %v881_v18 = vsel %vm880_vm9, %v3712_v57, %v877_v14  ;;  %vm894_vm11 = vweird.f32 %v3716_v12 }
 0x1b6   :  { %3719 = vrcp.f32 %v4503_v13  ;;  %v4510_v20 = vsel %vm883_vm10, %v885_v16, %v881_v18  ;;  %vm895_vm13 = vmor %vm893_vm12, %vm894_vm11  ;;  %v914_v57 = vand.u32 2147483648, %v4503_v13  ;;  %v912_v58 = vand.u32 2147483647, %v4503_v13 }
 0x1b7   :  { %7303 = vst [vmem:[#allocation6_spill] sm:$0xff] %v4510_v20  ;;  %v890_v21 = vsub.f32 1.0, %v889_v17  ;;  %v1950_v25 = vsel %vm1946_vm5, %v4510_v20, 0.0  ;;  %vm908_vm0 = vweird.f32 %v4503_v13 }
 0x1b8   :  { %v503_v22 = vpop.f32.mrf.mxu1  ;;  %v649_v24 = vpop.f32.mrf.mxu2  ;;  %1951 = vadd.xlane.f32.xlu0 %v1950_v25  ;;  %v915_v4 = vor.u32 1.1754944e-38, %v914_v57  ;;  %vm913_vm2 = vcmp.eq.f32.partialorder %v912_v58, 8.507059e+37 }
 0x1b9   :  { %v504_v27 = vadd.f32 %v4415_v46, %v503_v22  ;;  %v4517_v29 = vadd.f32 %v4469_v19, %v649_v24  ;;  %v891_v31 = vmul.f32 %v3716_v12, %v890_v21  ;;  %v521_v21 = vpop.f32.mrf.mxu3 }
 0x1ba   :  { %v4574_v33 = vadd.f32 %v4415_v46, %v521_v21 }
 0x1bb   :  { %7304 = vst [vmem:[#allocation7_spill] sm:$0xff] %v4517_v29  ;;  %v3718_v35 = vpop.eup %3717  ;;  %v555_v36 = vmax.f32 %v504_v27, 0.0  ;;  %v3609_v37 = vmul.f32 -1.442695, %v4517_v29  ;;  %v892_v41 = vadd.f32 %v3716_v12, %v891_v31 }
 0x1bc   :  { %v3720_v39 = vpop.eup %3719  ;;  %v4524_v40 = vadd.f32 1.0, %v3718_v35 }
 0x1bd   :  { %587 = vst [vmem:[#allocation2 + $0xb0] sm:$0xff] %v555_v36  ;;  %3721 = vpow2.f32 %v3609_v37  ;;  %699 = vmatmul.f32.gmra.mxu2 %v555_v36  ;;  %v904_v44 = vmul.f32 %v3720_v39, %v4503_v13  ;;  %v896_v45 = vsel %vm895_vm13, %v3716_v12, %v892_v41  ;;  %vm909_vm15 = vweird.f32 %v3720_v39 }
 0x1be   :  { %3723 = vrcp.f32 %v4524_v40  ;;  %v4533_v47 = vsel %vm898_vm14, %v900_v43, %v896_v45  ;;  %vm910_vm1 = vmor %vm908_vm0, %vm909_vm15  ;;  %v560_v12 = vmax.f32 %v4551_v3, 0.0  ;;  %v929_v17 = vand.u32 2147483648, %v4524_v40 }
 0x1bf   :  { %v905_v48 = vsub.f32 1.0, %v904_v44  ;;  %v1953_v52 = vsel %vm1946_vm5, %v4533_v47, 0.0  ;;  %v927_v18 = vand.u32 2147483647, %v4524_v40  ;;  %vm923_vm4 = vweird.f32 %v4524_v40 }
 0x1c0   :  { %v506_v49 = vpop.f32.mrf.mxu1  ;;  %v652_v51 = vpop.f32.mrf.mxu2  ;;  %1954 = vadd.xlane.f32.xlu1 %v1953_v52  ;;  %592 = vst [vmem:[#allocation2 + $0xd8] sm:$0xff] %v560_v12  ;;  %v930_v34 = vor.u32 1.1754944e-38, %v929_v17  ;;  %v561_v44 = vmax.f32 %v4574_v33, 0.0 }
 0x1c1   :  { %v507_v54 = vadd.f32 %v4415_v46, %v506_v49  ;;  %v4540_v55 = vadd.f32 %v4469_v19, %v652_v51  ;;  %v906_v56 = vmul.f32 %v3720_v39, %v905_v48  ;;  %vm928_vm7 = vcmp.eq.f32.partialorder %v927_v18, 8.507059e+37  ;;  %v524_v51 = vpop.f32.mrf.mxu3 }
 0x1c2   :  { %593 = vst [vmem:[#allocation2 + $0xe0] sm:$0xff] %v561_v44 }
 0x1c3   :  { %7305 = vst [vmem:[#allocation8_spill] sm:$0xff] %v4540_v55  ;;  %v3722_v60 = vpop.eup %3721  ;;  %v556_v61 = vmax.f32 %v507_v54, 0.0  ;;  %v3610_v62 = vmul.f32 -1.442695, %v4540_v55  ;;  %v907_v2 = vadd.f32 %v3720_v39, %v906_v56 }
 0x1c4   :  { %v3724_v0 = vpop.eup %3723  ;;  %v4547_v1 = vadd.f32 1.0, %v3722_v60  ;;  %v4596_v60 = vadd.f32 %v4415_v46, %v524_v51 }
 0x1c5   :  { %588 = vst [vmem:[#allocation2 + $0xb8] sm:$0xff] %v556_v61  ;;  %3725 = vpow2.f32 %v3610_v62  ;;  %702 = vmatmul.f32.vlgmr.msra.gmra.mxu3 %v556_v61  ;;  %v919_v6 = vmul.f32 %v3724_v0, %v4524_v40  ;;  %v911_v7 = vsel %vm910_vm1, %v3720_v39, %v907_v2  ;;  %vm924_vm3 = vweird.f32 %v3724_v0 }
 0x1c6   :  { %3727 = vrcp.f32 %v4547_v1  ;;  %v4556_v8 = vsel %vm913_vm2, %v915_v4, %v911_v7  ;;  %vm925_vm6 = vmor %vm923_vm4, %vm924_vm3  ;;  %v944_v43 = vand.u32 2147483648, %v4547_v1  ;;  %v942_v49 = vand.u32 2147483647, %v4547_v1 }
 0x1c7   :  { %7306 = vst [vmem:[#allocation9_spill] sm:$0xff] %v4556_v8  ;;  %v920_v28 = vsub.f32 1.0, %v919_v6  ;;  %v1956_v11 = vsel %vm1946_vm5, %v4556_v8, 0.0  ;;  %vm938_vm9 = vweird.f32 %v4547_v1  ;;  %v562_v6 = vmax.f32 %v4596_v60, 0.0 }
 0x1c8   :  { %v509_v9 = vpop.f32.mrf.mxu1  ;;  %v655_v10 = vpop.f32.mrf.mxu2  ;;  %1957 = vadd.xlane.f32.xlu1 %v1956_v11  ;;  %v945_v59 = vor.u32 1.1754944e-38, %v944_v43  ;;  %vm943_vm11 = vcmp.eq.f32.partialorder %v942_v49, 8.507059e+37 }
 0x1c9   :  { %v510_v13 = vadd.f32 %v4415_v46, %v509_v9  ;;  %v4563_v14 = vadd.f32 %v4469_v19, %v655_v10  ;;  %v921_v16 = vmul.f32 %v3724_v0, %v920_v28  ;;  %594 = vst [vmem:[#allocation2 + $0xe8] sm:$0xff] %v562_v6  ;;  %v527_v9 = vpop.f32.mrf.mxu3 }
 0x1ca   :  { %v4619_v18 = vadd.f32 %v4415_v46, %v527_v9 }
 0x1cb   :  { %7307 = vst [vmem:[#allocation10_spill] sm:$0xff] %v4563_v14  ;;  %v3726_v22 = vpop.eup %3725  ;;  %v557_v24 = vmax.f32 %v510_v13, 0.0  ;;  %v3611_v25 = vmul.f32 -1.442695, %v4563_v14  ;;  %v922_v32 = vadd.f32 %v3724_v0, %v921_v16 }
 0x1cc   :  { %v3728_v27 = vpop.eup %3727  ;;  %v4570_v31 = vadd.f32 1.0, %v3726_v22  ;;  %v563_v42 = vmax.f32 %v4619_v18, 0.0 }
 0x1cd   :  { %589 = vst [vmem:[#allocation2 + $0xc0] sm:$0xff] %v557_v24  ;;  %3729 = vpow2.f32 %v3611_v25  ;;  %705 = vmatmul.f32.gmra.mxu3 %v557_v24  ;;  %v934_v35 = vmul.f32 %v3728_v27, %v4547_v1  ;;  %v926_v36 = vsel %vm925_vm6, %v3724_v0, %v922_v32  ;;  %vm939_vm8 = vweird.f32 %v3728_v27 }
 0x1ce   :  { %3731 = vrcp.f32 %v4570_v31  ;;  %v4579_v37 = vsel %vm928_vm7, %v930_v34, %v926_v36  ;;  %vm940_vm10 = vmor %vm938_vm9, %vm939_vm8  ;;  %v959_v15 = vand.u32 2147483648, %v4570_v31  ;;  %v957_v28 = vand.u32 2147483647, %v4570_v31  ;;  %595 = vst [vmem:[#allocation2 + $0xf0] sm:$0xff] %v563_v42 }
 0x1cf   :  { %7308 = vst [vmem:[#allocation11_spill] sm:$0xff] %v4579_v37  ;;  %v935_v39 = vsub.f32 1.0, %v934_v35  ;;  %v1959_v40 = vsel %vm1946_vm5, %v4579_v37, 0.0  ;;  %vm953_vm13 = vweird.f32 %v4570_v31 }
 0x1d0   :  { %v658_v41 = vpop.f32.mrf.mxu2  ;;  %1960 = vadd.xlane.f32.xlu2 %v1959_v40  ;;  %v960_v21 = vor.u32 1.1754944e-38, %v959_v15  ;;  %vm958_vm15 = vcmp.eq.f32.partialorder %v957_v28, 8.507059e+37 }
 0x1d1   :  { %v4586_v45 = vadd.f32 %v4469_v19, %v658_v41  ;;  %v936_v48 = vmul.f32 %v3728_v27, %v935_v39  ;;  %v530_v39 = vpop.f32.mrf.mxu3 }
 0x1d3   :  { %7309 = vst [vmem:[#allocation12_spill] sm:$0xff] %v4586_v45  ;;  %v3730_v52 = vpop.eup %3729  ;;  %v3612_v54 = vmul.f32 -1.442695, %v4586_v45  ;;  %v937_v56 = vadd.f32 %v3728_v27, %v936_v48 }
 0x1d4   :  { %v3732_v57 = vpop.eup %3731  ;;  %v4593_v58 = vadd.f32 1.0, %v3730_v52  ;;  %v4640_v52 = vadd.f32 %v4415_v46, %v530_v39 }
 0x1d5   :  { %3733 = vpow2.f32 %v3612_v54  ;;  %708 = vmatmul.f32.gmra.mxu3 %v558_v26  ;;  %v941_v61 = vsel %vm940_vm10, %v3728_v27, %v937_v56  ;;  %v949_v0 = vmul.f32 %v3732_v57, %v4570_v31  ;;  %vm954_vm12 = vweird.f32 %v3732_v57 }
 0x1d6   :  { %3735 = vrcp.f32 %v4593_v58  ;;  %v4601_v62 = vsel %vm943_vm11, %v945_v59, %v941_v61  ;;  %vm955_vm14 = vmor %vm953_vm13, %vm954_vm12  ;;  %v974_v34 = vand.u32 2147483648, %v4593_v58  ;;  %v972_v36 = vand.u32 2147483647, %v4593_v58 }
 0x1d7   :  { %7310 = vst [vmem:[#allocation13_spill] sm:$0xff] %v4601_v62  ;;  %v1962_v1 = vsel %vm1946_vm5, %v4601_v62, 0.0  ;;  %v950_v4 = vsub.f32 1.0, %v949_v0  ;;  %vm968_vm1 = vweird.f32 %v4593_v58  ;;  %v564_v46 = vmax.f32 %v4640_v52, 0.0 }
 0x1d8   :  { %v661_v2 = vpop.f32.mrf.mxu2  ;;  %1963 = vadd.xlane.f32.xlu2 %v1962_v1  ;;  %v975_v51 = vor.u32 1.1754944e-38, %v974_v34  ;;  %vm973_vm3 = vcmp.eq.f32.partialorder %v972_v36, 8.507059e+37 }
 0x1d9   :  { %v4608_v7 = vadd.f32 %v4469_v19, %v661_v2  ;;  %v951_v26 = vmul.f32 %v3732_v57, %v950_v4  ;;  %596 = vst [vmem:[#allocation2 + $0xf8] sm:$0xff] %v564_v46 }
 0x1da   :  { %3530 = dma.vmem_to_hbm [thread:$0]  %s3523_s15, 4096, %s3525_s14, [#allocation3], %s4116_s7, %s4116_s7, %s4117_s16  }
 0x1db   :  { %7311 = vst [vmem:[#allocation14_spill] sm:$0xff] %v4608_v7  ;;  %v3734_v10 = vpop.eup %3733  ;;  %v3613_v11 = vmul.f32 -1.442695, %v4608_v7  ;;  %v952_v17 = vadd.f32 %v3732_v57, %v951_v26 }
 0x1dc   :  { %v3736_v13 = vpop.eup %3735  ;;  %v4615_v16 = vadd.f32 1.0, %v3734_v10 }
 0x1dd   :  { %3737 = vpow2.f32 %v3613_v11  ;;  %711 = vmatmul.f32.gmra.mxu3 %v559_v53  ;;  %v964_v22 = vmul.f32 %v3736_v13, %v4593_v58  ;;  %v956_v24 = vsel %vm955_vm14, %v3732_v57, %v952_v17  ;;  %vm969_vm0 = vweird.f32 %v3736_v13 }
 0x1de   :  { %3739 = vrcp.f32 %v4615_v16  ;;  %v4625_v25 = vsel %vm958_vm15, %v960_v21, %v956_v24  ;;  %vm970_vm2 = vmor %vm968_vm1, %vm969_vm0  ;;  %v989_v3 = vand.u32 2147483648, %v4615_v16  ;;  %v987_v1 = vand.u32 2147483647, %v4615_v16 }
 0x1df   :  { %7312 = vst [vmem:[#allocation15_spill] sm:$0xff] %v4625_v25  ;;  %v965_v27 = vsub.f32 1.0, %v964_v22  ;;  %v1965_v31 = vsel %vm1946_vm5, %v4625_v25, 0.0  ;;  %vm983_vm6 = vweird.f32 %v4615_v16 }
 0x1e0   :  { %v664_v32 = vpop.f32.mrf.mxu2  ;;  %1966 = vadd.xlane.f32.xlu0 %v1965_v31  ;;  %v990_v9 = vor.u32 1.1754944e-38, %v989_v3  ;;  %vm988_vm8 = vcmp.eq.f32.partialorder %v987_v1, 8.507059e+37 }
 0x1e1   :  { %v4632_v53 = vadd.f32 %v4469_v19, %v664_v32  ;;  %v966_v35 = vmul.f32 %v3736_v13, %v965_v27 }
 0x1e3   :  { %7313 = vst [vmem:[#allocation16_spill] sm:$0xff] %v4632_v53  ;;  %v3738_v41 = vpop.eup %3737  ;;  %v3614_v40 = vmul.f32 -1.442695, %v4632_v53  ;;  %v967_v43 = vadd.f32 %v3736_v13, %v966_v35 }
 0x1e4   :  { %v3740_v48 = vpop.eup %3739  ;;  %v835_v49 = vadd.f32 1.0, %v3738_v41 }
 0x1e5   :  { %3741 = vpow2.f32 %v3614_v40  ;;  %714 = vmatmul.f32.gmra.mxu3 %v560_v12  ;;  %v971_v54 = vsel %vm970_vm2, %v3736_v13, %v967_v43  ;;  %v979_v57 = vmul.f32 %v3740_v48, %v4615_v16  ;;  %vm984_vm4 = vweird.f32 %v3740_v48 }
 0x1e6   :  { %3743 = vrcp.f32 %v835_v49  ;;  %v4644_v56 = vsel %vm973_vm3, %v975_v51, %v971_v54  ;;  %vm985_vm7 = vmor %vm983_vm6, %vm984_vm4  ;;  %v1004_v24 = vand.u32 2147483648, %v835_v49  ;;  %vm998_vm10 = vweird.f32 %v835_v49 }
 0x1e7   :  { %7314 = vst [vmem:[#allocation17_spill] sm:$0xff] %v4644_v56  ;;  %v1968_v58 = vsel %vm1946_vm5, %v4644_v56, 0.0  ;;  %v980_v61 = vsub.f32 1.0, %v979_v57 }
 0x1e8   :  { %v667_v59 = vpop.f32.mrf.mxu2  ;;  %1969 = vadd.xlane.f32.xlu1 %v1968_v58  ;;  %v1005_v36 = vor.u32 1.1754944e-38, %v1004_v24 }
 0x1e9   :  { %v4651_v0 = vadd.f32 %v4469_v19, %v667_v59  ;;  %v981_v12 = vmul.f32 %v3740_v48, %v980_v61 }
 0x1eb   :  { %7315 = vst [vmem:[#allocation18_spill] sm:$0xff] %v4651_v0  ;;  %v3742_v2 = vpop.eup %3741  ;;  %v3615_v4 = vmul.f32 -1.442695, %v4651_v0  ;;  %v982_v28 = vadd.f32 %v3740_v48, %v981_v12 }
 0x1ec   :  { %v3744_v15 = vpop.eup %3743  ;;  %v836_v26 = vadd.f32 1.0, %v3742_v2 }
 0x1ed   :  { %3745 = vpow2.f32 %v3615_v4  ;;  %717 = vmatmul.f32.gmra.mxu3 %v561_v44  ;;  %v994_v10 = vmul.f32 %v3744_v15, %v835_v49  ;;  %v986_v11 = vsel %vm985_vm7, %v3740_v48, %v982_v28  ;;  %vm999_vm9 = vweird.f32 %v3744_v15 }
 0x1ee   :  { %3747 = vrcp.f32 %v836_v26  ;;  %v4661_v13 = vsel %vm988_vm8, %v990_v9, %v986_v11  ;;  %v1002_v44 = vand.u32 2147483647, %v835_v49  ;;  %vm1000_vm11 = vmor %vm998_vm10, %vm999_vm9  ;;  %v1019_v54 = vand.u32 2147483648, %v836_v26 }
 0x1ef   :  { %7316 = vst [vmem:[#allocation19_spill] sm:$0xff] %v4661_v13  ;;  %v995_v17 = vsub.f32 1.0, %v994_v10  ;;  %v1971_v22 = vsel %vm1946_vm5, %v4661_v13, 0.0  ;;  %v1017_v60 = vand.u32 2147483647, %v836_v26  ;;  %vm1013_vm14 = vweird.f32 %v836_v26 }
 0x1f0   :  { %v670_v21 = vpop.f32.mrf.mxu2  ;;  %1972 = vadd.xlane.f32.xlu2 %v1971_v22  ;;  %vm1003_vm12 = vcmp.eq.f32.partialorder %v1002_v44, 8.507059e+37  ;;  %v1020_v12 = vor.u32 1.1754944e-38, %v1019_v54 }
 0x1f1   :  { %v4666_v16 = vadd.f32 %v4469_v19, %v670_v21  ;;  %v996_v33 = vmul.f32 %v3744_v15, %v995_v17  ;;  %vm1018_vm0 = vcmp.eq.f32.partialorder %v1017_v60, 8.507059e+37 }
 0x1f3   :  { %7317 = vst [vmem:[#allocation20_spill] sm:$0xff] %v4666_v16  ;;  %v3746_v27 = vpop.eup %3745  ;;  %v3616_v32 = vmul.f32 -1.442695, %v4666_v16  ;;  %v997_v31 = vadd.f32 %v3744_v15, %v996_v33 }
 0x1f4   :  { %v3748_v34 = vpop.eup %3747  ;;  %v837_v35 = vadd.f32 1.0, %v3746_v27 }
 0x1f5   :  { %3749 = vpow2.f32 %v3616_v32  ;;  %720 = vmatmul.f32.gmra.mxu3 %v562_v6  ;;  %v1001_v39 = vsel %vm1000_vm11, %v3744_v15, %v997_v31  ;;  %v1009_v40 = vmul.f32 %v3748_v34, %v836_v26  ;;  %vm1014_vm13 = vweird.f32 %v3748_v34 }
 0x1f6   :  { %3751 = vrcp.f32 %v837_v35  ;;  %v4671_v41 = vsel %vm1003_vm12, %v1005_v36, %v1001_v39  ;;  %vm1015_vm15 = vmor %vm1013_vm14, %vm1014_vm13  ;;  %v1034_v10 = vand.u32 2147483648, %v837_v35  ;;  %vm1028_vm2 = vweird.f32 %v837_v35 }
 0x1f7   :  { %7318 = vst [vmem:[#allocation21_spill] sm:$0xff] %v4671_v41  ;;  %v1974_v43 = vsel %vm1946_vm5, %v4671_v41, 0.0  ;;  %v1010_v49 = vsub.f32 1.0, %v1009_v40 }
 0x1f8   :  { %v673_v48 = vpop.f32.mrf.mxu2  ;;  %1975 = vadd.xlane.f32.xlu0 %v1974_v43  ;;  %v1035_v33 = vor.u32 1.1754944e-38, %v1034_v10 }
 0x1f9   :  { %v4676_v51 = vadd.f32 %v4469_v19, %v673_v48  ;;  %v1011_v57 = vmul.f32 %v3748_v34, %v1010_v49 }
 0x1fb   :  { %7319 = vst [vmem:[#allocation22_spill] sm:$0xff] %v4676_v51  ;;  %v3750_v6 = vpop.eup %3749  ;;  %v3617_v58 = vmul.f32 -1.442695, %v4676_v51  ;;  %v1012_v3 = vadd.f32 %v3748_v34, %v1011_v57 }
 0x1fc   :  { %v3752_v59 = vpop.eup %3751  ;;  %v838_v61 = vadd.f32 1.0, %v3750_v6 }
 0x1fd   :  { %3753 = vpow2.f32 %v3617_v58  ;;  %723 = vmatmul.f32.gmra.mxu3 %v563_v42  ;;  %v1024_v1 = vmul.f32 %v3752_v59, %v837_v35  ;;  %v1016_v2 = vsel %vm1015_vm15, %v3748_v34, %v1012_v3  ;;  %vm1029_vm1 = vweird.f32 %v3752_v59 }
 0x1fe   :  { %3755 = vrcp.f32 %v838_v61  ;;  %v4681_v4 = vsel %vm1018_vm0, %v1020_v12, %v1016_v2  ;;  %v1032_v42 = vand.u32 2147483647, %v837_v35  ;;  %vm1030_vm3 = vmor %vm1028_vm2, %vm1029_vm1  ;;  %v1049_v39 = vand.u32 2147483648, %v838_v61 }
 0x1ff   :  { %7320 = vst [vmem:[#allocation23_spill] sm:$0xff] %v4681_v4  ;;  %v1025_v15 = vsub.f32 1.0, %v1024_v1  ;;  %v1977_v9 = vsel %vm1946_vm5, %v4681_v4, 0.0  ;;  %v1047_v52 = vand.u32 2147483647, %v838_v61  ;;  %vm1043_vm7 = vweird.f32 %v838_v61 }
 0x200   :  { %v676_v28 = vpop.f32.mrf.mxu2  ;;  %1978 = vadd.xlane.f32.xlu1 %v1977_v9  ;;  %vm1033_vm4 = vcmp.eq.f32.partialorder %v1032_v42, 8.507059e+37  ;;  %v1050_v57 = vor.u32 1.1754944e-38, %v1049_v39 }
 0x201   :  { %v4686_v26 = vadd.f32 %v4469_v19, %v676_v28  ;;  %v1026_v18 = vmul.f32 %v3752_v59, %v1025_v15  ;;  %vm1048_vm9 = vcmp.eq.f32.partialorder %v1047_v52, 8.507059e+37 }
 0x203   :  { %7321 = vst [vmem:[#allocation24_spill] sm:$0xff] %v4686_v26  ;;  %v3754_v11 = vpop.eup %3753  ;;  %v3618_v17 = vmul.f32 -1.442695, %v4686_v26  ;;  %v1027_v21 = vadd.f32 %v3752_v59, %v1026_v18 }
 0x204   :  { %v3756_v22 = vpop.eup %3755  ;;  %v839_v24 = vadd.f32 1.0, %v3754_v11 }
 0x205   :  { %3757 = vpow2.f32 %v3618_v17  ;;  %726 = vmatmul.f32.gmra.mxu3 %v564_v46  ;;  %v1031_v44 = vsel %vm1030_vm3, %v3752_v59, %v1027_v21  ;;  %v1039_v32 = vmul.f32 %v3756_v22, %v838_v61  ;;  %vm1044_vm6 = vweird.f32 %v3756_v22 }
 0x206   :  { %3759 = vrcp.f32 %v839_v24  ;;  %v4691_v27 = vsel %vm1033_vm4, %v1035_v33, %v1031_v44  ;;  %vm1045_vm8 = vmor %vm1043_vm7, %vm1044_vm6  ;;  %v1064_v1 = vand.u32 2147483648, %v839_v24  ;;  %v1062_v15 = vand.u32 2147483647, %v839_v24 }
 0x207   :  { %7322 = vst [vmem:[#allocation25_spill] sm:$0xff] %v4691_v27  ;;  %v1980_v31 = vsel %vm1946_vm5, %v4691_v27, 0.0  ;;  %v1040_v35 = vsub.f32 1.0, %v1039_v32  ;;  %vm1058_vm11 = vweird.f32 %v839_v24 }
 0x208   :  { %v679_v34 = vpop.f32.mrf.mxu2  ;;  %1981 = vadd.xlane.f32.xlu2 %v1980_v31  ;;  %v1065_v11 = vor.u32 1.1754944e-38, %v1064_v1  ;;  %vm1063_vm13 = vcmp.eq.f32.partialorder %v1062_v15, 8.507059e+37 }
 0x209   :  { %v4696_v36 = vadd.f32 %v4469_v19, %v679_v34  ;;  %v1041_v40 = vmul.f32 %v3756_v22, %v1040_v35 }
 0x20b   :  { %7323 = vst [vmem:[#allocation26_spill] sm:$0xff] %v4696_v36  ;;  %v3758_v46 = vpop.eup %3757  ;;  %v3619_v43 = vmul.f32 -1.442695, %v4696_v36  ;;  %v1042_v54 = vadd.f32 %v3756_v22, %v1041_v40 }
 0x20c   :  { %v3760_v48 = vpop.eup %3759  ;;  %v840_v49 = vadd.f32 1.0, %v3758_v46 }
 0x20d   :  { %3761 = vpow2.f32 %v3619_v43  ;;  %v1054_v60 = vmul.f32 %v3760_v48, %v839_v24  ;;  %v1046_v6 = vsel %vm1045_vm8, %v3756_v22, %v1042_v54  ;;  %vm1059_vm10 = vweird.f32 %v3760_v48 }
 0x20e   :  { %3763 = vrcp.f32 %v840_v49  ;;  %v4699_v58 = vsel %vm1048_vm9, %v1050_v57, %v1046_v6  ;;  %vm1060_vm12 = vmor %vm1058_vm11, %vm1059_vm10  ;;  %v1079_v24 = vand.u32 2147483648, %v840_v49  ;;  %v1077_v35 = vand.u32 2147483647, %v840_v49 }
 0x20f   :  { %7324 = vst [vmem:[#allocation27_spill] sm:$0xff] %v4699_v58  ;;  %v1055_v59 = vsub.f32 1.0, %v1054_v60  ;;  %v1983_v12 = vsel %vm1946_vm5, %v4699_v58, 0.0  ;;  %vm1073_vm15 = vweird.f32 %v840_v49 }
 0x210   :  { %v682_v3 = vpop.f32.mrf.mxu2  ;;  %1984 = vadd.xlane.f32.xlu0 %v1983_v12  ;;  %vm1078_vm1 = vcmp.eq.f32.partialorder %v1077_v35, 8.507059e+37 }
 0x211   :  { %v4704_v2 = vadd.f32 %v4469_v19, %v682_v3  ;;  %v1056_v61 = vmul.f32 %v3760_v48, %v1055_v59 }
 0x213   :  { %7325 = vst [vmem:[#allocation28_spill] sm:$0xff] %v4704_v2  ;;  %v3762_v28 = vpop.eup %3761  ;;  %v3620_v9 = vmul.f32 -1.442695, %v4704_v2  ;;  %v1057_v10 = vadd.f32 %v3760_v48, %v1056_v61 }
 0x214   :  { %v3764_v18 = vpop.eup %3763  ;;  %v841_v42 = vadd.f32 1.0, %v3762_v28 }
 0x215   :  { %3765 = vpow2.f32 %v3620_v9  ;;  %v1061_v17 = vsel %vm1060_vm12, %v3760_v48, %v1057_v10  ;;  %v1069_v22 = vmul.f32 %v3764_v18, %v840_v49  ;;  %vm1074_vm14 = vweird.f32 %v3764_v18 }
 0x216   :  { %3767 = vrcp.f32 %v841_v42  ;;  %v4707_v21 = vsel %vm1063_vm13, %v1065_v11, %v1061_v17  ;;  %vm1075_vm0 = vmor %vm1073_vm15, %vm1074_vm14  ;;  %v1080_v48 = vor.u32 1.1754944e-38, %v1079_v24  ;;  %v1094_v1 = vand.u32 2147483648, %v841_v42 }
 0x217   :  { %7326 = vst [vmem:[#allocation29_spill] sm:$0xff] %v4707_v21  ;;  %v1986_v33 = vsel %vm1946_vm5, %v4707_v21, 0.0  ;;  %v1070_v32 = vsub.f32 1.0, %v1069_v22  ;;  %v1092_v61 = vand.u32 2147483647, %v841_v42  ;;  %vm1088_vm3 = vweird.f32 %v841_v42 }
 0x218   :  { %v685_v44 = vpop.f32.mrf.mxu2  ;;  %1987 = vadd.xlane.f32.xlu1 %v1986_v33  ;;  %v1095_v17 = vor.u32 1.1754944e-38, %v1094_v1 }
 0x219   :  { %v4712_v31 = vadd.f32 %v4469_v19, %v685_v44  ;;  %v1071_v34 = vmul.f32 %v3764_v18, %v1070_v32  ;;  %vm1093_vm6 = vcmp.eq.f32.partialorder %v1092_v61, 8.507059e+37 }
 0x21b   :  { %7327 = vst [vmem:[#allocation30_spill] sm:$0xff] %v4712_v31  ;;  %v3766_v39 = vpop.eup %3765  ;;  %v3621_v40 = vmul.f32 -1.442695, %v4712_v31  ;;  %v1072_v43 = vadd.f32 %v3764_v18, %v1071_v34 }
 0x21c   :  { %v3768_v52 = vpop.eup %3767  ;;  %v4715_v46 = vadd.f32 1.0, %v3766_v39 }
 0x21d   :  { %3769 = vpow2.f32 %v3621_v40  ;;  %v1084_v54 = vmul.f32 %v3768_v52, %v841_v42  ;;  %v1076_v57 = vsel %vm1075_vm0, %v3764_v18, %v1072_v43  ;;  %vm1089_vm2 = vweird.f32 %v3768_v52 }
 0x21e   :  { %3771 = vrcp.f32 %v4715_v46  ;;  %v4718_v60 = vsel %vm1078_vm1, %v1080_v48, %v1076_v57  ;;  %vm1090_vm4 = vmor %vm1088_vm3, %vm1089_vm2  ;;  %v1109_v48 = vand.u32 2147483648, %v4715_v46  ;;  %v1107_v57 = vand.u32 2147483647, %v4715_v46 }
 0x21f   :  { %7328 = vst [vmem:[#allocation31_spill] sm:$0xff] %v4718_v60  ;;  %v1085_v6 = vsub.f32 1.0, %v1084_v54  ;;  %v1989_v3 = vsel %vm1946_vm5, %v4718_v60, 0.0  ;;  %vm1103_vm8 = vweird.f32 %v4715_v46 }
 0x220   :  { %v688_v59 = vpop.f32.mrf.mxu2  ;;  %1990 = vadd.xlane.f32.xlu2 %v1989_v3  ;;  %v1110_v61 = vor.u32 1.1754944e-38, %v1109_v48  ;;  %vm1108_vm10 = vcmp.eq.f32.partialorder %v1107_v57, 8.507059e+37 }
 0x221   :  { %v4723_v12 = vadd.f32 %v4469_v19, %v688_v59  ;;  %v1086_v49 = vmul.f32 %v3768_v52, %v1085_v6 }
 0x223   :  { %7329 = vst [vmem:[#allocation32_spill] sm:$0xff] %v4723_v12  ;;  %v3770_v15 = vpop.eup %3769  ;;  %v3622_v28 = vmul.f32 -1.442695, %v4723_v12  ;;  %v1087_v9 = vadd.f32 %v3768_v52, %v1086_v49  ;;  %v4728_v11 = vpop.xlane.xlu0 %1948 }
 0x224   :  { %v3772_v10 = vpop.eup %3771  ;;  %v4726_v18 = vadd.f32 1.0, %v3770_v15  ;;  %v2052_v48 = vand.u32 2147483647, %v4728_v11  ;;  %vm2048_vm13 = vweird.f32 %v4728_v11 }
 0x225   :  { %3773 = vpow2.f32 %v3622_v28  ;;  %v1091_v22 = vsel %vm1090_vm4, %v3768_v52, %v1087_v9  ;;  %v1099_v44 = vmul.f32 %v3772_v10, %v4715_v46  ;;  %vm1104_vm7 = vweird.f32 %v3772_v10 }
 0x226   :  { %3775 = vrcp.f32 %v4726_v18  ;;  %v4732_v33 = vsel %vm1093_vm6, %v1095_v17, %v1091_v22  ;;  %vm1105_vm9 = vmor %vm1103_vm8, %vm1104_vm7  ;;  %v2054_v17 = vand.u32 2147483648, %v4728_v11  ;;  %vm1118_vm15 = vweird.f32 %v4726_v18 }
 0x227   :  { %3777 = vrcp.f32 %v4728_v11  ;;  %7330 = vst [vmem:[#allocation33_spill] sm:$0xff] %v4732_v33  ;;  %v1992_v24 = vsel %vm1946_vm5, %v4732_v33, 0.0  ;;  %v1100_v42 = vsub.f32 1.0, %v1099_v44  ;;  %vm2053_vm2 = vcmp.eq.f32.partialorder %v2052_v48, 8.507059e+37 }
 0x228   :  { %v691_v32 = vpop.f32.mrf.mxu2  ;;  %1993 = vadd.xlane.f32.xlu0 %v1992_v24  ;;  %v1124_v24 = vand.u32 2147483648, %v4726_v18 }
 0x229   :  { %v4738_v34 = vadd.f32 %v4469_v19, %v691_v32  ;;  %v1101_v40 = vmul.f32 %v3772_v10, %v1100_v42 }
 0x22b   :  { %7331 = vst [vmem:[#allocation34_spill] sm:$0xff] %v4738_v34  ;;  %v3774_v35 = vpop.eup %3773  ;;  %v3623_v39 = vmul.f32 -1.442695, %v4738_v34  ;;  %v1102_v59 = vadd.f32 %v3772_v10, %v1101_v40  ;;  %v4748_v49 = vpop.xlane.xlu0 %1951 }
 0x22c   :  { %v3776_v52 = vpop.eup %3775  ;;  %v4741_v43 = vadd.f32 1.0, %v3774_v35 }
 0x22d   :  { %v3778_v54 = vpop.eup %3777  ;;  %3779 = vpow2.f32 %v3623_v39  ;;  %v1114_v15 = vmul.f32 %v3776_v52, %v4726_v18  ;;  %v1106_v28 = vsel %vm1105_vm9, %v3772_v10, %v1102_v59  ;;  %vm1119_vm12 = vweird.f32 %v3776_v52 }
 0x22e   :  { %v2044_v6 = vmul.f32 %v3778_v54, %v4728_v11  ;;  %3781 = vrcp.f32 %v4741_v43  ;;  %v4752_v22 = vsel %vm1108_vm10, %v1110_v61, %v1106_v28  ;;  %vm2049_vm11 = vweird.f32 %v3778_v54  ;;  %vm1120_vm0 = vmor %vm1118_vm15, %vm1119_vm12 }
 0x22f   :  { %7332 = vst [vmem:[#allocation35_spill] sm:$0xff] %v4752_v22  ;;  %v1115_v44 = vsub.f32 1.0, %v1114_v15  ;;  %3783 = vrcp.f32 %v4748_v49  ;;  %v1995_v46 = vsel %vm1946_vm5, %v4752_v22, 0.0  ;;  %v2055_v59 = vor.u32 1.1754944e-38, %v2054_v17  ;;  %vm4769_vm14 = vmor %vm2048_vm13, %vm2049_vm11 }
 0x230   :  { %v2045_v3 = vsub.f32 1.0, %v2044_v6  ;;  %v694_v1 = vpop.f32.mrf.mxu2  ;;  %1996 = vadd.xlane.f32.xlu1 %v1995_v46  ;;  %v1122_v6 = vand.u32 2147483647, %v4726_v18  ;;  %vm1133_vm4 = vweird.f32 %v4741_v43  ;;  %vm2063_vm10 = vweird.f32 %v4748_v49 }
 0x231   :  { %v4761_v10 = vadd.f32 %v4469_v19, %v694_v1  ;;  %v1116_v35 = vmul.f32 %v3776_v52, %v1115_v44  ;;  %v1125_v1 = vor.u32 1.1754944e-38, %v1124_v24 }
 0x232   :  { %v2046_v9 = vmul.f32 %v3778_v54, %v2045_v3  ;;  %vm1123_vm1 = vcmp.eq.f32.partialorder %v1122_v6, 8.507059e+37  ;;  %v4800_v3 = vld [vmem:[%s7228_s6] ss:$0 sm:$0xff]  ;;  %s4114_s6 = smov 4  }
 0x233   :  { %v3780_v32 = vpop.eup %3779  ;;  %7333 = vst [vmem:[#allocation36_spill] sm:$0xff] %v4761_v10  ;;  %v4764_v57 = vpop.xlane.xlu1 %1954  ;;  %v1117_v19 = vadd.f32 %v3776_v52, %v1116_v35  ;;  %v3624_v61 = vmul.f32 -1.442695, %v4761_v10 }
 0x234   :  { %v4758_v42 = vadd.f32 1.0, %v3780_v32  ;;  %v2047_v39 = vadd.f32 %v3778_v54, %v2046_v9  ;;  %v3782_v40 = vpop.eup %3781 }
 0x235   :  { %v1129_v15 = vmul.f32 %v3782_v40, %v4741_v43  ;;  %v4780_v28 = vpop.eup %3783  ;;  %v1121_v17 = vsel %vm1120_vm0, %v3776_v52, %v1117_v19  ;;  %v1139_v52 = vand.u32 2147483648, %v4741_v43  ;;  %vm1134_vm3 = vweird.f32 %v3782_v40 }
 0x236   :  { %3785 = vrcp.f32 %v4758_v42  ;;  %v2051_v11 = vsel %vm4769_vm14, %v3778_v54, %v2047_v39  ;;  %v4782_v44 = vsel %vm1123_vm1, %v1125_v1, %v1121_v17  ;;  %v2059_v24 = vmul.f32 %v4780_v28, %v4748_v49  ;;  %vm1135_vm6 = vmor %vm1133_vm4, %vm1134_vm3 }
 0x237   :  { %3787 = vrcp.f32 %v4764_v57  ;;  %7336 = vst [vmem:[#allocation37_spill] sm:$0xff] %v4782_v44  ;;  %v2056_v18 = vsel %vm2053_vm2, %v2055_v59, %v2051_v11  ;;  %v1130_v32 = vsub.f32 1.0, %v1129_v15  ;;  %v1998_v46 = vsel %vm1946_vm5, %v4782_v44, 0.0 }
 0x238   :  { %v697_v9 = vpop.f32.mrf.mxu2  ;;  %3789 = vpow2.f32 %v3624_v61  ;;  %1999 = vadd.xlane.f32.xlu2 %v1998_v46  ;;  %v4789_v54 = vmul.f32 %v2056_v18, %v4494_v63  ;;  %v1137_v59 = vand.u32 2147483647, %v4741_v43  ;;  %v2060_v1 = vsub.f32 1.0, %v2059_v24 }
 0x239   :  { %v1131_v35 = vmul.f32 %v3782_v40, %v1130_v32  ;;  %v4803_v19 = vadd.f32 %v4800_v3, %v697_v9  ;;  %v1140_v15 = vor.u32 1.1754944e-38, %v1139_v52  ;;  %vm2064_vm8 = vweird.f32 %v4780_v28 }
 0x23a   :  { %v2619_v6 = vsel %vm1946_vm5, %v4789_v54, -inf  ;;  %vm1138_vm7 = vcmp.eq.f32.partialorder %v1137_v59, 8.507059e+37  ;;  %v2523_v43 = vsel %vm1946_vm5, %v4789_v54, inf  ;;  %v2061_v24 = vmul.f32 %v4780_v28, %v2060_v1  ;;  %vm4832_vm11 = vmor %vm2063_vm10, %vm2064_vm8 }
 0x23b   :  { %7337 = vst [vmem:[#allocation38_spill] sm:$0xff] %v4803_v19  ;;  %2620 = vmax.xlane.f32.xlu1 %v2619_v6  ;;  %v1132_v61 = vadd.f32 %v3782_v40, %v1131_v35  ;;  %v3625_v46 = vmul.f32 -1.442695, %v4803_v19  ;;  %v4810_v10 = vpop.xlane.xlu1 %1957  ;;  %vm1148_vm12 = vweird.f32 %v4758_v42  ;;  %vm2078_vm1 = vweird.f32 %v4764_v57 }
 0x23c   :  { %v3786_v39 = vpop.eup %3785  ;;  %3791 = vrcp.f32 %v4810_v10  ;;  %vm2093_vm10 = vweird.f32 %v4810_v10 }
 0x23d   :  { %v4792_v48 = vpop.eup %3787  ;;  %v1144_v17 = vmul.f32 %v3786_v39, %v4758_v42  ;;  %v1136_v32 = vsel %vm1135_vm6, %v3782_v40, %v1132_v61  ;;  %v2067_v40 = vand.u32 2147483647, %v4748_v49  ;;  %3793 = vpow2.f32 %v3625_v46 }
 0x23e   :  { %v2074_v11 = vmul.f32 %v4792_v48, %v4764_v57  ;;  %v3790_v18 = vpop.eup %3789  ;;  %v4812_v6 = vsel %vm1138_vm7, %v1140_v15, %v1136_v32  ;;  %v2069_v15 = vand.u32 2147483648, %v4748_v49  ;;  %vm1149_vm9 = vweird.f32 %v3786_v39 }
 0x23f   :  { %7338 = vst [vmem:[#allocation39_spill] sm:$0xff] %v4812_v6  ;;  %v2001_v35 = vsel %vm1946_vm5, %v4812_v6, 0.0  ;;  %v1145_v52 = vsub.f32 1.0, %v1144_v17  ;;  %v4820_v59 = vadd.f32 1.0, %v3790_v18  ;;  %v1152_v17 = vand.u32 2147483647, %v4758_v42  ;;  %vm1150_vm13 = vmor %vm1148_vm12, %vm1149_vm9 }
 0x240   :  { %v700_v9 = vpop.f32.mrf.mxu2  ;;  %2524 = vmin.xlane.f32.xlu2 %v2523_v43  ;;  %v2075_v61 = vsub.f32 1.0, %v2074_v11  ;;  %2002 = vadd.xlane.f32.xlu0 %v2001_v35  ;;  %v1154_v11 = vand.u32 2147483648, %v4758_v42  ;;  %v2062_v43 = vadd.f32 %v4780_v28, %v2061_v24  ;;  %vm2068_vm15 = vcmp.eq.f32.partialorder %v2067_v40, 8.507059e+37 }
 0x241   :  { %v4826_v32 = vadd.f32 %v4800_v3, %v700_v9  ;;  %v1146_v1 = vmul.f32 %v3786_v39, %v1145_v52  ;;  %3795 = vrcp.f32 %v4820_v59  ;;  %v2070_v52 = vor.u32 1.1754944e-38, %v2069_v15 }
 0x242   :  { %v2076_v9 = vmul.f32 %v4792_v48, %v2075_v61  ;;  %v1155_v49 = vor.u32 1.1754944e-38, %v1154_v11  ;;  %v2066_v24 = vsel %vm4832_vm11, %v4780_v28, %v2062_v43  ;;  %vm1153_vm14 = vcmp.eq.f32.partialorder %v1152_v17, 8.507059e+37  ;;  %v4845_v31 = vpop.eup %3791 }
 0x243   :  { %7339 = vst [vmem:[#allocation40_spill] sm:$0xff] %v4826_v32  ;;  %v1147_v46 = vadd.f32 %v3786_v39, %v1146_v1  ;;  %v3626_v19 = vmul.f32 -1.442695, %v4826_v32  ;;  %v4843_v34 = vpop.xlane.xlu2 %1960  ;;  %v2084_v61 = vand.u32 2147483648, %v4764_v57  ;;  %v2071_v42 = vsel %vm2068_vm15, %v2070_v52, %v2066_v24  ;;  %v3794_v15 = vpop.eup %3793 }
 0x244   :  { %vm2079_vm0 = vweird.f32 %v4792_v48  ;;  %v2082_v11 = vand.u32 2147483647, %v4764_v57  ;;  %v2077_v43 = vadd.f32 %v4792_v48, %v2076_v9  ;;  %v4861_v35 = vadd.f32 1.0, %v3794_v15 }
 0x245   :  { %v1151_v12 = vsel %vm1150_vm13, %v3786_v39, %v1147_v46  ;;  %3797 = vpow2.f32 %v3626_v19  ;;  %v4856_v39 = vmul.f32 %v2071_v42, %v4510_v20  ;;  %vm2080_vm2 = vmor %vm2078_vm1, %vm2079_vm0  ;;  %v2085_v17 = vor.u32 1.1754944e-38, %v2084_v61 }
 0x246   :  { %v4848_v1 = vsel %vm1153_vm14, %v1155_v49, %v1151_v12  ;;  %v2089_v12 = vmul.f32 %v4845_v31, %v4810_v10  ;;  %v2081_v52 = vsel %vm2080_vm2, %v4792_v48, %v2077_v43  ;;  %vm2083_vm3 = vcmp.eq.f32.partialorder %v2082_v11, 8.507059e+37 }
 0x247   :  { %7342 = vst [vmem:[#allocation41_spill] sm:$0xff] %v4848_v1  ;;  %v2004_v28 = vsel %vm1946_vm5, %v4848_v1, 0.0  ;;  %v3796_v40 = vpop.eup %3795  ;;  %v2622_v46 = vsel %vm1946_vm5, %v4856_v39, -inf  ;;  %v2526_v19 = vsel %vm1946_vm5, %v4856_v39, inf  ;;  %v2086_v49 = vsel %vm2083_vm3, %v2085_v17, %v2081_v52 }
 0x248   :  { %v703_v18 = vpop.f32.mrf.mxu3  ;;  %2005 = vadd.xlane.f32.xlu1 %v2004_v28  ;;  %2623 = vmax.xlane.f32.xlu2 %v2622_v46  ;;  %v1159_v24 = vmul.f32 %v3796_v40, %v4820_v59  ;;  %v2090_v61 = vsub.f32 1.0, %v2089_v12  ;;  %3799 = vrcp.f32 %v4843_v34  ;;  %v4874_v42 = vmul.f32 %v2086_v49, %v4533_v47 }
 0x249   :  { %2527 = vmin.xlane.f32.xlu0 %v2526_v19  ;;  %v4869_v57 = vadd.f32 %v4800_v3, %v703_v18  ;;  %3801 = vrcp.f32 %v4861_v35  ;;  %vm1163_vm4 = vweird.f32 %v4820_v59  ;;  %vm1164_vm6 = vweird.f32 %v3796_v40 }
 0x24a   :  { %v1160_v28 = vsub.f32 1.0, %v1159_v24  ;;  %v2529_v48 = vsel %vm1946_vm5, %v4874_v42, inf  ;;  %v2091_v43 = vmul.f32 %v4845_v31, %v2090_v61  ;;  %v1167_v17 = vand.u32 2147483647, %v4820_v59  ;;  %vm1165_vm8 = vmor %vm1163_vm4, %vm1164_vm6 }
 0x24b   :  { %7343 = vst [vmem:[#allocation42_spill] sm:$0xff] %v4869_v57  ;;  %v3798_v15 = vpop.eup %3797  ;;  %v4877_v46 = vpop.xlane.xlu2 %1963  ;;  %v3627_v18 = vmul.f32 -1.442695, %v4869_v57  ;;  %v1169_v19 = vand.u32 2147483648, %v4820_v59  ;;  %v2099_v52 = vand.u32 2147483648, %v4810_v10  ;;  %v2625_v24 = vsel %vm1946_vm5, %v4874_v42, -inf }
 0x24c   :  { %v1161_v11 = vmul.f32 %v3796_v40, %v1160_v28  ;;  %v4884_v12 = vadd.f32 1.0, %v3798_v15  ;;  %3803 = vrcp.f32 %v4877_v46  ;;  %vm2094_vm7 = vweird.f32 %v4845_v31 }
 0x24d   :  { %v2097_v61 = vand.u32 2147483647, %v4810_v10  ;;  %v1170_v57 = vor.u32 1.1754944e-38, %v1169_v19  ;;  %3805 = vpow2.f32 %v3627_v18  ;;  %vm1168_vm9 = vcmp.eq.f32.partialorder %v1167_v17, 8.507059e+37  ;;  %vm2095_vm11 = vmor %vm2093_vm10, %vm2094_vm7 }
 0x24e   :  { %v1162_v49 = vadd.f32 %v3796_v40, %v1161_v11  ;;  %3807 = vrcp.f32 %v4884_v12  ;;  %v2092_v36 = vadd.f32 %v4845_v31, %v2091_v43  ;;  %vm1178_vm13 = vweird.f32 %v4861_v35 }
 0x24f   :  { %vm2098_vm12 = vcmp.eq.f32.partialorder %v2097_v61, 8.507059e+37  ;;  %vm2108_vm15 = vweird.f32 %v4843_v34  ;;  %v2112_v0 = vand.u32 2147483647, %v4843_v34  ;;  %vm1193_vm3 = vweird.f32 %v4884_v12 }
 0x250   :  { %v706_v9 = vpop.f32.mrf.mxu3  ;;  %2530 = vmin.xlane.f32.xlu1 %v2529_v48  ;;  %v4892_v48 = vpop.eup %3799  ;;  %v1166_v11 = vsel %vm1165_vm8, %v3796_v40, %v1162_v49  ;;  %v2096_v40 = vsel %vm2095_vm11, %v4845_v31, %v2092_v36  ;;  %v1184_v36 = vand.u32 2147483648, %v4861_v35  ;;  %vm2123_vm11 = vweird.f32 %v4877_v46 }
 0x251   :  { %v4897_v15 = vadd.f32 %v4800_v3, %v706_v9  ;;  %2626 = vmax.xlane.f32.xlu0 %v2625_v24  ;;  %v3802_v32 = vpop.eup %3801  ;;  %v4903_v2 = vsel %vm1168_vm9, %v1170_v57, %v1166_v11  ;;  %v2100_v9 = vor.u32 1.1754944e-38, %v2099_v52  ;;  %v2104_v59 = vmul.f32 %v4892_v48, %v4843_v34 }
 0x252   :  { %7345 = vst [vmem:[#allocation44_spill] sm:$0xff] %v4903_v2  ;;  %v2007_v19 = vsel %vm1946_vm5, %v4903_v2, 0.0  ;;  %v1174_v10 = vmul.f32 %v3802_v32, %v4861_v35  ;;  %v4913_v57 = vpop.eup %3803  ;;  %vm1179_vm14 = vweird.f32 %v3802_v32  ;;  %v1185_v16 = vor.u32 1.1754944e-38, %v1184_v36 }
 0x253   :  { %7344 = vst [vmem:[#allocation43_spill] sm:$0xff] %v4897_v15  ;;  %v3628_v18 = vmul.f32 -1.442695, %v4897_v15  ;;  %2008 = vadd.xlane.f32.xlu2 %v2007_v19  ;;  %v2101_v17 = vsel %vm2098_vm12, %v2100_v9, %v2096_v40  ;;  %v3806_v43 = vpop.eup %3805  ;;  %v2105_v49 = vsub.f32 1.0, %v2104_v59  ;;  %v2119_v15 = vmul.f32 %v4913_v57, %v4877_v46  ;;  %v4928_v40 = vpop.xlane.xlu0 %1966  ;;  %vm1180_vm0 = vmor %vm1178_vm13, %vm1179_vm14 }
 0x254   :  { %v4916_v52 = vmul.f32 %v2101_v17, %v4556_v8  ;;  %v1175_v24 = vsub.f32 1.0, %v1174_v10  ;;  %v4918_v11 = vpop.eup %3807  ;;  %v1182_v59 = vand.u32 2147483647, %v4861_v35  ;;  %v2114_v19 = vand.u32 2147483648, %v4843_v34 }
 0x255   :  { %3809 = vpow2.f32 %v3628_v18  ;;  %v4930_v10 = vadd.f32 1.0, %v3806_v43  ;;  %v1189_v26 = vmul.f32 %v4918_v11, %v4884_v12  ;;  %v2106_v51 = vmul.f32 %v4892_v48, %v2105_v49 }
 0x256   :  { %v2628_v61 = vsel %vm1946_vm5, %v4916_v52, -inf  ;;  %v1176_v9 = vmul.f32 %v3802_v32, %v1175_v24  ;;  %v2532_v18 = vsel %vm1946_vm5, %v4916_v52, inf  ;;  %v2120_v24 = vsub.f32 1.0, %v2119_v15 }
 0x257   :  { %3811 = vrcp.f32 %v4928_v40  ;;  %vm1183_vm1 = vcmp.eq.f32.partialorder %v1182_v59, 8.507059e+37  ;;  %v2115_v53 = vor.u32 1.1754944e-38, %v2114_v19  ;;  %v1190_v7 = vsub.f32 1.0, %v1189_v26 }
 0x258   :  { %v709_v28 = vpop.f32.mrf.mxu3  ;;  %2629 = vmax.xlane.f32.xlu1 %v2628_v61  ;;  %v1177_v17 = vadd.f32 %v3802_v32, %v1176_v9  ;;  %vm2109_vm2 = vweird.f32 %v4892_v48  ;;  %3813 = vrcp.f32 %v4930_v10  ;;  %v2127_v35 = vand.u32 2147483647, %v4877_v46 }
 0x259   :  { %v4942_v43 = vadd.f32 %v4800_v3, %v709_v28  ;;  %vm1194_vm4 = vweird.f32 %v4918_v11  ;;  %v2121_v26 = vmul.f32 %v4913_v57, %v2120_v24  ;;  %v1199_v59 = vand.u32 2147483648, %v4884_v12  ;;  %vm4964_vm6 = vmor %vm2108_vm15, %vm2109_vm2 }
 0x25a   :  { %v1181_v61 = vsel %vm1180_vm0, %v3802_v32, %v1177_v17  ;;  %v1191_v32 = vmul.f32 %v4918_v11, %v1190_v7  ;;  %v2107_v19 = vadd.f32 %v4892_v48, %v2106_v51  ;;  %vm2124_vm7 = vweird.f32 %v4913_v57  ;;  %vm1195_vm8 = vmor %vm1193_vm3, %vm1194_vm4 }
 0x25b   :  { %2533 = vmin.xlane.f32.xlu2 %v2532_v18  ;;  %7346 = vst [vmem:[#allocation45_spill] sm:$0xff] %v4942_v43  ;;  %v3810_v9 = vpop.eup %3809  ;;  %v4945_v49 = vsel %vm1183_vm1, %v1185_v16, %v1181_v61  ;;  %v4952_v28 = vpop.xlane.xlu1 %1969  ;;  %v1197_v16 = vand.u32 2147483647, %v4884_v12  ;;  %v3629_v36 = vmul.f32 -1.442695, %v4942_v43  ;;  %v2129_v7 = vand.u32 2147483648, %v4877_v46  ;;  %vm2125_vm12 = vmor %vm2123_vm11, %vm2124_vm7 }
 0x25c   :  { %7347 = vst [vmem:[#allocation46_spill] sm:$0xff] %v4945_v49  ;;  %v2010_v15 = vsel %vm1946_vm5, %v4945_v49, 0.0  ;;  %v4970_v17 = vadd.f32 1.0, %v3810_v9  ;;  %v1192_v24 = vadd.f32 %v4918_v11, %v1191_v32  ;;  %3815 = vrcp.f32 %v4952_v28 }
 0x25d   :  { %2011 = vadd.xlane.f32.xlu0 %v2010_v15  ;;  %v4973_v15 = vpop.eup %3811  ;;  %v1200_v51 = vor.u32 1.1754944e-38, %v1199_v59  ;;  %v2111_v34 = vsel %vm4964_vm6, %v4892_v48, %v2107_v19  ;;  %vm2113_vm9 = vcmp.eq.f32.partialorder %v2112_v0, 8.507059e+37  ;;  %vm1198_vm10 = vcmp.eq.f32.partialorder %v1197_v16, 8.507059e+37 }
 0x25e   :  { %v1196_v9 = vsel %vm1195_vm8, %v4918_v11, %v1192_v24  ;;  %v2116_v32 = vsel %vm2113_vm9, %v2115_v53, %v2111_v34  ;;  %v3814_v45 = vpop.eup %3813  ;;  %3817 = vpow2.f32 %v3629_v36  ;;  %v2122_v59 = vadd.f32 %v4913_v57, %v2121_v26 }
 0x25f   :  { %v4985_v55 = vsel %vm1198_vm10, %v1200_v51, %v1196_v9  ;;  %v4988_v12 = vmul.f32 %v2116_v32, %v4579_v37  ;;  %3819 = vrcp.f32 %v4970_v17  ;;  %v2134_v0 = vmul.f32 %v4973_v15, %v4928_v40 }
 0x260   :  { %v712_v31 = vpop.f32.mrf.mxu3  ;;  %v2013_v48 = vsel %vm1946_vm5, %v4985_v55, 0.0  ;;  %v2130_v53 = vor.u32 1.1754944e-38, %v2129_v7  ;;  %v2126_v16 = vsel %vm2125_vm12, %v4913_v57, %v2122_v59  ;;  %vm2128_vm13 = vcmp.eq.f32.partialorder %v2127_v35, 8.507059e+37 }
 0x261   :  { %v4982_v43 = vadd.f32 %v4800_v3, %v712_v31  ;;  %2014 = vadd.xlane.f32.xlu1 %v2013_v48  ;;  %v2631_v11 = vsel %vm1946_vm5, %v4988_v12, -inf  ;;  %v2535_v31 = vsel %vm1946_vm5, %v4988_v12, inf  ;;  %v1204_v26 = vmul.f32 %v3814_v45, %v4930_v10 }
 0x262   :  { %v5006_v36 = vpop.eup %3815  ;;  %v2131_v19 = vsel %vm2128_vm13, %v2130_v53, %v2126_v16  ;;  %v2135_v18 = vsub.f32 1.0, %v2134_v0  ;;  %v1214_v57 = vand.u32 2147483648, %v4930_v10  ;;  %vm1208_vm14 = vweird.f32 %v4930_v10 }
 0x263   :  { %7350 = vst [vmem:[#allocation47_spill] sm:$0xff] %v4982_v43  ;;  %v3630_v46 = vmul.f32 -1.442695, %v4982_v43  ;;  %2632 = vmax.xlane.f32.xlu2 %v2631_v11  ;;  %v5009_v7 = vmul.f32 %v2131_v19, %v4601_v62  ;;  %v5011_v51 = vpop.xlane.xlu2 %1972  ;;  %v1205_v34 = vsub.f32 1.0, %v1204_v26  ;;  %v2149_v32 = vmul.f32 %v5006_v36, %v4952_v28 }
 0x264   :  { %v3818_v24 = vpop.eup %3817  ;;  %vm1209_vm15 = vweird.f32 %v3814_v45  ;;  %v1212_v0 = vand.u32 2147483647, %v4930_v10  ;;  %v2136_v48 = vmul.f32 %v4973_v15, %v2135_v18  ;;  %v2144_v26 = vand.u32 2147483648, %v4928_v40 }
 0x265   :  { %2536 = vmin.xlane.f32.xlu0 %v2535_v31  ;;  %v5013_v9 = vpop.eup %3819  ;;  %3821 = vpow2.f32 %v3630_v46  ;;  %v1206_v59 = vmul.f32 %v3814_v45, %v1205_v34  ;;  %v5021_v53 = vadd.f32 1.0, %v3818_v24  ;;  %v2538_v11 = vsel %vm1946_vm5, %v5009_v7, inf  ;;  %vm1210_vm0 = vmor %vm1208_vm14, %vm1209_vm15 }
 0x266   :  { %3823 = vrcp.f32 %v5011_v51  ;;  %v2634_v16 = vsel %vm1946_vm5, %v5009_v7, -inf  ;;  %v1219_v10 = vmul.f32 %v5013_v9, %v4970_v17  ;;  %v2150_v19 = vsub.f32 1.0, %v2149_v32 }
 0x267   :  { %v1207_v46 = vadd.f32 %v3814_v45, %v1206_v59  ;;  %v1215_v18 = vor.u32 1.1754944e-38, %v1214_v57  ;;  %vm2139_vm1 = vweird.f32 %v4973_v15  ;;  %vm1213_vm2 = vcmp.eq.f32.partialorder %v1212_v0, 8.507059e+37 }
 0x268   :  { %v715_v61 = vpop.f32.mrf.mxu3  ;;  %vm2138_vm3 = vweird.f32 %v4928_v40  ;;  %v2142_v34 = vand.u32 2147483647, %v4928_v40  ;;  %3825 = vrcp.f32 %v5021_v53  ;;  %v2137_v57 = vadd.f32 %v4973_v15, %v2136_v48 }
 0x269   :  { %v5027_v31 = vadd.f32 %v4800_v3, %v715_v61  ;;  %2539 = vmin.xlane.f32.xlu1 %v2538_v11  ;;  %v1211_v24 = vsel %vm1210_vm0, %v3814_v45, %v1207_v46  ;;  %v1220_v11 = vsub.f32 1.0, %v1219_v10  ;;  %vm5046_vm4 = vmor %vm2138_vm3, %vm2139_vm1  ;;  %v2145_v0 = vor.u32 1.1754944e-38, %v2144_v26 }
 0x26a   :  { %v5037_v59 = vsel %vm1213_vm2, %v1215_v18, %v1211_v24  ;;  %v2151_v40 = vmul.f32 %v5006_v36, %v2150_v19  ;;  %vm1223_vm6 = vweird.f32 %v4970_v17  ;;  %v1229_v46 = vand.u32 2147483648, %v4970_v17 }
 0x26b   :  { %7351 = vst [vmem:[#allocation48_spill] sm:$0xff] %v5027_v31  ;;  %v3822_v61 = vpop.eup %3821  ;;  %v3631_v43 = vmul.f32 -1.442695, %v5027_v31  ;;  %v2016_v32 = vsel %vm1946_vm5, %v5037_v59, 0.0  ;;  %v1221_v10 = vmul.f32 %v5013_v9, %v1220_v11  ;;  %vm1224_vm7 = vweird.f32 %v5013_v9  ;;  %v5067_v14 = vpop.xlane.xlu0 %1975 }
 0x26c   :  { %2017 = vadd.xlane.f32.xlu2 %v2016_v32  ;;  %v1227_v48 = vand.u32 2147483647, %v4970_v17  ;;  %v2141_v18 = vsel %vm5046_vm4, %v4973_v15, %v2137_v57  ;;  %v2157_v24 = vand.u32 2147483647, %v4952_v28  ;;  %v2159_v26 = vand.u32 2147483648, %v4952_v28  ;;  %vm1225_vm10 = vmor %vm1223_vm6, %vm1224_vm7 }
 0x26d   :  { %2635 = vmax.xlane.f32.xlu0 %v2634_v16  ;;  %v5044_v16 = vpop.eup %3823  ;;  %v5061_v19 = vadd.f32 1.0, %v3822_v61  ;;  %vm2143_vm8 = vcmp.eq.f32.partialorder %v2142_v34, 8.507059e+37  ;;  %3827 = vpow2.f32 %v3631_v43  ;;  %v1222_v11 = vadd.f32 %v5013_v9, %v1221_v10 }
 0x26e   :  { %v2164_v31 = vmul.f32 %v5044_v16, %v5011_v51  ;;  %v2146_v62 = vsel %vm2143_vm8, %v2145_v0, %v2141_v18  ;;  %vm2154_vm9 = vweird.f32 %v5006_v36  ;;  %v1230_v61 = vor.u32 1.1754944e-38, %v1229_v46  ;;  %v5079_v43 = vpop.eup %3825 }
 0x26f   :  { %v5077_v34 = vmul.f32 %v2146_v62, %v4625_v25  ;;  %vm2153_vm11 = vweird.f32 %v4952_v28  ;;  %v1226_v57 = vsel %vm1225_vm10, %v5013_v9, %v1222_v11  ;;  %vm1228_vm12 = vcmp.eq.f32.partialorder %v1227_v48, 8.507059e+37 }
 0x270   :  { %v718_v35 = vpop.f32.mrf.mxu3  ;;  %v2152_v45 = vadd.f32 %v5006_v36, %v2151_v40  ;;  %3829 = vrcp.f32 %v5061_v19  ;;  %v5085_v0 = vsel %vm1228_vm12, %v1230_v61, %v1226_v57  ;;  %vm2155_vm13 = vmor %vm2153_vm11, %vm2154_vm9  ;;  %v2165_v62 = vsub.f32 1.0, %v2164_v31 }
 0x271   :  { %v5070_v15 = vadd.f32 %v4800_v3, %v718_v35  ;;  %v2160_v35 = vor.u32 1.1754944e-38, %v2159_v26  ;;  %v2637_v17 = vsel %vm1946_vm5, %v5077_v34, -inf  ;;  %3831 = vrcp.f32 %v5067_v14 }
 0x272   :  { %v2019_v28 = vsel %vm1946_vm5, %v5085_v0, 0.0  ;;  %2638 = vmax.xlane.f32.xlu1 %v2637_v17  ;;  %v2541_v9 = vsel %vm1946_vm5, %v5077_v34, inf  ;;  %v2156_v46 = vsel %vm2155_vm13, %v5006_v36, %v2152_v45  ;;  %vm2158_vm14 = vcmp.eq.f32.partialorder %v2157_v24, 8.507059e+37 }
 0x273   :  { %7354 = vst [vmem:[#allocation49_spill] sm:$0xff] %v5070_v15  ;;  %v3632_v40 = vmul.f32 -1.442695, %v5070_v15  ;;  %v1234_v10 = vmul.f32 %v5079_v43, %v5021_v53  ;;  %v3828_v31 = vpop.eup %3827  ;;  %v2161_v48 = vsel %vm2158_vm14, %v2160_v35, %v2156_v46  ;;  %v2166_v18 = vmul.f32 %v5044_v16, %v2165_v62  ;;  %v5102_v11 = vpop.xlane.xlu1 %1978 }
 0x274   :  { %2542 = vmin.xlane.f32.xlu2 %v2541_v9  ;;  %v2174_v26 = vand.u32 2147483648, %v5011_v51  ;;  %v5105_v61 = vmul.f32 %v2161_v48, %v4644_v56  ;;  %v1244_v24 = vand.u32 2147483648, %v5021_v53  ;;  %vm1238_vm15 = vweird.f32 %v5021_v53 }
 0x275   :  { %2020 = vadd.xlane.f32.xlu0 %v2019_v28  ;;  %v1235_v57 = vsub.f32 1.0, %v1234_v10  ;;  %v5109_v28 = vadd.f32 1.0, %v3828_v31  ;;  %3833 = vpow2.f32 %v3632_v40  ;;  %vm1239_vm0 = vweird.f32 %v5079_v43 }
 0x276   :  { %v5107_v17 = vpop.eup %3829  ;;  %v1242_v9 = vand.u32 2147483647, %v5021_v53  ;;  %vm2168_vm1 = vweird.f32 %v5011_v51  ;;  %vm2169_vm2 = vweird.f32 %v5044_v16  ;;  %3835 = vrcp.f32 %v5102_v11  ;;  %vm1240_vm3 = vmor %vm1238_vm15, %vm1239_vm0 }
 0x277   :  { %v5115_v35 = vpop.eup %3831  ;;  %v1236_v62 = vmul.f32 %v5079_v43, %v1235_v57  ;;  %v2544_v40 = vsel %vm1946_vm5, %v5105_v61, inf  ;;  %v2640_v10 = vsel %vm1946_vm5, %v5105_v61, -inf  ;;  %v2167_v31 = vadd.f32 %v5044_v16, %v2166_v18  ;;  %vm2170_vm4 = vmor %vm2168_vm1, %vm2169_vm2 }
 0x278   :  { %v721_v32 = vpop.f32.mrf.mxu3  ;;  %v2175_v48 = vor.u32 1.1754944e-38, %v2174_v26  ;;  %3837 = vrcp.f32 %v5109_v28  ;;  %v1245_v53 = vor.u32 1.1754944e-38, %v1244_v24  ;;  %v1249_v15 = vmul.f32 %v5107_v17, %v5061_v19 }
 0x279   :  { %v5112_v36 = vadd.f32 %v4800_v3, %v721_v32  ;;  %v2172_v32 = vand.u32 2147483647, %v5011_v51  ;;  %v1237_v46 = vadd.f32 %v5079_v43, %v1236_v62  ;;  %v2179_v18 = vmul.f32 %v5115_v35, %v5067_v14 }
 0x27a   :  { %vm1243_vm6 = vcmp.eq.f32.partialorder %v1242_v9, 8.507059e+37  ;;  %v1250_v25 = vsub.f32 1.0, %v1249_v15  ;;  %vm1253_vm8 = vweird.f32 %v5061_v19  ;;  %vm1254_vm9 = vweird.f32 %v5107_v17 }
 0x27b   :  { %7355 = vst [vmem:[#allocation50_spill] sm:$0xff] %v5112_v36  ;;  %v5132_v57 = vpop.xlane.xlu2 %1981  ;;  %v3633_v26 = vmul.f32 -1.442695, %v5112_v36  ;;  %v1241_v62 = vsel %vm1240_vm3, %v5079_v43, %v1237_v46  ;;  %v3834_v24 = vpop.eup %3833  ;;  %vm2173_vm7 = vcmp.eq.f32.partialorder %v2172_v32, 8.507059e+37  ;;  %v2189_v43 = vand.u32 2147483648, %v5067_v14  ;;  %vm1255_vm12 = vmor %vm1253_vm8, %vm1254_vm9 }
 0x27c   :  { %2641 = vmax.xlane.f32.xlu2 %v2640_v10  ;;  %v2171_v10 = vsel %vm2170_vm4, %v5044_v16, %v2167_v31  ;;  %3839 = vrcp.f32 %v5132_v57  ;;  %v5153_v36 = vpop.eup %3835  ;;  %v1251_v15 = vmul.f32 %v5107_v17, %v1250_v25  ;;  %v1257_v9 = vand.u32 2147483647, %v5061_v19 }
 0x27d   :  { %2545 = vmin.xlane.f32.xlu0 %v2544_v40  ;;  %v5144_v40 = vsel %vm1243_vm6, %v1245_v53, %v1241_v62  ;;  %v2176_v8 = vsel %vm2173_vm7, %v2175_v48, %v2171_v10  ;;  %v5165_v46 = vadd.f32 1.0, %v3834_v24  ;;  %3841 = vpow2.f32 %v3633_v26 }
 0x27e   :  { %7356 = vst [vmem:[#allocation51_spill] sm:$0xff] %v5144_v40  ;;  %v2022_v56 = vsel %vm1946_vm5, %v5144_v40, 0.0  ;;  %v5158_v16 = vmul.f32 %v2176_v8, %v4661_v13  ;;  %v5163_v32 = vpop.eup %3837  ;;  %v1259_v31 = vand.u32 2147483648, %v5061_v19  ;;  %vm2183_vm10 = vweird.f32 %v5067_v14 }
 0x27f   :  { %2023 = vadd.xlane.f32.xlu1 %v2022_v56  ;;  %v2194_v8 = vmul.f32 %v5153_v36, %v5102_v11  ;;  %v1252_v53 = vadd.f32 %v5107_v17, %v1251_v15  ;;  %vm2184_vm11 = vweird.f32 %v5115_v35  ;;  %v2190_v26 = vor.u32 1.1754944e-38, %v2189_v43 }
 0x280   :  { %v724_v45 = vpop.f32.mrf.mxu3  ;;  %v2643_v48 = vsel %vm1946_vm5, %v5158_v16, -inf  ;;  %v1260_v62 = vor.u32 1.1754944e-38, %v1259_v31  ;;  %v2204_v10 = vand.u32 2147483648, %v5102_v11  ;;  %vm1258_vm13 = vcmp.eq.f32.partialorder %v1257_v9, 8.507059e+37  ;;  %vm2185_vm2 = vmor %vm2183_vm10, %vm2184_vm11 }
 0x281   :  { %v5151_v51 = vadd.f32 %v4800_v3, %v724_v45  ;;  %v2180_v45 = vsub.f32 1.0, %v2179_v18  ;;  %v2187_v18 = vand.u32 2147483647, %v5067_v14  ;;  %3843 = vrcp.f32 %v5165_v46 }
 0x282   :  { %v5181_v24 = vpop.eup %3839  ;;  %v1264_v19 = vmul.f32 %v5163_v32, %v5109_v28  ;;  %v2195_v31 = vsub.f32 1.0, %v2194_v8  ;;  %vm2198_vm14 = vweird.f32 %v5102_v11  ;;  %vm1268_vm15 = vweird.f32 %v5109_v28 }
 0x283   :  { %7357 = vst [vmem:[#allocation52_spill] sm:$0xff] %v5151_v51  ;;  %v3634_v25 = vmul.f32 -1.442695, %v5151_v51  ;;  %v1256_v51 = vsel %vm1255_vm12, %v5107_v17, %v1252_v53  ;;  %v2181_v13 = vmul.f32 %v5115_v35, %v2180_v45  ;;  %v2547_v17 = vsel %vm1946_vm5, %v5158_v16, inf  ;;  %v3842_v9 = vpop.eup %3841 }
 0x284   :  { %v5190_v43 = vsel %vm1258_vm13, %v1260_v62, %v1256_v51  ;;  %v2202_v45 = vand.u32 2147483647, %v5102_v11  ;;  %v2209_v51 = vmul.f32 %v5181_v24, %v5132_v57  ;;  %v2205_v53 = vor.u32 1.1754944e-38, %v2204_v10 }
 0x285   :  { %2644 = vmax.xlane.f32.xlu0 %v2643_v48  ;;  %7359 = vst [vmem:[#allocation54_spill] sm:$0xff] %v5190_v43  ;;  %v5192_v48 = vpop.xlane.xlu0 %1984  ;;  %3845 = vpow2.f32 %v3634_v25  ;;  %v1274_v25 = vand.u32 2147483648, %v5109_v28  ;;  %vm1269_vm0 = vweird.f32 %v5163_v32  ;;  %v1272_v37 = vand.u32 2147483647, %v5109_v28 }
 0x286   :  { %3847 = vrcp.f32 %v5192_v48  ;;  %vm2199_vm1 = vweird.f32 %v5153_v36  ;;  %v5215_v10 = vadd.f32 1.0, %v3842_v9  ;;  %vm1270_vm3 = vmor %vm1268_vm15, %vm1269_vm0  ;;  %vm2188_vm4 = vcmp.eq.f32.partialorder %v2187_v18, 8.507059e+37 }
 0x287   :  { %2548 = vmin.xlane.f32.xlu1 %v2547_v17  ;;  %v2196_v17 = vmul.f32 %v5153_v36, %v2195_v31  ;;  %v2219_v29 = vand.u32 2147483648, %v5132_v57  ;;  %vm1273_vm6 = vcmp.eq.f32.partialorder %v1272_v37, 8.507059e+37  ;;  %vm2213_vm7 = vweird.f32 %v5132_v57  ;;  %vm5246_vm8 = vmor %vm2198_vm14, %vm2199_vm1 }
 0x288   :  { %v727_v56 = vpop.f32.mrf.mxu3  ;;  %vm2203_vm9 = vcmp.eq.f32.partialorder %v2202_v45, 8.507059e+37  ;;  %vm1283_vm10 = vweird.f32 %v5165_v46  ;;  %v1289_v37 = vand.u32 2147483648, %v5165_v46  ;;  %vm2214_vm12 = vweird.f32 %v5181_v24 }
 0x289   :  { %v5186_v15 = vadd.f32 %v4800_v3, %v727_v56  ;;  %v2025_v3 = vsel %vm1946_vm5, %v5190_v43, 0.0  ;;  %v1265_v56 = vsub.f32 1.0, %v1264_v19  ;;  %v2182_v19 = vadd.f32 %v5115_v35, %v2181_v13  ;;  %vm5301_vm14 = vmor %vm2213_vm7, %vm2214_vm12 }
 0x28a   :  { %2026 = vadd.xlane.f32.xlu2 %v2025_v3  ;;  %v5218_v3 = vpop.eup %3843  ;;  %v1275_v13 = vor.u32 1.1754944e-38, %v1274_v25  ;;  %vm2228_vm15 = vweird.f32 %v5192_v48 }
 0x28b   :  { %7358 = vst [vmem:[#allocation53_spill] sm:$0xff] %v5186_v15  ;;  %v3635_v8 = vmul.f32 -1.442695, %v5186_v15  ;;  %v5207_v62 = vpop.xlane.xlu1 %1987  ;;  %v1266_v43 = vmul.f32 %v5163_v32, %v1265_v56  ;;  %v2210_v56 = vsub.f32 1.0, %v2209_v51  ;;  %v3846_v31 = vpop.eup %3845  ;;  %v2186_v9 = vsel %vm2185_vm2, %v5115_v35, %v2182_v19 }
 0x28c   :  { %3849 = vrcp.f32 %v5207_v62  ;;  %v2191_v51 = vsel %vm2188_vm4, %v2190_v26, %v2186_v9  ;;  %v5232_v15 = vpop.eup %3847  ;;  %v2197_v35 = vadd.f32 %v5153_v36, %v2196_v17  ;;  %v1279_v26 = vmul.f32 %v5218_v3, %v5165_v46 }
 0x28d   :  { %v1267_v40 = vadd.f32 %v5163_v32, %v1266_v43  ;;  %3851 = vpow2.f32 %v3635_v8  ;;  %v5239_v28 = vmul.f32 %v2191_v51, %v4671_v41  ;;  %vm1284_vm11 = vweird.f32 %v5218_v3 }
 0x28e   :  { %3853 = vrcp.f32 %v5215_v10  ;;  %v2201_v25 = vsel %vm5246_vm8, %v5153_v36, %v2197_v35  ;;  %v1280_v9 = vsub.f32 1.0, %v1279_v26  ;;  %v1287_v35 = vand.u32 2147483647, %v5165_v46  ;;  %vm1285_vm13 = vmor %vm1283_vm10, %vm1284_vm11 }
 0x28f   :  { %v1271_v14 = vsel %vm1270_vm3, %v5163_v32, %v1267_v40  ;;  %v2211_v40 = vmul.f32 %v5181_v24, %v2210_v56  ;;  %v5251_v32 = vadd.f32 1.0, %v3846_v31  ;;  %v2646_v8 = vsel %vm1946_vm5, %v5239_v28, -inf }
 0x290   :  { %v5236_v43 = vsel %vm1273_vm6, %v1275_v13, %v1271_v14  ;;  %v2550_v11 = vsel %vm1946_vm5, %v5239_v28, inf  ;;  %v2224_v56 = vmul.f32 %v5232_v15, %v5192_v48  ;;  %v2234_v31 = vand.u32 2147483648, %v5192_v48  ;;  %2647 = vmax.xlane.f32.xlu1 %v2646_v8 }
 0x291   :  { %7360 = vst [vmem:[#allocation55_spill] sm:$0xff] %v5236_v43  ;;  %v2028_v18 = vsel %vm1946_vm5, %v5236_v43, 0.0  ;;  %v2206_v13 = vsel %vm2203_vm9, %v2205_v53, %v2201_v25  ;;  %v1281_v45 = vmul.f32 %v5218_v3, %v1280_v9  ;;  %v2212_v41 = vadd.f32 %v5181_v24, %v2211_v40 }
 0x292   :  { %2029 = vadd.xlane.f32.xlu0 %v2028_v18  ;;  %v5266_v19 = vpop.eup %3849  ;;  %2551 = vmin.xlane.f32.xlu2 %v2550_v11  ;;  %v5274_v36 = vmul.f32 %v2206_v13, %v4681_v4  ;;  %v2220_v18 = vor.u32 1.1754944e-38, %v2219_v29  ;;  %v2225_v8 = vsub.f32 1.0, %v2224_v56  ;;  %v5287_v11 = vor.u32 1.1754944e-38, %v2234_v31 }
 0x293   :  { %v5264_v17 = vpop.xlane.xlu2 %1990  ;;  %v3852_v14 = vpop.eup %3851  ;;  %v2239_v51 = vmul.f32 %v5266_v19, %v5207_v62  ;;  %v1282_v13 = vadd.f32 %v5218_v3, %v1281_v45  ;;  %v1290_v29 = vor.u32 1.1754944e-38, %v1289_v37  ;;  %vm1288_vm0 = vcmp.eq.f32.partialorder %v1287_v35, 8.507059e+37 }
 0x294   :  { %3855 = vrcp.f32 %v5264_v17  ;;  %v5282_v53 = vpop.eup %3853  ;;  %v5289_v25 = vadd.f32 1.0, %v3852_v14  ;;  %v2553_v4 = vsel %vm1946_vm5, %v5274_v36, inf  ;;  %v2649_v14 = vsel %vm1946_vm5, %v5274_v36, -inf }
 0x295   :  { %3857 = vrcp.f32 %v5251_v32  ;;  %v2240_v9 = vsub.f32 1.0, %v2239_v51  ;;  %v1286_v31 = vsel %vm1285_vm13, %v5218_v3, %v1282_v13  ;;  %v1294_v46 = vmul.f32 %v5282_v53, %v5215_v10 }
 0x296   :  { %v5311_v51 = vsel %vm1288_vm0, %v1290_v29, %v1286_v31  ;;  %v2216_v40 = vsel %vm5301_vm14, %v5181_v24, %v2212_v41  ;;  %v7366_v45 = vand.u32 2147483647, %v5132_v57  ;;  %v1302_v37 = vand.u32 2147483647, %v5215_v10 }
 0x297   :  { %7365 = vst [vmem:[#allocation56_spill] sm:$0xff] %v5311_v51  ;;  %v2031_v13 = vsel %vm1946_vm5, %v5311_v51, 0.0  ;;  %v1295_v29 = vsub.f32 1.0, %v1294_v46  ;;  %v1304_v31 = vand.u32 2147483648, %v5215_v10  ;;  %v2226_v41 = vmul.f32 %v5232_v15, %v2225_v8 }
 0x298   :  { %vm2218_vm1 = vcmp.eq.f32.partialorder %v7366_v45, 8.507059e+37  ;;  %vm2229_vm2 = vweird.f32 %v5232_v15  ;;  %3859 = vrcp.f32 %v5289_v25  ;;  %2032 = vadd.xlane.f32.xlu1 %v2031_v13  ;;  %vm1298_vm3 = vweird.f32 %v5215_v10 }
 0x299   :  { %v1296_v24 = vmul.f32 %v5282_v53, %v1295_v29  ;;  %vm1299_vm4 = vweird.f32 %v5282_v53  ;;  %v2247_v8 = vand.u32 2147483647, %v5207_v62  ;;  %v2249_v56 = vand.u32 2147483648, %v5207_v62  ;;  %vm5366_vm10 = vmor %vm2228_vm15, %vm2229_vm2 }
 0x29a   :  { %2554 = vmin.xlane.f32.xlu0 %v2553_v4  ;;  %v5321_v35 = vpop.eup %3855  ;;  %2650 = vmax.xlane.f32.xlu2 %v2649_v14  ;;  %v2221_v4 = vsel %vm2218_vm1, %v2220_v18, %v2216_v40  ;;  %v2241_v18 = vmul.f32 %v5266_v19, %v2240_v9  ;;  %vm5344_vm6 = vcmp.eq.f32.partialorder %v1302_v37, 8.507059e+37  ;;  %v1305_v10 = vor.u32 1.1754944e-38, %v1304_v31  ;;  %vm1300_vm7 = vmor %vm1298_vm3, %vm1299_vm4 }
 0x29b   :  { %v5319_v3 = vpop.xlane.xlu0 %1993  ;;  %v5326_v26 = vpop.eup %3857  ;;  %v5332_v57 = vmul.f32 %v2221_v4, %v4691_v27  ;;  %v2254_v14 = vmul.f32 %v5321_v35, %v5264_v17  ;;  %v1297_v46 = vadd.f32 %v5282_v53, %v1296_v24  ;;  %vm1313_vm8 = vweird.f32 %v5251_v32 }
 0x29c   :  { %3861 = vrcp.f32 %v5319_v3  ;;  %v1309_v45 = vmul.f32 %v5326_v26, %v5251_v32  ;;  %vm1314_vm9 = vweird.f32 %v5326_v26  ;;  %v1319_v13 = vand.u32 2147483648, %v5251_v32 }
 0x29d   :  { %v2652_v9 = vsel %vm1946_vm5, %v5332_v57, -inf  ;;  %v1301_v37 = vsel %vm1300_vm7, %v5282_v53, %v1297_v46  ;;  %v1317_v31 = vand.u32 2147483647, %v5251_v32  ;;  %v2227_v24 = vadd.f32 %v5232_v15, %v2226_v41  ;;  %vm5394_vm13 = vmor %vm1313_vm8, %vm1314_vm9 }
 0x29e   :  { %v1310_v29 = vsub.f32 1.0, %v1309_v45  ;;  %v5360_v27 = vpop.eup %3859  ;;  %v2255_v43 = vsub.f32 1.0, %v2254_v14  ;;  %v2556_v53 = vsel %vm1946_vm5, %v5332_v57, inf  ;;  %v5374_v46 = vsel %vm5344_vm6, %v1305_v10, %v1301_v37 }
 0x29f   :  { %7371 = vst [vmem:[#allocation57_spill] sm:$0xff] %v5374_v46  ;;  %v7372_v41 = vand.u32 2147483647, %v5192_v48  ;;  %v2034_v20 = vsel %vm1946_vm5, %v5374_v46, 0.0  ;;  %v2231_v14 = vsel %vm5366_vm10, %v5232_v15, %v2227_v24  ;;  %vm2244_vm12 = vweird.f32 %v5266_v19 }
 0x2a0   :  { %v1311_v50 = vmul.f32 %v5326_v26, %v1310_v29  ;;  %2557 = vmin.xlane.f32.xlu1 %v2556_v53  ;;  %v1320_v10 = vor.u32 1.1754944e-38, %v1319_v13  ;;  %vm2243_vm14 = vweird.f32 %v5207_v62  ;;  %vm1318_vm15 = vcmp.eq.f32.partialorder %v1317_v31, 8.507059e+37 }
 0x2a1   :  { %vm2233_vm11 = vcmp.eq.f32.partialorder %v7372_v41, 8.507059e+37  ;;  %v2262_v37 = vand.u32 2147483647, %v5264_v17  ;;  %v2242_v32 = vadd.f32 %v5266_v19, %v2241_v18  ;;  %v1324_v13 = vmul.f32 %v5360_v27, %v5289_v25  ;;  %vm2245_vm0 = vmor %vm2243_vm14, %vm2244_vm12 }
 0x2a2   :  { %2653 = vmax.xlane.f32.xlu0 %v2652_v9  ;;  %v5378_v45 = vpop.eup %3861  ;;  %2035 = vadd.xlane.f32.xlu2 %v2034_v20  ;;  %v2236_v15 = vsel %vm2233_vm11, %v5287_v11, %v2231_v14  ;;  %v2250_v9 = vor.u32 1.1754944e-38, %v2249_v56  ;;  %v1312_v20 = vadd.f32 %v5326_v26, %v1311_v50  ;;  %v2256_v11 = vmul.f32 %v5321_v35, %v2255_v43 }
 0x2a3   :  { %v5355_v4 = vpop.xlane.xlu1 %1996  ;;  %v2269_v48 = vmul.f32 %v5378_v45, %v5319_v3  ;;  %v5405_v29 = vmul.f32 %v2236_v15, %v4699_v58  ;;  %v2264_v62 = vand.u32 2147483648, %v5264_v17  ;;  %v2246_v24 = vsel %vm2245_vm0, %v5266_v19, %v2242_v32 }
 0x2a4   :  { %3863 = vrcp.f32 %v5355_v4  ;;  %v1316_v50 = vsel %vm5394_vm13, %v5326_v26, %v1312_v20  ;;  %vm2248_vm1 = vcmp.eq.f32.partialorder %v2247_v8, 8.507059e+37  ;;  %v1325_v18 = vsub.f32 1.0, %v1324_v13 }
 0x2a5   :  { %v2270_v56 = vsub.f32 1.0, %v2269_v48  ;;  %v5417_v31 = vsel %vm1318_vm15, %v1320_v10, %v1316_v50  ;;  %v2251_v14 = vsel %vm2248_vm1, %v2250_v9, %v2246_v24  ;;  %vm1328_vm2 = vweird.f32 %v5289_v25 }
 0x2a6   :  { %7375 = vst [vmem:[#allocation58_spill] sm:$0xff] %v5417_v31  ;;  %v2037_v41 = vsel %vm1946_vm5, %v5417_v31, 0.0  ;;  %vm1329_vm3 = vweird.f32 %v5360_v27  ;;  %v2655_v43 = vsel %vm1946_vm5, %v5405_v29, -inf  ;;  %v2559_v26 = vsel %vm1946_vm5, %v5405_v29, inf }
 0x2a7   :  { %v1326_v8 = vmul.f32 %v5360_v27, %v1325_v18  ;;  %v2271_v48 = vmul.f32 %v5378_v45, %v2270_v56  ;;  %vm5434_vm4 = vmor %vm1328_vm2, %vm1329_vm3  ;;  %v1332_v10 = vand.u32 2147483647, %v5289_v25  ;;  %v1334_v15 = vand.u32 2147483648, %v5289_v25 }
 0x2a8   :  { %vm2259_vm6 = vweird.f32 %v5321_v35  ;;  %v2279_v9 = vand.u32 2147483648, %v5319_v3  ;;  %2656 = vmax.xlane.f32.xlu1 %v2655_v43  ;;  %v5444_v20 = vmul.f32 %v2251_v14, %v4707_v21  ;;  %vm2274_vm7 = vweird.f32 %v5378_v45 }
 0x2a9   :  { %v1327_v32 = vadd.f32 %v5360_v27, %v1326_v8  ;;  %v2277_v56 = vand.u32 2147483647, %v5319_v3  ;;  %vm1333_vm8 = vcmp.eq.f32.partialorder %v1332_v10, 8.507059e+37  ;;  %v1335_v25 = vor.u32 1.1754944e-38, %v1334_v15 }
 0x2aa   :  { %v5420_v53 = vpop.eup %3863  ;;  %2038 = vadd.xlane.f32.xlu0 %v2037_v41  ;;  %2560 = vmin.xlane.f32.xlu2 %v2559_v26  ;;  %vm2258_vm9 = vweird.f32 %v5264_v17  ;;  %v2257_v18 = vadd.f32 %v5321_v35, %v2256_v11  ;;  %v2265_v26 = vor.u32 1.1754944e-38, %v2264_v62  ;;  %vm2273_vm11 = vweird.f32 %v5319_v3 }
 0x2ab   :  { %v5399_v51 = vpop.xlane.xlu2 %1999  ;;  %v2284_v19 = vmul.f32 %v5420_v53, %v5355_v4  ;;  %v1331_v24 = vsel %vm5434_vm4, %v5360_v27, %v1327_v32  ;;  %vm5460_vm10 = vmor %vm2258_vm9, %vm2259_vm6  ;;  %v2280_v27 = vor.u32 1.1754944e-38, %v2279_v9  ;;  %v2562_v11 = vsel %vm1946_vm5, %v5444_v20, inf }
 0x2ac   :  { %3865 = vrcp.f32 %v5399_v51  ;;  %v5465_v17 = vsel %vm1333_vm8, %v1335_v25, %v1331_v24  ;;  %vm2275_vm12 = vmor %vm2273_vm11, %vm2274_vm7  ;;  %v2261_v8 = vsel %vm5460_vm10, %v5321_v35, %v2257_v18  ;;  %vm2263_vm13 = vcmp.eq.f32.partialorder %v2262_v37, 8.507059e+37 }
 0x2ad   :  { %v2285_v50 = vsub.f32 1.0, %v2284_v19  ;;  %7380 = vst [vmem:[#allocation59_spill] sm:$0xff] %v5465_v17  ;;  %v2272_v19 = vadd.f32 %v5378_v45, %v2271_v48  ;;  %v2040_v3 = vsel %vm1946_vm5, %v5465_v17, 0.0  ;;  %vm2278_vm14 = vcmp.eq.f32.partialorder %v2277_v56, 8.507059e+37 }
 0x2ae   :  { %v2621_v13 = vpop.xlane.xlu1 %2620  ;;  %v2266_v15 = vsel %vm2263_vm13, %v2265_v26, %v2261_v8  ;;  %v2294_v35 = vand.u32 2147483648, %v5355_v4  ;;  %v2658_v37 = vsel %vm1946_vm5, %v5444_v20, -inf  ;;  %vm2289_vm15 = vweird.f32 %v5420_v53 }
 0x2af   :  { %v2276_v62 = vsel %vm2275_vm12, %v5378_v45, %v2272_v19  ;;  %v2286_v48 = vmul.f32 %v5420_v53, %v2285_v50  ;;  %v2292_v45 = vand.u32 2147483647, %v5355_v4  ;;  %v5492_v25 = vmul.f32 %v2266_v15, %v4718_v60 }
 0x2b0   :  { %v2281_v9 = vsel %vm2278_vm14, %v2280_v27, %v2276_v62  ;;  %2041 = vadd.xlane.f32.xlu1 %v2040_v3  ;;  %vm2288_vm0 = vweird.f32 %v5355_v4  ;;  %v2295_v43 = vor.u32 1.1754944e-38, %v2294_v35  ;;  %vm2303_vm4 = vweird.f32 %v5399_v51 }
 0x2b1   :  { %7381 = vst [vmem:[#allocation60_spill] sm:$0xff] %v5492_v25  ;;  %v5495_v50 = vmul.f32 %v2281_v9, %v4732_v33  ;;  %v2287_v24 = vadd.f32 %v5420_v53, %v2286_v48  ;;  %vm2290_vm1 = vmor %vm2288_vm0, %vm2289_vm15  ;;  %vm2293_vm2 = vcmp.eq.f32.partialorder %v2292_v45, 8.507059e+37  ;;  %v2661_v3 = vsel %vm1946_vm5, %v5492_v25, -inf }
 0x2b2   :  { %v5475_v40 = vpop.eup %3865  ;;  %2563 = vmin.xlane.f32.xlu0 %v2562_v11  ;;  %2659 = vmax.xlane.f32.xlu2 %v2658_v37  ;;  %v2565_v15 = vsel %vm1946_vm5, %v5492_v25, inf }
 0x2b3   :  { %v5454_v41 = vpop.xlane.xlu2 %2524  ;;  %v5456_v14 = vpop.xlane.xlu0 %2002  ;;  %v2299_v10 = vmul.f32 %v5475_v40, %v5399_v51  ;;  %7382 = vst [vmem:[#allocation61_spill] sm:$0xff] %v5495_v50  ;;  %v2291_v27 = vsel %vm2290_vm1, %v5420_v53, %v2287_v24  ;;  %v2568_v62 = vsel %vm1946_vm5, %v5495_v50, inf  ;;  %vm2304_vm3 = vweird.f32 %v5475_v40 }
 0x2b4   :  { %3867 = vrcp.f32 %v5456_v14  ;;  %v5501_v26 = vsub.f32 %v2621_v13, %v5454_v41  ;;  %v2296_v48 = vsel %vm2293_vm2, %v2295_v43, %v2291_v27  ;;  %v2309_v13 = vand.u32 2147483648, %v5399_v51  ;;  %vm2305_vm6 = vmor %vm2303_vm4, %vm2304_vm3 }
 0x2b5   :  { %v2300_v56 = vsub.f32 1.0, %v2299_v10  ;;  %v2307_v53 = vand.u32 2147483647, %v5399_v51  ;;  %v5518_v9 = vmul.f32 %v2296_v48, %v4752_v22  ;;  %v2322_v24 = vand.u32 2147483647, %v5456_v14 }
 0x2b6   :  { %vm2318_vm9 = vweird.f32 %v5456_v14  ;;  %vm2784_vm1 = vweird.f32 %v5501_v26 }
 0x2b7   :  { %v2301_v4 = vmul.f32 %v5475_v40, %v2300_v56  ;;  %v2310_v56 = vor.u32 1.1754944e-38, %v2309_v13  ;;  %v2571_v27 = vsel %vm1946_vm5, %v5518_v9, inf  ;;  %vm2308_vm7 = vcmp.eq.f32.partialorder %v2307_v53, 8.507059e+37 }
 0x2b8   :  { %2566 = vmin.xlane.f32.xlu1 %v2565_v15  ;;  %v2667_v13 = vsel %vm1946_vm5, %v5518_v9, -inf  ;;  %v2664_v53 = vsel %vm1946_vm5, %v5495_v50, -inf  ;;  %vm2323_vm12 = vcmp.eq.f32.partialorder %v2322_v24, 8.507059e+37 }
 0x2b9   :  { %v2302_v45 = vadd.f32 %v5475_v40, %v2301_v4 }
 0x2ba   :  { %v3868_v18 = vpop.eup %3867  ;;  %2662 = vmax.xlane.f32.xlu0 %v2661_v3  ;;  %2569 = vmin.xlane.f32.xlu2 %v2568_v62 }
 0x2bb   :  { %v5489_v32 = vpop.xlane.xlu1 %2005  ;;  %v2314_v19 = vmul.f32 %v3868_v18, %v5456_v14  ;;  %v2624_v11 = vpop.xlane.xlu2 %2623  ;;  %v2306_v3 = vsel %vm2305_vm6, %v5475_v40, %v2302_v45  ;;  %vm2319_vm8 = vweird.f32 %v3868_v18 }
 0x2bc   :  { %3869 = vrcp.f32 %v5489_v32  ;;  %v5505_v8 = vpop.xlane.xlu0 %2527  ;;  %v2311_v48 = vsel %vm2308_vm7, %v2310_v56, %v2306_v3  ;;  %vm2320_vm10 = vmor %vm2318_vm9, %vm2319_vm8  ;;  %vm2333_vm13 = vweird.f32 %v5489_v32  ;;  %v2337_v56 = vand.u32 2147483647, %v5489_v32 }
 0x2bd   :  { %v2315_v10 = vsub.f32 1.0, %v2314_v19  ;;  %3871 = vrcp.f32 %v5501_v26  ;;  %v2324_v19 = vand.u32 2147483648, %v5456_v14  ;;  %v5539_v45 = vmul.f32 %v2311_v48, %v4782_v44 }
 0x2be   :  { %vm2338_vm15 = vcmp.eq.f32.partialorder %v2337_v56, 8.507059e+37 }
 0x2bf   :  { %v2316_v35 = vmul.f32 %v3868_v18, %v2315_v10  ;;  %v2325_v40 = vor.u32 1.1754944e-38, %v2324_v19  ;;  %7383 = vst [vmem:[#allocation62_spill] sm:$0xff] %v5539_v45 }
 0x2c0   :  { %2665 = vmax.xlane.f32.xlu1 %v2664_v53 }
 0x2c1   :  { %v2317_v4 = vadd.f32 %v3868_v18, %v2316_v35  ;;  %v2339_v35 = vand.u32 2147483648, %v5489_v32 }
 0x2c2   :  { %v3870_v37 = vpop.eup %3869  ;;  %2572 = vmin.xlane.f32.xlu0 %v2571_v27  ;;  %2668 = vmax.xlane.f32.xlu2 %v2667_v13 }
 0x2c3   :  { %v2329_v43 = vmul.f32 %v3870_v37, %v5489_v32  ;;  %v5529_v62 = vpop.xlane.xlu1 %2530  ;;  %v3872_v33 = vpop.eup %3871  ;;  %vm2334_vm11 = vweird.f32 %v3870_v37  ;;  %v2321_v14 = vsel %vm2320_vm10, %v3868_v18, %v2317_v4  ;;  %v2340_v24 = vor.u32 1.1754944e-38, %v2339_v35 }
 0x2c4   :  { %v2627_v22 = vpop.xlane.xlu0 %2626  ;;  %v2780_v19 = vmul.f32 %v3872_v33, %v5501_v26  ;;  %vm2335_vm14 = vmor %vm2333_vm13, %vm2334_vm11  ;;  %v5554_v4 = vsub.f32 %v2624_v11, %v5505_v8  ;;  %v2574_v32 = vsel %vm1946_vm5, %v5539_v45, inf  ;;  %vm2785_vm0 = vweird.f32 %v3872_v33 }
 0x2c5   :  { %v2330_v51 = vsub.f32 1.0, %v2329_v43  ;;  %v2326_v43 = vsel %vm2323_vm12, %v2325_v40, %v2321_v14  ;;  %v5551_v48 = vsub.f32 %v2627_v22, %v5529_v62  ;;  %vm2786_vm2 = vmor %vm2784_vm1, %vm2785_vm0 }
 0x2c6   :  { %v5534_v15 = vpop.xlane.xlu2 %2008  ;;  %v5546_v3 = vmul.f32 %v2326_v43, %v4812_v6  ;;  %v2781_v40 = vsub.f32 1.0, %v2780_v19  ;;  %vm2799_vm8 = vweird.f32 %v5554_v4 }
 0x2c7   :  { %v2331_v10 = vmul.f32 %v3870_v37, %v2330_v51  ;;  %v2670_v51 = vsel %vm1946_vm5, %v5539_v45, -inf  ;;  %3873 = vrcp.f32 %v5551_v48  ;;  %vm2814_vm7 = vweird.f32 %v5551_v48 }
 0x2c8   :  { %v2577_v13 = vsel %vm1946_vm5, %v5546_v3, inf  ;;  %3875 = vrcp.f32 %v5554_v4  ;;  %2575 = vmin.xlane.f32.xlu1 %v2574_v32  ;;  %v2782_v35 = vmul.f32 %v3872_v33, %v2781_v40  ;;  %v2673_v56 = vsel %vm1946_vm5, %v5546_v3, -inf }
 0x2c9   :  { %v2332_v27 = vadd.f32 %v3870_v37, %v2331_v10  ;;  %3877 = vrcp.f32 %v5534_v15 }
 0x2ca   :  { %2671 = vmax.xlane.f32.xlu0 %v2670_v51  ;;  %2578 = vmin.xlane.f32.xlu2 %v2577_v13  ;;  %v2783_v19 = vadd.f32 %v3872_v33, %v2782_v35  ;;  %v2790_v51 = vand.u32 2147483648, %v5501_v26 }
 0x2cb   :  { %v2336_v18 = vsel %vm2335_vm14, %v3870_v37, %v2332_v27  ;;  %v5560_v10 = vpop.xlane.xlu1 %2629 }
 0x2cc   :  { %v2341_v53 = vsel %vm2338_vm15, %v2340_v24, %v2336_v18  ;;  %v2788_v24 = vand.u32 2147483647, %v5501_v26  ;;  %v2715_v26 = vsub.f32 %v4789_v54, %v5454_v41  ;;  %v2805_v54 = vand.u32 2147483648, %v5554_v4 }
 0x2cd   :  { %v5569_v37 = vmul.f32 %v2341_v53, %v4848_v1  ;;  %v3874_v14 = vpop.eup %3873  ;;  %v2787_v53 = vsel %vm2786_vm2, %v3872_v33, %v2783_v19  ;;  %v2791_v1 = vor.u32 1.1754944e-38, %v2790_v51 }
 0x2ce   :  { %v5564_v22 = vpop.xlane.xlu2 %2533  ;;  %v3876_v27 = vpop.eup %3875  ;;  %v2810_v32 = vmul.f32 %v3874_v14, %v5551_v48  ;;  %vm2789_vm3 = vcmp.eq.f32.partialorder %v2788_v24, 8.507059e+37  ;;  %vm2815_vm4 = vweird.f32 %v3874_v14  ;;  %v2806_v41 = vor.u32 1.1754944e-38, %v2805_v54 }
 0x2cf   :  { %7384 = vst [vmem:[#allocation63_spill] sm:$0xff] %v5569_v37  ;;  %v2676_v43 = vsel %vm1946_vm5, %v5569_v37, -inf  ;;  %v2795_v40 = vmul.f32 %v3876_v27, %v5554_v4  ;;  %v2792_v44 = vsel %vm2789_vm3, %v2791_v1, %v2787_v53  ;;  %vm2800_vm6 = vweird.f32 %v3876_v27  ;;  %vm2816_vm9 = vmor %vm2814_vm7, %vm2815_vm4 }
 0x2d0   :  { %v5566_v11 = vpop.xlane.xlu0 %2011  ;;  %2674 = vmax.xlane.f32.xlu1 %v2673_v56  ;;  %v2811_v6 = vsub.f32 1.0, %v2810_v32  ;;  %v2793_v21 = vmul.f32 %v2792_v44, %v2715_v26  ;;  %v2820_v1 = vand.u32 2147483648, %v5551_v48  ;;  %vm2801_vm10 = vmor %vm2799_vm8, %vm2800_vm6  ;;  %v2717_v53 = vsub.f32 %v4874_v42, %v5529_v62 }
 0x2d1   :  { %v2796_v60 = vsub.f32 1.0, %v2795_v40  ;;  %vm2348_vm4 = vweird.f32 %v5534_v15 }
 0x2d2   :  { %2677 = vmax.xlane.f32.xlu2 %v2676_v43  ;;  %v2812_v58 = vmul.f32 %v3874_v14, %v2811_v6 }
 0x2d3   :  { %v2797_v56 = vmul.f32 %v3876_v27, %v2796_v60  ;;  %v2818_v60 = vand.u32 2147483647, %v5551_v48 }
 0x2d4   :  { %v5576_v18 = vpop.xlane.xlu1 %2014  ;;  %v2813_v19 = vadd.f32 %v3874_v14, %v2812_v58  ;;  %v2821_v58 = vor.u32 1.1754944e-38, %v2820_v1 }
 0x2d5   :  { %v2798_v51 = vadd.f32 %v3876_v27, %v2797_v56  ;;  %vm2819_vm11 = vcmp.eq.f32.partialorder %v2818_v60, 8.507059e+37 }
 0x2d6   :  { %v5584_v35 = vpop.xlane.xlu2 %2632  ;;  %v2817_v44 = vsel %vm2816_vm9, %v3874_v14, %v2813_v19  ;;  %v5611_v19 = vpop.eup %3877 }
 0x2d7   :  { %v2802_v6 = vsel %vm2801_vm10, %v3876_v27, %v2798_v51  ;;  %v2822_v32 = vsel %vm2819_vm11, %v2821_v58, %v2817_v44  ;;  %vm2349_vm2 = vweird.f32 %v5611_v19  ;;  %vm2363_vm10 = vweird.f32 %v5566_v11 }
 0x2d8   :  { %v5581_v13 = vpop.xlane.xlu0 %2536  ;;  %v2823_v14 = vmul.f32 %v2822_v32, %v2717_v53  ;;  %vm5647_vm8 = vmor %vm2348_vm4, %vm2349_vm2 }
 0x2dc   :  { %v5588_v43 = vpop.xlane.xlu1 %2539 }
 0x2de   :  { %3291 = vrot.lane.b32.xlu0 %v2793_v21, %s4114_s6  ;;  %v2803_v21 = vand.u32 2147483647, %v5554_v4  ;;  %v2716_v4 = vsub.f32 %v4856_v39, %v5505_v8  ;;  %v2344_v39 = vmul.f32 %v5611_v19, %v5534_v15 }
 0x2df   :  { %v5593_v33 = vpop.xlane.xlu2 %2017 }
 0x2e0   :  { %v5591_v17 = vpop.xlane.xlu0 %2635  ;;  %vm2804_vm12 = vcmp.eq.f32.partialorder %v2803_v21, 8.507059e+37 }
 0x2e1   :  { %v2807_v40 = vsel %vm2804_vm12, %v2806_v41, %v2802_v6  ;;  %v2345_v41 = vsub.f32 1.0, %v2344_v39 }
 0x2e2   :  { %v2808_v27 = vmul.f32 %v2807_v40, %v2716_v4 }
 0x2e5   :  { %v2639_v24 = vpop.xlane.xlu1 %2638 }
 0x2e7   :  { %v2543_v26 = vpop.xlane.xlu2 %2542 }
 0x2e8   :  { %v5603_v48 = vpop.xlane.xlu0 %2020  ;;  %v2753_v56 = vsub.f32 %v2639_v24, %v2543_v26  ;;  %v2721_v4 = vsub.f32 %v5077_v34, %v2543_v26 }
 0x2e9   :  { %3293 = vrot.lane.b32.xlu1 %v2808_v27, %s4114_s6 }
 0x2ea   :  { %3879 = vrcp.f32 %v2753_v56  ;;  %3295 = vrot.lane.b32.xlu2 %v2823_v14, %s4114_s6  ;;  %v2880_v44 = vand.u32 2147483648, %v2753_v56  ;;  %v2878_v58 = vand.u32 2147483647, %v2753_v56  ;;  %vm2874_vm14 = vweird.f32 %v2753_v56 }
 0x2eb   :  { %3881 = vrcp.f32 %v5566_v11 }
 0x2ec   :  { %v2881_v53 = vor.u32 1.1754944e-38, %v2880_v44  ;;  %vm2879_vm0 = vcmp.eq.f32.partialorder %v2878_v58, 8.507059e+37 }
 0x2ef   :  { %v2642_v42 = vpop.xlane.xlu2 %2641 }
 0x2f0   :  { %v2546_v62 = vpop.xlane.xlu0 %2545  ;;  %v3880_v51 = vpop.eup %3879 }
 0x2f1   :  { %v2754_v1 = vsub.f32 %v2642_v42, %v2546_v62  ;;  %v2870_v54 = vmul.f32 %v3880_v51, %v2753_v56  ;;  %v5617_v21 = vpop.eup %3881  ;;  %vm2875_vm13 = vweird.f32 %v3880_v51  ;;  %v2346_v42 = vmul.f32 %v5611_v19, %v2345_v41 }
 0x2f2   :  { %v5615_v60 = vpop.xlane.xlu1 %2023  ;;  %v2359_v24 = vmul.f32 %v5617_v21, %v5566_v11  ;;  %vm2876_vm15 = vmor %vm2874_vm14, %vm2875_vm13  ;;  %vm2364_vm9 = vweird.f32 %v5617_v21 }
 0x2f3   :  { %3883 = vrcp.f32 %v2754_v1  ;;  %v2871_v8 = vsub.f32 1.0, %v2870_v54  ;;  %v5625_v54 = vsub.f32 %v5560_v10, %v5564_v22  ;;  %v2895_v34 = vand.u32 2147483648, %v2754_v1  ;;  %vm5667_vm12 = vmor %vm2363_vm10, %vm2364_vm9 }
 0x2f4   :  { %v2360_v50 = vsub.f32 1.0, %v2359_v24  ;;  %v2347_v10 = vadd.f32 %v5611_v19, %v2346_v42  ;;  %vm2889_vm3 = vweird.f32 %v2754_v1 }
 0x2f5   :  { %v2872_v6 = vmul.f32 %v3880_v51, %v2871_v8  ;;  %3885 = vrcp.f32 %v5625_v54 }
 0x2f6   :  { %v2361_v41 = vmul.f32 %v5617_v21, %v2360_v50 }
 0x2f7   :  { %v2873_v32 = vadd.f32 %v3880_v51, %v2872_v6 }
 0x2f8   :  { %v2645_v8 = vpop.xlane.xlu0 %2644 }
 0x2f9   :  { %v3884_v40 = vpop.eup %3883  ;;  %v2877_v14 = vsel %vm2876_vm15, %v3880_v51, %v2873_v32  ;;  %v2893_v51 = vand.u32 2147483647, %v2754_v1  ;;  %v2354_v32 = vand.u32 2147483648, %v5534_v15 }
 0x2fa   :  { %v2885_v27 = vmul.f32 %v3884_v40, %v2754_v1  ;;  %v2882_v39 = vsel %vm2879_vm0, %v2881_v53, %v2877_v14  ;;  %v5629_v6 = vpop.xlane.xlu1 %2548  ;;  %vm2890_vm1 = vweird.f32 %v3884_v40  ;;  %v2896_v53 = vor.u32 1.1754944e-38, %v2895_v34 }
 0x2fb   :  { %v5627_v45 = vmul.f32 %v2882_v39, %v2721_v4  ;;  %v5634_v58 = vsub.f32 %v2645_v8, %v5629_v6  ;;  %vm2891_vm6 = vmor %vm2889_vm3, %vm2890_vm1  ;;  %v2352_v4 = vand.u32 2147483647, %v5534_v15  ;;  %v2722_v14 = vsub.f32 %v5105_v61, %v2546_v62  ;;  %v5658_v61 = vpop.eup %3885 }
 0x2fc   :  { %v2886_v56 = vsub.f32 1.0, %v2885_v27  ;;  %vm2894_vm7 = vcmp.eq.f32.partialorder %v2893_v51, 8.507059e+37  ;;  %v2351_v39 = vsel %vm5647_vm8, %v5611_v19, %v2347_v10  ;;  %v2362_v15 = vadd.f32 %v5617_v21, %v2361_v41 }
 0x2fd   :  { %v5631_v44 = vpop.xlane.xlu2 %2026  ;;  %3887 = vrcp.f32 %v5634_v58  ;;  %v2355_v62 = vor.u32 1.1754944e-38, %v2354_v32  ;;  %v2367_v34 = vand.u32 2147483647, %v5566_v11  ;;  %vm2353_vm11 = vcmp.eq.f32.partialorder %v2352_v4, 8.507059e+37 }
 0x2fe   :  { %v2887_v26 = vmul.f32 %v3884_v40, %v2886_v56  ;;  %v2366_v4 = vsel %vm5667_vm12, %v5617_v21, %v2362_v15  ;;  %vm2904_vm15 = vweird.f32 %v5634_v58  ;;  %vm2830_vm4 = vweird.f32 %v5658_v61 }
 0x2ff   :  { %v2356_v32 = vsel %vm2353_vm11, %v2355_v62, %v2351_v39  ;;  %vm2368_vm13 = vcmp.eq.f32.partialorder %v2367_v34, 8.507059e+37  ;;  %v5696_v39 = vadd.f32 -10.0, %v4483_v38  ;;  %vm2829_vm8 = vweird.f32 %v5625_v54 }
 0x300   :  { %v2888_v24 = vadd.f32 %v3884_v40, %v2887_v26  ;;  %vm5760_vm9 = vmor %vm2829_vm8, %vm2830_vm4 }
 0x302   :  { %v2892_v27 = vsel %vm2891_vm6, %v3884_v40, %v2888_v24  ;;  %v2369_v40 = vand.u32 2147483648, %v5566_v11  ;;  %v2580_v24 = vsel %vm1946_vm5, %v5569_v37, inf  ;;  %v5682_v11 = vsub.f32 %v5584_v35, %v5581_v13 }
 0x303   :  { %v2897_v1 = vsel %vm2894_vm7, %v2896_v53, %v2892_v27  ;;  %v3888_v56 = vpop.eup %3887  ;;  %v2648_v26 = vpop.xlane.xlu1 %2647  ;;  %v5678_v53 = vadd.f32 -10.0, %v4473_v23 }
 0x304   :  { %v5652_v42 = vmul.f32 %v2897_v1, %v2722_v14  ;;  %v2900_v10 = vmul.f32 %v3888_v56, %v5634_v58  ;;  %v2825_v14 = vmul.f32 %v5658_v61, %v5625_v54  ;;  %v2370_v27 = vor.u32 1.1754944e-38, %v2369_v40 }
 0x305   :  { %v5661_v8 = vpop.xlane.xlu0 %2029  ;;  %v5665_v51 = vpop.xlane.xlu2 %2551  ;;  %v5691_v1 = vmul.f32 %v2356_v32, %v4903_v2  ;;  %v1466_v35 = vand.u32 2147483647, %v5678_v53  ;;  %v5702_v40 = vsub.f32 %v5591_v17, %v5588_v43  ;;  %vm2905_vm14 = vweird.f32 %v3888_v56 }
 0x306   :  { %v5673_v41 = vsub.f32 %v2648_v26, %v5665_v51  ;;  %v2901_v50 = vsub.f32 1.0, %v2900_v10  ;;  %v2371_v23 = vsel %vm2368_vm13, %v2370_v27, %v2366_v4  ;;  %v2826_v21 = vsub.f32 1.0, %v2825_v14  ;;  %vm2906_vm0 = vmor %vm2904_vm15, %vm2905_vm14 }
 0x307   :  { %v2679_v34 = vsel %vm1946_vm5, %v5691_v1, -inf  ;;  %v5707_v19 = vmul.f32 %v2371_v23, %v4945_v49  ;;  %v2910_v10 = vand.u32 2147483648, %v5634_v58  ;;  %v2908_v17 = vand.u32 2147483647, %v5634_v58 }
 0x308   :  { %2581 = vmin.xlane.f32.xlu0 %v2580_v24  ;;  %3889 = vrcp.f32 %v5673_v41  ;;  %v2902_v62 = vmul.f32 %v3888_v56, %v2901_v50  ;;  %v1498_v14 = vsub.f32 0.0, %v1466_v35  ;;  %v1468_v50 = vand.u32 2147483647, %v5696_v39 }
 0x309   :  { %3891 = vrcp.f32 %v5682_v11  ;;  %7389 = vst [vmem:[#allocation64_spill] sm:$0xff] %v5707_v19  ;;  %v2827_v23 = vmul.f32 %v5658_v61, %v2826_v21  ;;  %v2911_v35 = vor.u32 1.1754944e-38, %v2910_v10  ;;  %v2925_v2 = vand.u32 2147483648, %v5673_v41 }
 0x30a   :  { %v2903_v4 = vadd.f32 %v3888_v56, %v2902_v62  ;;  %vm2909_vm1 = vcmp.eq.f32.partialorder %v2908_v17, 8.507059e+37  ;;  %v2923_v58 = vand.u32 2147483647, %v5673_v41  ;;  %v1530_v46 = vmul.f32 1.442695, %v1498_v14 }
 0x30b   :  { %v5710_v38 = vpop.xlane.xlu1 %2032  ;;  %v5735_v10 = vadd.f32 -10.0, %v4478_v30  ;;  %vm2919_vm3 = vweird.f32 %v5673_v41  ;;  %v2828_v17 = vadd.f32 %v5658_v61, %v2827_v23  ;;  %v2926_v14 = vor.u32 1.1754944e-38, %v2925_v2 }
 0x30c   :  { %7390 = vst [vmem:[#allocation65_spill] sm:$0xff] %v5710_v38  ;;  %v2907_v21 = vsel %vm2906_vm0, %v3888_v56, %v2903_v4  ;;  %v1500_v4 = vsub.f32 0.0, %v1468_v50  ;;  %vm2924_vm7 = vcmp.eq.f32.partialorder %v2923_v58, 8.507059e+37  ;;  %v2833_v23 = vand.u32 2147483647, %v5625_v54 }
 0x30d   :  { %v5698_v15 = vpop.xlane.xlu0 %2554  ;;  %v2651_v26 = vpop.xlane.xlu2 %2650  ;;  %v2912_v31 = vsel %vm2909_vm1, %v2911_v35, %v2907_v21  ;;  %vm2844_vm0 = vweird.f32 %v5682_v11  ;;  %vm2859_vm4 = vweird.f32 %v5702_v40 }
 0x30e   :  { %v3890_v24 = vpop.eup %3889  ;;  %v5713_v32 = vsub.f32 %v2651_v26, %v5698_v15  ;;  %v2586_v26 = vsel %vm1946_vm5, %v5707_v19, inf  ;;  %vm2834_vm11 = vcmp.eq.f32.partialorder %v2833_v23, 8.507059e+37 }
 0x30f   :  { %v2915_v27 = vmul.f32 %v3890_v24, %v5673_v41  ;;  %v5721_v49 = vpop.eup %3891  ;;  %vm2920_vm2 = vweird.f32 %v3890_v24 }
 0x310   :  { %2680 = vmax.xlane.f32.xlu0 %v2679_v34  ;;  %3893 = vrcp.f32 %v5713_v32  ;;  %v2723_v34 = vsub.f32 %v5158_v16, %v5629_v6  ;;  %v2583_v6 = vsel %vm1946_vm5, %v5691_v1, inf  ;;  %vm2921_vm6 = vmor %vm2919_vm3, %vm2920_vm2  ;;  %v2938_v58 = vand.u32 2147483647, %v5713_v32 }
 0x311   :  { %3895 = vrcp.f32 %v5702_v40  ;;  %v2916_v62 = vsub.f32 1.0, %v2915_v27  ;;  %v2840_v27 = vmul.f32 %v5721_v49, %v5682_v11  ;;  %vm2934_vm12 = vweird.f32 %v5713_v32 }
 0x312   :  { %v5732_v37 = vmul.f32 %v2912_v31, %v2723_v34  ;;  %3897 = vpow2.f32 %v1530_v46  ;;  %v2832_v46 = vsel %vm5760_vm9, %v5658_v61, %v2828_v17  ;;  %v2682_v61 = vsel %vm1946_vm5, %v5707_v19, -inf }
 0x313   :  { %v2917_v25 = vmul.f32 %v3890_v24, %v2916_v62  ;;  %2587 = vmin.xlane.f32.xlu2 %v2586_v26  ;;  %v5743_v31 = vpop.xlane.xlu1 %2557  ;;  %2584 = vmin.xlane.f32.xlu1 %v2583_v6  ;;  %v2835_v26 = vand.u32 2147483648, %v5625_v54  ;;  %v2841_v35 = vsub.f32 1.0, %v2840_v27  ;;  %v1467_v6 = vand.u32 2147483647, %v5735_v10 }
 0x314   :  { %vm2845_vm14 = vweird.f32 %v5721_v49  ;;  %vm2939_vm15 = vcmp.eq.f32.partialorder %v2938_v58, 8.507059e+37 }
 0x315   :  { %v2654_v38 = vpop.xlane.xlu0 %2653  ;;  %v2918_v16 = vadd.f32 %v3890_v24, %v2917_v25  ;;  %v5745_v62 = vpop.xlane.xlu2 %2035  ;;  %v2724_v25 = vsub.f32 %v5239_v28, %v5665_v51  ;;  %v2940_v51 = vand.u32 2147483648, %v5713_v32  ;;  %v2836_v27 = vor.u32 1.1754944e-38, %v2835_v26  ;;  %vm5805_vm1 = vmor %vm2844_vm0, %vm2845_vm14 }
 0x316   :  { %v3894_v56 = vpop.eup %3893  ;;  %7391 = vst [vmem:[#allocation66_spill] sm:$0xff] %v5745_v62  ;;  %v1534_v62 = vmul.f32 1.442695, %v1500_v4  ;;  %v2850_v28 = vand.u32 2147483648, %v5682_v11 }
 0x317   :  { %v5747_v30 = vpop.eup %3895  ;;  %v2922_v41 = vsel %vm2921_vm6, %v3890_v24, %v2918_v16  ;;  %v2930_v50 = vmul.f32 %v3894_v56, %v5713_v32  ;;  %v5766_v24 = vsub.f32 %v2654_v38, %v5743_v31  ;;  %vm2935_vm10 = vweird.f32 %v3894_v56 }
 0x318   :  { %v2927_v2 = vsel %vm2924_vm7, %v2926_v14, %v2922_v41  ;;  %v2842_v16 = vmul.f32 %v5721_v49, %v2841_v35  ;;  %v2855_v4 = vmul.f32 %v5747_v30, %v5702_v40  ;;  %v2718_v38 = vsub.f32 %v4916_v52, %v5564_v22  ;;  %vm2936_vm13 = vmor %vm2934_vm12, %vm2935_vm10  ;;  %v5785_v26 = vpop.eup %3897 }
 0x319   :  { %v5755_v34 = vmul.f32 %v2927_v2, %v2724_v25  ;;  %v2931_v21 = vsub.f32 1.0, %v2930_v50  ;;  %3899 = vrcp.f32 %v5766_v24  ;;  %v2837_v17 = vsel %vm2834_vm11, %v2836_v27, %v2832_v46 }
 0x31a   :  { %3901 = vpow2.f32 %v1534_v62  ;;  %v2941_v41 = vor.u32 1.1754944e-38, %v2940_v51  ;;  %v2725_v32 = vsub.f32 %v5274_v36, %v5698_v15  ;;  %v2843_v62 = vadd.f32 %v5721_v49, %v2842_v16 }
 0x31b   :  { %v2932_v54 = vmul.f32 %v3894_v56, %v2931_v21  ;;  %v2657_v50 = vpop.xlane.xlu1 %2656  ;;  %2683 = vmax.xlane.f32.xlu1 %v2682_v61  ;;  %v2856_v2 = vsub.f32 1.0, %v2855_v4  ;;  %v2838_v21 = vmul.f32 %v2837_v17, %v2718_v38  ;;  %3903 = vrcp.f32 %v5576_v18 }
 0x31c   :  { %v2848_v36 = vand.u32 2147483647, %v5682_v11  ;;  %v2847_v58 = vsel %vm5805_vm1, %v5721_v49, %v2843_v62  ;;  %v2851_v16 = vor.u32 1.1754944e-38, %v2850_v28  ;;  %v2719_v49 = vsub.f32 %v4988_v12, %v5581_v13 }
 0x31d   :  { %v5775_v14 = vpop.xlane.xlu0 %2038  ;;  %v2933_v25 = vadd.f32 %v3894_v56, %v2932_v54  ;;  %v5783_v23 = vpop.xlane.xlu2 %2560  ;;  %v2857_v27 = vmul.f32 %v5747_v30, %v2856_v2  ;;  %vm2860_vm3 = vweird.f32 %v5747_v30  ;;  %v2865_v2 = vand.u32 2147483648, %v5702_v40 }
 0x31e   :  { %7394 = vst [vmem:[#allocation67_spill] sm:$0xff] %v5775_v14  ;;  %v5792_v22 = vsub.f32 %v2657_v50, %v5783_v23  ;;  %vm2849_vm2 = vcmp.eq.f32.partialorder %v2848_v36, 8.507059e+37  ;;  %v1597_v12 = vmul.f32 -0.5, %v5785_v26  ;;  %v2863_v28 = vand.u32 2147483647, %v5702_v40  ;;  %vm5845_vm6 = vmor %vm2859_vm4, %vm2860_vm3 }
 0x31f   :  { %v2937_v35 = vsel %vm2936_vm13, %v3894_v56, %v2933_v25  ;;  %v5801_v15 = vpop.eup %3899  ;;  %v1499_v56 = vsub.f32 0.0, %v1467_v6  ;;  %v1594_v6 = vadd.f32 1.0, %v5785_v26  ;;  %v2858_v62 = vadd.f32 %v5747_v30, %v2857_v27 }
 0x320   :  { %v2942_v52 = vsel %vm2939_vm15, %v2941_v41, %v2937_v35  ;;  %3905 = vrcp.f32 %v5792_v22  ;;  %v5810_v54 = vpop.eup %3901  ;;  %v2945_v4 = vmul.f32 %v5801_v15, %v5766_v24  ;;  %v2852_v41 = vsel %vm2849_vm2, %v2851_v16, %v2847_v58 }
 0x321   :  { %v5796_v51 = vmul.f32 %v2942_v52, %v2725_v32  ;;  %v5823_v38 = vpop.eup %3903  ;;  %v5825_v17 = vmul.f32 1.442695, %v1499_v56  ;;  %v1612_v50 = vadd.f32 1.0, %v5810_v54  ;;  %3907 = vlog2.f32 %v1594_v6 }
 0x322   :  { %v2853_v13 = vmul.f32 %v2852_v41, %v2719_v49  ;;  %v5843_v36 = vmul.f32 %v5823_v38, %v5576_v18  ;;  %v1615_v58 = vmul.f32 -0.5, %v5810_v54  ;;  %v2970_v27 = vand.u32 2147483648, %v5792_v22 }
 0x323   :  { %v5821_v25 = vpop.xlane.xlu1 %2041  ;;  %v2862_v40 = vsel %vm5845_vm6, %v5747_v30, %v2858_v62  ;;  %v2866_v6 = vor.u32 1.1754944e-38, %v2865_v2  ;;  %v2955_v49 = vand.u32 2147483648, %v5766_v24  ;;  %vm2864_vm8 = vcmp.eq.f32.partialorder %v2863_v28, 8.507059e+37 }
 0x324   :  { %3297 = vrot.lane.b32.xlu0 %v2838_v21, %s4114_s6  ;;  %7397 = vst [vmem:[#allocation68_spill] sm:$0xff] %v5821_v25  ;;  %v2946_v21 = vsub.f32 1.0, %v2945_v4  ;;  %vm2950_vm9 = vweird.f32 %v5801_v15  ;;  %vm2964_vm10 = vweird.f32 %v5792_v22  ;;  %v2727_v19 = vsub.f32 %v5405_v29, %v5783_v23 }
 0x325   :  { %v5815_v11 = vpop.xlane.xlu0 %2563  ;;  %v2660_v61 = vpop.xlane.xlu2 %2659  ;;  %v2867_v2 = vsel %vm2864_vm8, %v2866_v6, %v2862_v40  ;;  %v2971_v28 = vor.u32 1.1754944e-38, %v2970_v27  ;;  %vm2949_vm12 = vweird.f32 %v5766_v24  ;;  %v2726_v29 = vsub.f32 %v5332_v57, %v5743_v31 }
 0x326   :  { %v3906_v32 = vpop.eup %3905  ;;  %v5831_v35 = vsub.f32 %v2660_v61, %v5815_v11  ;;  %v2968_v61 = vand.u32 2147483647, %v5792_v22  ;;  %vm2951_vm14 = vmor %vm2949_vm12, %vm2950_vm9  ;;  %vm2378_vm8 = vweird.f32 %v5576_v18 }
 0x327   :  { %v2960_v52 = vmul.f32 %v3906_v32, %v5792_v22  ;;  %vm2965_vm7 = vweird.f32 %v3906_v32  ;;  %v3908_v46 = vpop.eup %3907 }
 0x328   :  { %3909 = vrcp.f32 %v5831_v35  ;;  %vm2966_vm11 = vmor %vm2964_vm10, %vm2965_vm7  ;;  %vm2969_vm13 = vcmp.eq.f32.partialorder %v2968_v61, 8.507059e+37  ;;  %v2985_v61 = vand.u32 2147483648, %v5831_v35  ;;  %v2983_v31 = vand.u32 2147483647, %v5831_v35 }
 0x329   :  { %v2961_v56 = vsub.f32 1.0, %v2960_v52  ;;  %3911 = vlog2.f32 %v1612_v50  ;;  %v2947_v52 = vmul.f32 %v5801_v15, %v2946_v21  ;;  %vm2979_vm1 = vweird.f32 %v5831_v35 }
 0x32a   :  { %3913 = vrcp.f32 %v5593_v33  ;;  %vm2984_vm3 = vcmp.eq.f32.partialorder %v2983_v31, 8.507059e+37  ;;  %vm2379_vm7 = vweird.f32 %v5823_v38  ;;  %vm1402_vm10 = vcmp.ne.f32.partialorder %v5678_v53, %v5678_v53 }
 0x32b   :  { %3299 = vrot.lane.b32.xlu2 %v2853_v13, %s4114_s6  ;;  %v2962_v4 = vmul.f32 %v3906_v32, %v2961_v56  ;;  %v5858_v41 = vpop.xlane.xlu1 %2566  ;;  %v2953_v13 = vand.u32 2147483647, %v5766_v24  ;;  %v2948_v21 = vadd.f32 %v5801_v15, %v2947_v52  ;;  %v2720_v24 = vsub.f32 %v5009_v7, %v5588_v43  ;;  %vm5946_vm9 = vmor %vm2378_vm8, %vm2379_vm7 }
 0x32c   :  { %3915 = vpow2.f32 %v5825_v17  ;;  %v1598_v52 = vadd.f32 1.0, %v1597_v12  ;;  %v2375_v7 = vsub.f32 1.0, %v5843_v36  ;;  %v1616_v17 = vadd.f32 1.0, %v1615_v58 }
 0x32d   :  { %v2663_v16 = vpop.xlane.xlu0 %2662  ;;  %v5860_v50 = vpop.xlane.xlu2 %2569  ;;  %v2963_v30 = vadd.f32 %v3906_v32, %v2962_v4  ;;  %v2952_v27 = vsel %vm2951_vm14, %v5801_v15, %v2948_v21  ;;  %vm2954_vm15 = vcmp.eq.f32.partialorder %v2953_v13, 8.507059e+37  ;;  %v1596_v15 = vmul.f32 0.6931472, %v3908_v46 }
 0x32e   :  { %v5867_v62 = vsub.f32 %v2663_v16, %v5858_v41  ;;  %v3910_v56 = vpop.eup %3909  ;;  %v2956_v16 = vor.u32 1.1754944e-38, %v2955_v49  ;;  %v1600_v13 = vand.u32 2147483647, %v5785_v26  ;;  %3917 = vrcp.f32 %v5603_v48 }
 0x32f   :  { %v3912_v25 = vpop.eup %3911  ;;  %v2967_v14 = vsel %vm2966_vm11, %v3906_v32, %v2963_v30  ;;  %v2975_v22 = vmul.f32 %v3910_v56, %v5831_v35  ;;  %vm2980_vm0 = vweird.f32 %v3910_v56  ;;  %v2728_v58 = vsub.f32 %v5444_v20, %v5815_v11 }
 0x330   :  { %v5877_v40 = vpop.eup %3913  ;;  %v2972_v23 = vsel %vm2969_vm13, %v2971_v28, %v2967_v14  ;;  %v2957_v4 = vsel %vm2954_vm15, %v2956_v16, %v2952_v27  ;;  %v2868_v14 = vmul.f32 %v2867_v2, %v2720_v24  ;;  %vm2981_vm2 = vmor %vm2979_vm1, %vm2980_vm0  ;;  %v2986_v2 = vor.u32 1.1754944e-38, %v2985_v61 }
 0x331   :  { %v5884_v32 = vmul.f32 %v2972_v23, %v2727_v19  ;;  %v2976_v6 = vsub.f32 1.0, %v2975_v22  ;;  %v5890_v30 = vmul.f32 %v2957_v4, %v2726_v29  ;;  %v1614_v36 = vmul.f32 0.6931472, %v3912_v25 }
 0x332   :  { %v1618_v22 = vand.u32 2147483647, %v5810_v54  ;;  %v5907_v35 = vpop.eup %3915  ;;  %v2376_v16 = vmul.f32 %v5823_v38, %v2375_v7  ;;  %v2389_v29 = vmul.f32 %v5877_v40, %v5593_v33  ;;  %v1599_v27 = vmul.f32 %v5785_v26, %v1598_v52 }
 0x333   :  { %v2977_v57 = vmul.f32 %v3910_v56, %v2976_v6  ;;  %v2666_v43 = vpop.xlane.xlu1 %2665  ;;  %v1617_v24 = vmul.f32 %v5810_v54, %v1616_v17  ;;  %vm5917_vm4 = vcmp.lt.f32.partialorder %v1600_v13, 0.0004427343  ;;  %v1372_v26 = vmax.f32 %v5696_v39, 0.0 }
 0x334   :  { %v5897_v12 = vsub.f32 %v2666_v43, %v5860_v50  ;;  %3301 = vrot.lane.b32.xlu1 %v2868_v14, %s4114_s6  ;;  %vm5921_vm6 = vcmp.lt.f32.partialorder %v1618_v22, 0.0004427343  ;;  %v1602_v4 = vsel %vm5917_vm4, %v1599_v27, %v1596_v15  ;;  %v2390_v54 = vsub.f32 1.0, %v2389_v29  ;;  %v5937_v14 = vpop.eup %3917 }
 0x335   :  { %v5888_v49 = vpop.xlane.xlu0 %2572  ;;  %v2669_v19 = vpop.xlane.xlu2 %2668  ;;  %v2978_v28 = vadd.f32 %v3910_v56, %v2977_v57  ;;  %v1620_v61 = vsel %vm5921_vm6, %v1617_v24, %v1614_v36  ;;  %v2377_v31 = vadd.f32 %v5823_v38, %v2376_v16  ;;  %v2384_v7 = vand.u32 2147483648, %v5576_v18 }
 0x336   :  { %v5900_v21 = vsub.f32 %v2669_v19, %v5888_v49  ;;  %v1603_v19 = vadd.f32 1.0, %v5907_v35  ;;  %v2382_v13 = vand.u32 2147483647, %v5576_v18  ;;  %v2391_v22 = vmul.f32 %v5877_v40, %v2390_v54 }
 0x337   :  { %v2982_v46 = vsel %vm2981_vm2, %v3910_v56, %v2978_v28  ;;  %v1370_v56 = vmax.f32 %v5678_v53, 0.0  ;;  %v1884_v28 = vadd.f32 %v1620_v61, %v1372_v26  ;;  %v2381_v18 = vsel %vm5946_vm9, %v5823_v38, %v2377_v31 }
 0x338   :  { %v2987_v23 = vsel %vm2984_vm3, %v2986_v2, %v2982_v46  ;;  %3919 = vrcp.f32 %v5900_v21  ;;  %v1606_v46 = vmul.f32 -0.5, %v5907_v35  ;;  %v2385_v16 = vor.u32 1.1754944e-38, %v2384_v7 }
 0x339   :  { %v5913_v25 = vmul.f32 %v2987_v23, %v2728_v58  ;;  %v1882_v17 = vadd.f32 %v1602_v4, %v1370_v56  ;;  %v2404_v58 = vmul.f32 %v5937_v14, %v5603_v48  ;;  %vm1404_vm11 = vcmp.ne.f32.partialorder %v5696_v39, %v5696_v39 }
 0x33a   :  { %3921 = vlog2.f32 %v1603_v19  ;;  %v3030_v23 = vand.u32 2147483648, %v5900_v21  ;;  %vm2383_vm12 = vcmp.eq.f32.partialorder %v2382_v13, 8.507059e+37  ;;  %v1916_v24 = vsel %vm1404_vm11, %v5696_v39, %v1884_v28 }
 0x33b   :  { %v5932_v52 = vpop.xlane.xlu1 %2575  ;;  %v1914_v27 = vsel %vm1402_vm10, %v5678_v53, %v1882_v17  ;;  %v3028_v20 = vand.u32 2147483647, %v5900_v21  ;;  %v2386_v38 = vsel %vm2383_vm12, %v2385_v16, %v2381_v18  ;;  %vm2394_vm14 = vweird.f32 %v5877_v40 }
 0x33c   :  { %v2405_v11 = vsub.f32 1.0, %v2404_v58  ;;  %v2392_v61 = vadd.f32 %v5877_v40, %v2391_v22  ;;  %v1607_v26 = vadd.f32 1.0, %v1606_v46  ;;  %v2399_v54 = vand.u32 2147483648, %v5593_v33 }
 0x33d   :  { %v2672_v6 = vpop.xlane.xlu0 %2671  ;;  %v5934_v57 = vpop.xlane.xlu2 %2578  ;;  %vm3024_vm15 = vweird.f32 %v5900_v21  ;;  %vm2393_vm0 = vweird.f32 %v5593_v33  ;;  %v2397_v39 = vand.u32 2147483647, %v5593_v33  ;;  %v3031_v7 = vor.u32 1.1754944e-38, %v3030_v23 }
 0x33e   :  { %v5941_v43 = vsub.f32 %v2672_v6, %v5932_v52  ;;  %v3920_v15 = vpop.eup %3919  ;;  %v5979_v19 = vmul.f32 %v2386_v38, %v4985_v55  ;;  %vm5983_vm2 = vmor %vm2393_vm0, %vm2394_vm14  ;;  %vm3029_vm3 = vcmp.eq.f32.partialorder %v3028_v20, 8.507059e+37  ;;  %v2406_v33 = vmul.f32 %v5937_v14, %v2405_v11 }
 0x33f   :  { %v3020_v36 = vmul.f32 %v3920_v15, %v5900_v21  ;;  %vm3025_vm13 = vweird.f32 %v3920_v15  ;;  %v2731_v21 = vsub.f32 %v5518_v9, %v5888_v49  ;;  %v2400_v22 = vor.u32 1.1754944e-38, %v2399_v54 }
 0x340   :  { %vm3026_vm1 = vmor %vm3024_vm15, %vm3025_vm13  ;;  %v3922_v13 = vpop.eup %3921  ;;  %v3387_v18 = vsel %vm1946_vm5, %v4494_v63, %v1914_v27  ;;  %v2589_v9 = vsel %vm1946_vm5, %v5979_v19, inf  ;;  %v3389_v49 = vsel %vm1946_vm5, %v4533_v47, %v1916_v24  ;;  %vm2398_vm4 = vcmp.eq.f32.partialorder %v2397_v39, 8.507059e+37 }
 0x341   :  { %v3021_v29 = vsub.f32 1.0, %v3020_v36  ;;  %v2396_v36 = vsel %vm5983_vm2, %v5877_v40, %v2392_v61  ;;  %vm3419_vm6 = vcmask 31744   ;;  %v1608_v16 = vmul.f32 %v5907_v35, %v1607_v26 }
 0x342   :  { %v2401_v46 = vsel %vm2398_vm4, %v2400_v22, %v2396_v36  ;;  %v1609_v40 = vand.u32 2147483647, %v5907_v35  ;;  %vm2408_vm7 = vweird.f32 %v5603_v48  ;;  %vm2409_vm8 = vweird.f32 %v5937_v14 }
 0x343   :  { %v3022_v6 = vmul.f32 %v3920_v15, %v3021_v29  ;;  %v2675_v56 = vpop.xlane.xlu1 %2674  ;;  %vm3452_vm9 = vcmask 56320   ;;  %v2407_v29 = vadd.f32 %v5937_v14, %v2406_v33  ;;  %v2412_v47 = vand.u32 2147483647, %v5603_v48  ;;  %vm6018_vm11 = vmor %vm2408_vm7, %vm2409_vm8 }
 0x344   :  { %v5973_v53 = vsub.f32 %v2675_v56, %v5934_v57  ;;  %v2414_v27 = vand.u32 2147483648, %v5603_v48  ;;  %vm3485_vm10 = vcmask 64512   ;;  %v6014_v11 = vmul.f32 %v2401_v46, %v5037_v59 }
 0x345   :  { %v5967_v4 = vpop.xlane.xlu2 %2677  ;;  %v3023_v31 = vadd.f32 %v3920_v15, %v3022_v6  ;;  %vm6027_vm12 = vcmp.lt.f32.partialorder %v1609_v40, 0.0004427343  ;;  %vm2413_vm13 = vcmp.eq.f32.partialorder %v2412_v47, 8.507059e+37  ;;  %v1371_v33 = vmax.f32 %v5735_v10, 0.0 }
 0x346   :  { %3923 = vrcp.f32 %v5973_v53  ;;  %v2415_v39 = vor.u32 1.1754944e-38, %v2414_v27  ;;  %vm3054_vm15 = vweird.f32 %v5973_v53  ;;  %vm1403_vm2 = vcmp.ne.f32.partialorder %v5735_v10, %v5735_v10 }
 0x347   :  { %v3027_v28 = vsel %vm3026_vm1, %v3920_v15, %v3023_v31  ;;  %v1605_v15 = vmul.f32 0.6931472, %v3922_v13  ;;  %v2411_v31 = vsel %vm6018_vm11, %v5937_v14, %v2407_v29  ;;  %v2685_v13 = vsel %vm1946_vm5, %v5979_v19, -inf  ;;  %v7413_v29 = vld [vmem:[#allocation6_spill] sm:$0xff] }
 0x348   :  { %v3032_v2 = vsel %vm3029_vm3, %v3031_v7, %v3027_v28  ;;  %v3060_v7 = vand.u32 2147483648, %v5973_v53  ;;  %v2688_v28 = vsel %vm1946_vm5, %v6014_v11, -inf  ;;  %v2416_v14 = vsel %vm2413_vm13, %v2415_v39, %v2411_v31 }
 0x349   :  { %v5994_v58 = vmul.f32 %v3032_v2, %v2731_v21  ;;  %v1611_v48 = vsel %vm6027_vm12, %v1608_v16, %v1605_v15  ;;  %v3058_v21 = vand.u32 2147483647, %v5973_v53  ;;  %v6048_v2 = vadd.f32 -10.0, %v4500_v5 }
 0x34a   :  { %v3061_v22 = vor.u32 1.1754944e-38, %v3060_v7  ;;  %v6054_v15 = vmul.f32 %v2416_v14, %v5085_v0  ;;  %vm2423_vm8 = vweird.f32 %v5615_v60 }
 0x34b   :  { %vm3059_vm1 = vcmp.eq.f32.partialorder %v3058_v21, 8.507059e+37  ;;  %v1470_v5 = vand.u32 2147483647, %v6048_v2  ;;  %vm1406_vm7 = vcmp.ne.f32.partialorder %v6048_v2, %v6048_v2 }
 0x34c   :  { %v3924_v23 = vpop.eup %3923  ;;  %v2595_v40 = vsel %vm1946_vm5, %v6054_v15, inf }
 0x34d   :  { %v3296_v63 = vpop.permute.xlu2 %3295  ;;  %v3050_v20 = vmul.f32 %v3924_v23, %v5973_v53  ;;  %vm3055_vm14 = vweird.f32 %v3924_v23 }
 0x34e   :  { %2590 = vmin.xlane.f32.xlu0 %v2589_v9  ;;  %v3422_v6 = vsel %vm3419_vm6, %v3389_v49, %v3296_v63  ;;  %vm3056_vm0 = vmor %vm3054_vm15, %vm3055_vm14  ;;  %v2733_v9 = vsub.f32 %v5546_v3, %v5934_v57  ;;  %v1502_v63 = vsub.f32 0.0, %v1470_v5  ;;  %v7412_v3 = vld [vmem:[#allocation5_spill] sm:$0xff] }
 0x34f   :  { %v3455_v38 = vsel %vm3452_vm9, %v3422_v6, 0.0  ;;  %v3051_v54 = vsub.f32 1.0, %v3050_v20  ;;  %v6065_v57 = vadd.f32 -10.0, %v7412_v3  ;;  %v2592_v6 = vsel %vm1946_vm5, %v6014_v11, inf }
 0x350   :  { %v3292_v24 = vpop.permute.xlu0 %3291  ;;  %3488 = vst.msk [vmem:[%s7230_s8 + $0x10] sm:$0xff] %vm3485_vm10, %v3455_v38  ;;  %v2691_v38 = vsel %vm1946_vm5, %v6054_v15, -inf }
 0x351   :  { %v3420_v35 = vsel %vm3419_vm6, %v3387_v18, %v3292_v24  ;;  %v3052_v17 = vmul.f32 %v3924_v23, %v3051_v54  ;;  %v1883_v18 = vadd.f32 %v1611_v48, %v1371_v33  ;;  %v1469_v20 = vand.u32 2147483647, %v6065_v57  ;;  %v7414_v54 = vld [vmem:[#allocation7_spill] sm:$0xff] }
 0x352   :  { %v3453_v61 = vsel %vm3452_vm9, %v3420_v35, 0.0  ;;  %v6084_v48 = vadd.f32 -10.0, %v7414_v54 }
 0x353   :  { %3486 = vst.msk [vmem:[%s7230_s8] sm:$0xff] %vm3485_vm10, %v3453_v61  ;;  %v3053_v36 = vadd.f32 %v3924_v23, %v3052_v17  ;;  %v1915_v53 = vsel %vm1403_vm2, %v5735_v10, %v1883_v18  ;;  %v1538_v10 = vmul.f32 1.442695, %v1502_v63  ;;  %v1501_v35 = vsub.f32 0.0, %v1469_v20 }
 0x354   :  { %2686 = vmax.xlane.f32.xlu2 %v2685_v13  ;;  %v1471_v39 = vand.u32 2147483647, %v6084_v48  ;;  %v1374_v63 = vmax.f32 %v6048_v2, 0.0  ;;  %v2427_v20 = vand.u32 2147483647, %v5615_v60 }
 0x355   :  { %v3057_v49 = vsel %vm3056_vm0, %v3924_v23, %v3053_v36  ;;  %v3388_v23 = vsel %vm1946_vm5, %v7413_v29, %v1915_v53  ;;  %3925 = vpow2.f32 %v1538_v10  ;;  %v1536_v56 = vmul.f32 1.442695, %v1501_v35 }
 0x356   :  { %2689 = vmax.xlane.f32.xlu0 %v2688_v28  ;;  %v3062_v46 = vsel %vm3059_vm1, %v3061_v22, %v3057_v49  ;;  %v1503_v17 = vsub.f32 0.0, %v1471_v39  ;;  %v2429_v35 = vand.u32 2147483648, %v5615_v60  ;;  %vm2428_vm14 = vcmp.eq.f32.partialorder %v2427_v20, 8.507059e+37  ;;  %v7420_v20 = vld [vmem:[#allocation51_spill] sm:$0xff] }
 0x357   :  { %v6057_v16 = vmul.f32 %v3062_v46, %v2733_v9  ;;  %3927 = vpow2.f32 %v1536_v56  ;;  %v1373_v56 = vmax.f32 %v6065_v57, 0.0 }
 0x358   :  { %3929 = vrcp.f32 %v5615_v60 }
 0x35b   :  { %v3294_v47 = vpop.permute.xlu1 %3293  ;;  %v3926_v61 = vpop.eup %3925 }
 0x35c   :  { %2596 = vmin.xlane.f32.xlu2 %v2595_v40  ;;  %v3421_v27 = vsel %vm3419_vm6, %v3388_v23, %v3294_v47  ;;  %v1630_v26 = vadd.f32 1.0, %v3926_v61  ;;  %v1633_v13 = vmul.f32 -0.5, %v3926_v61  ;;  %v1636_v36 = vand.u32 2147483647, %v3926_v61 }
 0x35d   :  { %v3454_v24 = vsel %vm3452_vm9, %v3421_v27, 0.0  ;;  %v3928_v31 = vpop.eup %3927 }
 0x35e   :  { %3487 = vst.msk [vmem:[%s7230_s8 + $0x8] sm:$0xff] %vm3485_vm10, %v3454_v24  ;;  %2593 = vmin.xlane.f32.xlu1 %v2592_v6  ;;  %3931 = vlog2.f32 %v1630_v26  ;;  %v6087_v7 = vpop.eup %3929  ;;  %v1621_v28 = vadd.f32 1.0, %v3928_v31  ;;  %v1634_v33 = vadd.f32 1.0, %v1633_v13  ;;  %vm1637_vm3 = vcmp.lt.f32.partialorder %v1636_v36, 0.0004427343 }
 0x35f   :  { %3933 = vrcp.f32 %v5631_v44  ;;  %v2419_v21 = vmul.f32 %v6087_v7, %v5615_v60  ;;  %v1624_v40 = vmul.f32 -0.5, %v3928_v31  ;;  %v1627_v24 = vand.u32 2147483647, %v3928_v31 }
 0x360   :  { %3935 = vlog2.f32 %v1621_v28  ;;  %v1635_v5 = vmul.f32 %v3926_v61, %v1634_v33  ;;  %vm2424_vm4 = vweird.f32 %v6087_v7  ;;  %v2430_v36 = vor.u32 1.1754944e-38, %v2429_v35 }
 0x361   :  { %v2420_v49 = vsub.f32 1.0, %v2419_v21  ;;  %v1625_v27 = vadd.f32 1.0, %v1624_v40  ;;  %vm6124_vm11 = vmor %vm2423_vm8, %vm2424_vm4  ;;  %vm6132_vm12 = vcmp.lt.f32.partialorder %v1627_v24, 0.0004427343  ;;  %v2442_v24 = vand.u32 2147483647, %v5631_v44 }
 0x363   :  { %v1626_v21 = vmul.f32 %v3928_v31, %v1625_v27  ;;  %vm2443_vm8 = vcmp.eq.f32.partialorder %v2442_v24, 8.507059e+37  ;;  %v2457_v24 = vand.u32 2147483647, %v5661_v8 }
 0x366   :  { %2692 = vmax.xlane.f32.xlu1 %v2691_v38 }
 0x36a   :  { %3303 = vrot.lane.b32.xlu0 %v5627_v45, %s4114_s6  ;;  %v3932_v45 = vpop.eup %3931 }
 0x36b   :  { %v1632_v18 = vmul.f32 0.6931472, %v3932_v45  ;;  %v6100_v9 = vpop.eup %3933 }
 0x36c   :  { %v2434_v46 = vmul.f32 %v6100_v9, %v5631_v44  ;;  %v3936_v3 = vpop.eup %3935  ;;  %vm2439_vm0 = vweird.f32 %v6100_v9 }
 0x36d   :  { %v1638_v53 = vsel %vm1637_vm3, %v1635_v5, %v1632_v18  ;;  %v1623_v38 = vmul.f32 0.6931472, %v3936_v3  ;;  %vm2438_vm3 = vweird.f32 %v5631_v44 }
 0x36e   :  { %v1886_v29 = vadd.f32 %v1638_v53, %v1374_v63  ;;  %v2435_v47 = vsub.f32 1.0, %v2434_v46  ;;  %vm6166_vm4 = vmor %vm2438_vm3, %vm2439_vm0 }
 0x36f   :  { %v1629_v31 = vsel %vm6132_vm12, %v1626_v21, %v1623_v38 }
 0x370   :  { %v1918_v26 = vsel %vm1406_vm7, %v6048_v2, %v1886_v29  ;;  %v2436_v13 = vmul.f32 %v6100_v9, %v2435_v47  ;;  %v1885_v27 = vadd.f32 %v1629_v31, %v1373_v56  ;;  %vm1405_vm7 = vcmp.ne.f32.partialorder %v6065_v57, %v6065_v57 }
 0x372   :  { %v2437_v63 = vadd.f32 %v6100_v9, %v2436_v13  ;;  %v1917_v21 = vsel %vm1405_vm7, %v6065_v57, %v1885_v27 }
 0x374   :  { %3305 = vrot.lane.b32.xlu2 %v5652_v42, %s4114_s6  ;;  %v1540_v42 = vmul.f32 1.442695, %v1503_v17 }
 0x37b   :  { %v6094_v14 = vpop.xlane.xlu0 %2581 }
 0x37c   :  { %v6098_v22 = vsub.f32 %v5967_v4, %v6094_v14  ;;  %v2421_v4 = vmul.f32 %v6087_v7, %v2420_v49 }
 0x37e   :  { %3937 = vrcp.f32 %v6098_v22  ;;  %v2422_v10 = vadd.f32 %v6087_v7, %v2421_v4  ;;  %v3075_v45 = vand.u32 2147483648, %v6098_v22  ;;  %v3073_v2 = vand.u32 2147483647, %v6098_v22  ;;  %v7419_v4 = vld [vmem:[#allocation63_spill] sm:$0xff] }
 0x37f   :  { %3939 = vpow2.f32 %v1540_v42  ;;  %3307 = vrot.lane.b32.xlu1 %v5732_v37, %s4114_s6  ;;  %vm3069_vm15 = vweird.f32 %v6098_v22  ;;  %v2734_v3 = vsub.f32 %v7419_v4, %v6094_v14 }
 0x380   :  { %3941 = vrcp.f32 %v5661_v8  ;;  %v2426_v33 = vsel %vm6124_vm11, %v6087_v7, %v2422_v10  ;;  %v3076_v7 = vor.u32 1.1754944e-38, %v3075_v45  ;;  %vm3074_vm2 = vcmp.eq.f32.partialorder %v3073_v2, 8.507059e+37 }
 0x381   :  { %v2431_v40 = vsel %vm2428_vm14, %v2430_v36, %v2426_v33  ;;  %v7424_v36 = vld [vmem:[#allocation9_spill] sm:$0xff] }
 0x382   :  { %v6162_v35 = vmul.f32 %v2431_v40, %v7420_v20 }
 0x383   :  { %v2681_v18 = vpop.xlane.xlu0 %2680 }
 0x384   :  { %v3938_v23 = vpop.eup %3937  ;;  %v2598_v2 = vsel %vm1946_vm5, %v6162_v35, inf }
 0x385   :  { %v3065_v6 = vmul.f32 %v3938_v23, %v6098_v22  ;;  %v6117_v37 = vpop.eup %3939  ;;  %vm3070_vm13 = vweird.f32 %v3938_v23  ;;  %v2444_v22 = vand.u32 2147483648, %v5631_v44  ;;  %v2441_v44 = vsel %vm6166_vm4, %v6100_v9, %v2437_v63 }
 0x386   :  { %v6122_v54 = vpop.eup %3941  ;;  %v6130_v17 = vpop.xlane.xlu2 %2587  ;;  %v1639_v49 = vadd.f32 1.0, %v6117_v37  ;;  %vm3071_vm1 = vmor %vm3069_vm15, %vm3070_vm13  ;;  %vm2453_vm13 = vweird.f32 %v5661_v8  ;;  %vm1407_vm4 = vcmp.ne.f32.partialorder %v6084_v48, %v6084_v48 }
 0x387   :  { %v3066_v61 = vsub.f32 1.0, %v3065_v6  ;;  %v6140_v42 = vpop.xlane.xlu1 %2584  ;;  %v2449_v5 = vmul.f32 %v6122_v54, %v5661_v8  ;;  %v2445_v39 = vor.u32 1.1754944e-38, %v2444_v22  ;;  %vm2454_vm11 = vweird.f32 %v6122_v54 }
 0x388   :  { %v6149_v53 = vsub.f32 %v2681_v18, %v6140_v42  ;;  %v3390_v18 = vsel %vm1946_vm5, %v7424_v36, %v1917_v21  ;;  %vm6211_vm14 = vmor %vm2453_vm13, %vm2454_vm11  ;;  %v2694_v21 = vsel %vm1946_vm5, %v6162_v35, -inf  ;;  %v7430_v36 = vld [vmem:[#allocation8_spill] sm:$0xff] }
 0x389   :  { %v3067_v60 = vmul.f32 %v3938_v23, %v3066_v61  ;;  %v2450_v6 = vsub.f32 1.0, %v2449_v5  ;;  %v2446_v57 = vsel %vm2443_vm8, %v2445_v39, %v2441_v44  ;;  %v2735_v44 = vsub.f32 %v5691_v1, %v6140_v42 }
 0x38a   :  { %3943 = vrcp.f32 %v6149_v53  ;;  %v3090_v5 = vand.u32 2147483648, %v6149_v53  ;;  %vm3084_vm15 = vweird.f32 %v6149_v53 }
 0x38b   :  { %v3068_v46 = vadd.f32 %v3938_v23, %v3067_v60  ;;  %3945 = vlog2.f32 %v1639_v49  ;;  %v1642_v49 = vmul.f32 -0.5, %v6117_v37 }
 0x38d   :  { %v3072_v29 = vsel %vm3071_vm1, %v3938_v23, %v3068_v46  ;;  %v7423_v23 = vld [vmem:[#allocation11_spill] sm:$0xff]  ;;  %v1643_v14 = vadd.f32 1.0, %v1642_v49 }
 0x38e   :  { %v3077_v47 = vsel %vm3074_vm2, %v3076_v7, %v3072_v29  ;;  %v3391_v38 = vsel %vm1946_vm5, %v7423_v23, %v1918_v26  ;;  %v3300_v61 = vpop.permute.xlu2 %3299  ;;  %v2451_v26 = vmul.f32 %v6122_v54, %v2450_v6  ;;  %v7425_v7 = vld [vmem:[#allocation54_spill] sm:$0xff]  ;;  %v3088_v29 = vand.u32 2147483647, %v6149_v53 }
 0x38f   :  { %v6159_v10 = vmul.f32 %v3077_v47, %v2734_v3  ;;  %v3424_v56 = vsel %vm3419_vm6, %v3391_v38, %v3300_v61  ;;  %v2684_v13 = vpop.xlane.xlu1 %2683  ;;  %v6198_v40 = vmul.f32 %v2446_v57, %v7425_v7  ;;  %v2459_v47 = vand.u32 2147483648, %v5661_v8  ;;  %v7429_v57 = vld [vmem:[#allocation10_spill] sm:$0xff] }
 0x390   :  { %v3457_v45 = vsel %vm3452_vm9, %v3424_v56, 0.0  ;;  %v3944_v28 = vpop.eup %3943  ;;  %v6182_v60 = vsub.f32 %v2684_v13, %v6130_v17  ;;  %v2452_v63 = vadd.f32 %v6122_v54, %v2451_v26  ;;  %v3091_v23 = vor.u32 1.1754944e-38, %v3090_v5  ;;  %v7431_v5 = vld [vmem:[#allocation13_spill] sm:$0xff] }
 0x391   :  { %3490 = vst.msk [vmem:[%s7230_s8 + $0x20] sm:$0xff] %vm3485_vm10, %v3457_v45  ;;  %v3080_v9 = vmul.f32 %v3944_v28, %v6149_v53  ;;  %v3946_v4 = vpop.eup %3945  ;;  %vm3085_vm12 = vweird.f32 %v3944_v28  ;;  %v2697_v38 = vsel %vm1946_vm5, %v6198_v40, -inf  ;;  %v1645_v56 = vand.u32 2147483647, %v6117_v37 }
 0x392   :  { %vm3086_vm0 = vmor %vm3084_vm15, %vm3085_vm12  ;;  %v1641_v61 = vmul.f32 0.6931472, %v3946_v4  ;;  %vm3089_vm1 = vcmp.eq.f32.partialorder %v3088_v29, 8.507059e+37  ;;  %v2456_v8 = vsel %vm6211_vm14, %v6122_v54, %v2452_v63  ;;  %v2460_v53 = vor.u32 1.1754944e-38, %v2459_v47 }
 0x393   :  { %v3081_v33 = vsub.f32 1.0, %v3080_v9  ;;  %v1644_v26 = vmul.f32 %v6117_v37, %v1643_v14  ;;  %vm2458_vm2 = vcmp.eq.f32.partialorder %v2457_v24, 8.507059e+37  ;;  %vm1646_vm3 = vcmp.lt.f32.partialorder %v1645_v56, 0.0004427343  ;;  %v7432_v14 = vld [vmem:[#allocation65_spill] sm:$0xff]  ;;  %v7433_v56 = vld [vmem:[#allocation12_spill] sm:$0xff] }
 0x394   :  { %2599 = vmin.xlane.f32.xlu0 %v2598_v2  ;;  %v2461_v1 = vsel %vm2458_vm2, %v2460_v53, %v2456_v8  ;;  %v7428_v2 = vld [vmem:[#allocation55_spill] sm:$0xff]  ;;  %vm2468_vm8 = vweird.f32 %v7432_v14 }
 0x395   :  { %v3082_v3 = vmul.f32 %v3944_v28, %v3081_v33  ;;  %v1647_v42 = vsel %vm1646_vm3, %v1644_v26, %v1641_v61  ;;  %v6232_v9 = vmul.f32 %v2461_v1, %v7428_v2  ;;  %v6235_v33 = vadd.f32 -10.0, %v7429_v57 }
 0x396   :  { %v3298_v31 = vpop.permute.xlu0 %3297 }
 0x397   :  { %v3423_v46 = vsel %vm3419_vm6, %v3390_v18, %v3298_v31  ;;  %v3083_v6 = vadd.f32 %v3944_v28, %v3082_v3  ;;  %v2604_v37 = vsel %vm1946_vm5, %v6232_v9, inf  ;;  %v6242_v18 = vadd.f32 -10.0, %v7430_v36 }
 0x398   :  { %v3456_v22 = vsel %vm3452_vm9, %v3423_v46, 0.0  ;;  %v1473_v49 = vand.u32 2147483647, %v6235_v33 }
 0x399   :  { %3489 = vst.msk [vmem:[%s7230_s8 + $0x18] sm:$0xff] %vm3485_vm10, %v3456_v22  ;;  %v3087_v39 = vsel %vm3086_vm0, %v3944_v28, %v3083_v6  ;;  %v1375_v28 = vmax.f32 %v6084_v48, 0.0  ;;  %v1472_v4 = vand.u32 2147483647, %v6242_v18  ;;  %v2601_v22 = vsel %vm1946_vm5, %v6198_v40, inf }
 0x39a   :  { %v3092_v13 = vsel %vm3089_vm1, %v3091_v23, %v3087_v39  ;;  %v1505_v47 = vsub.f32 0.0, %v1473_v49  ;;  %v2700_v6 = vsel %vm1946_vm5, %v6232_v9, -inf  ;;  %v7434_v39 = vld [vmem:[#allocation66_spill] sm:$0xff]  ;;  %vm1409_vm0 = vcmp.ne.f32.partialorder %v6235_v33, %v6235_v33 }
 0x39b   :  { %v6225_v45 = vmul.f32 %v3092_v13, %v2735_v44  ;;  %v1887_v54 = vadd.f32 %v1647_v42, %v1375_v28  ;;  %v6263_v44 = vadd.f32 -10.0, %v7433_v56  ;;  %vm2483_vm1 = vweird.f32 %v7434_v39 }
 0x39c   :  { %2698 = vmax.xlane.f32.xlu0 %v2697_v38  ;;  %v1544_v27 = vmul.f32 1.442695, %v1505_v47  ;;  %v2474_v47 = vand.u32 2147483648, %v7432_v14  ;;  %vm1408_vm3 = vcmp.ne.f32.partialorder %v6242_v18, %v6242_v18 }
 0x39d   :  { %2695 = vmax.xlane.f32.xlu2 %v2694_v21  ;;  %v1919_v31 = vsel %vm1407_vm4, %v6084_v48, %v1887_v54  ;;  %v1504_v48 = vsub.f32 0.0, %v1472_v4  ;;  %v1474_v13 = vand.u32 2147483647, %v6263_v44 }
 0x39e   :  { %v3392_v46 = vsel %vm1946_vm5, %v7431_v5, %v1919_v31  ;;  %3947 = vpow2.f32 %v1544_v27 }
 0x39f   :  { %v1542_v24 = vmul.f32 1.442695, %v1504_v48  ;;  %3949 = vrcp.f32 %v7432_v14  ;;  %v1506_v42 = vsub.f32 0.0, %v1474_v13  ;;  %v7435_v48 = vld [vmem:[#allocation67_spill] sm:$0xff] }
 0x3a1   :  { %3951 = vpow2.f32 %v1542_v24  ;;  %v1546_v5 = vmul.f32 1.442695, %v1506_v42  ;;  %v2472_v24 = vand.u32 2147483647, %v7432_v14 }
 0x3a2   :  { %3953 = vrcp.f32 %v7434_v39 }
 0x3a3   :  { %vm2473_vm14 = vcmp.eq.f32.partialorder %v2472_v24, 8.507059e+37 }
 0x3a4   :  { %v3948_v23 = vpop.eup %3947 }
 0x3a5   :  { %2605 = vmin.xlane.f32.xlu2 %v2604_v37  ;;  %v3950_v38 = vpop.eup %3949  ;;  %v1657_v8 = vadd.f32 1.0, %v3948_v23  ;;  %v1660_v1 = vmul.f32 -0.5, %v3948_v23  ;;  %v1663_v4 = vand.u32 2147483647, %v3948_v23 }
 0x3a6   :  { %v3302_v63 = vpop.permute.xlu1 %3301  ;;  %vm2469_vm7 = vweird.f32 %v3950_v38 }
 0x3a7   :  { %v3425_v3 = vsel %vm3419_vm6, %v3392_v46, %v3302_v63  ;;  %v3952_v61 = vpop.eup %3951  ;;  %3955 = vlog2.f32 %v1657_v8  ;;  %vm6283_vm11 = vmor %vm2468_vm8, %vm2469_vm7  ;;  %vm1664_vm12 = vcmp.lt.f32.partialorder %v1663_v4, 0.0004427343  ;;  %v7438_v4 = vld [vmem:[#allocation56_spill] sm:$0xff]  ;;  %vm2498_vm7 = vweird.f32 %v7435_v48 }
 0x3a8   :  { %v3458_v29 = vsel %vm3452_vm9, %v3425_v3, 0.0  ;;  %v1648_v53 = vadd.f32 1.0, %v3952_v61  ;;  %v6270_v26 = vpop.eup %3953  ;;  %v1651_v28 = vmul.f32 -0.5, %v3952_v61  ;;  %v1654_v27 = vand.u32 2147483647, %v3952_v61 }
 0x3a9   :  { %3491 = vst.msk [vmem:[%s7230_s8 + $0x28] sm:$0xff] %vm3485_vm10, %v3458_v29  ;;  %2602 = vmin.xlane.f32.xlu1 %v2601_v22  ;;  %v2479_v57 = vmul.f32 %v6270_v26, %v7434_v39  ;;  %vm2484_vm15 = vweird.f32 %v6270_v26 }
 0x3aa   :  { %3957 = vlog2.f32 %v1648_v53  ;;  %v1652_v63 = vadd.f32 1.0, %v1651_v28  ;;  %vm1655_vm13 = vcmp.lt.f32.partialorder %v1654_v27, 0.0004427343  ;;  %vm6314_vm2 = vmor %vm2483_vm1, %vm2484_vm15 }
 0x3ab   :  { %v2480_v3 = vsub.f32 1.0, %v2479_v57  ;;  %3959 = vrcp.f32 %v7435_v48 }
 0x3ac   :  { %3961 = vpow2.f32 %v1546_v5  ;;  %v1653_v13 = vmul.f32 %v3952_v61, %v1652_v63 }
 0x3ad   :  { %v3956_v37 = vpop.eup %3955 }
 0x3ae   :  { %v1659_v22 = vmul.f32 0.6931472, %v3956_v37  ;;  %v2489_v37 = vand.u32 2147483648, %v7434_v39 }
 0x3b0   :  { %3309 = vrot.lane.b32.xlu0 %v5755_v34, %s4114_s6  ;;  %v2464_v34 = vmul.f32 %v3950_v38, %v7432_v14  ;;  %v3958_v49 = vpop.eup %3957  ;;  %v1377_v14 = vmax.f32 %v6235_v33, 0.0  ;;  %v2490_v27 = vor.u32 1.1754944e-38, %v2489_v37 }
 0x3b1   :  { %2701 = vmax.xlane.f32.xlu1 %v2700_v6  ;;  %v1650_v6 = vmul.f32 0.6931472, %v3958_v49  ;;  %v6295_v28 = vpop.eup %3959  ;;  %v2487_v49 = vand.u32 2147483647, %v7434_v39 }
 0x3b2   :  { %v2465_v21 = vsub.f32 1.0, %v2464_v34  ;;  %v2481_v34 = vmul.f32 %v6270_v26, %v2480_v3  ;;  %v6300_v61 = vpop.eup %3961  ;;  %v2494_v5 = vmul.f32 %v6295_v28, %v7435_v48  ;;  %vm2499_vm8 = vweird.f32 %v6295_v28 }
 0x3b3   :  { %v1656_v42 = vsel %vm1655_vm13, %v1653_v13, %v1650_v6  ;;  %v1666_v6 = vadd.f32 1.0, %v6300_v61  ;;  %vm2488_vm4 = vcmp.eq.f32.partialorder %v2487_v49, 8.507059e+37 }
 0x3b4   :  { %v2466_v54 = vmul.f32 %v3950_v38, %v2465_v21 }
 0x3b6   :  { %v2467_v29 = vadd.f32 %v3950_v38, %v2466_v54 }
 0x3b8   :  { %v2471_v53 = vsel %vm6283_vm11, %v3950_v38, %v2467_v29  ;;  %v2482_v38 = vadd.f32 %v6270_v26, %v2481_v34  ;;  %v7441_v34 = vld [vmem:[#allocation17_spill] sm:$0xff] }
 0x3ba   :  { %v2486_v39 = vsel %vm6314_vm2, %v6270_v26, %v2482_v38 }
 0x3bd   :  { %3311 = vrot.lane.b32.xlu2 %v5796_v51, %s4114_s6  ;;  %v1661_v51 = vadd.f32 1.0, %v1660_v1  ;;  %v2475_v1 = vor.u32 1.1754944e-38, %v2474_v47 }
 0x3bf   :  { %v1662_v56 = vmul.f32 %v3948_v23, %v1661_v51  ;;  %v2476_v54 = vsel %vm2473_vm14, %v2475_v1, %v2471_v53 }
 0x3c0   :  { %v6312_v3 = vmul.f32 %v2476_v54, %v7438_v4 }
 0x3c1   :  { %v6274_v36 = vpop.xlane.xlu0 %2590  ;;  %v1665_v21 = vsel %vm1664_vm12, %v1662_v56, %v1659_v22  ;;  %v2495_v56 = vsub.f32 1.0, %v2494_v5  ;;  %v1669_v5 = vmul.f32 -0.5, %v6300_v61  ;;  %vm6363_vm12 = vmor %vm2498_vm7, %vm2499_vm8 }
 0x3c2   :  { %v1889_v57 = vadd.f32 %v1665_v21, %v1377_v14  ;;  %v2607_v8 = vsel %vm1946_vm5, %v6312_v3, inf  ;;  %v2491_v21 = vsel %vm2488_vm4, %v2490_v27, %v2486_v39  ;;  %v7442_v14 = vld [vmem:[#allocation15_spill] sm:$0xff]  ;;  %vm2994_vm4 = vweird.f32 %v5867_v62 }
 0x3c4   :  { %v1921_v47 = vsel %vm1409_vm0, %v6235_v33, %v1889_v57  ;;  %v7443_v57 = vld [vmem:[#allocation57_spill] sm:$0xff] }
 0x3c5   :  { %v3394_v33 = vsel %vm1946_vm5, %v7441_v34, %v1921_v47  ;;  %v6343_v38 = vmul.f32 %v2491_v21, %v7443_v57  ;;  %v1672_v21 = vand.u32 2147483647, %v6300_v61 }
 0x3c7   :  { %v2687_v31 = vpop.xlane.xlu2 %2686  ;;  %v2706_v47 = vsel %vm1946_vm5, %v6343_v38, -inf  ;;  %vm1673_vm1 = vcmp.lt.f32.partialorder %v1672_v21, 0.0004427343  ;;  %v3000_v21 = vand.u32 2147483648, %v5867_v62 }
 0x3c8   :  { %v6277_v46 = vsub.f32 %v2687_v31, %v6274_v36 }
 0x3c9   :  { %v2690_v31 = vpop.xlane.xlu0 %2689 }
 0x3ca   :  { %3313 = vrot.lane.b32.xlu1 %v5890_v30, %s4114_s6  ;;  %v1376_v30 = vmax.f32 %v6242_v18, 0.0 }
 0x3cc   :  { %v1888_v51 = vadd.f32 %v1656_v42, %v1376_v30  ;;  %v2496_v42 = vmul.f32 %v6295_v28, %v2495_v56 }
 0x3ce   :  { %v1920_v24 = vsel %vm1408_vm3, %v6242_v18, %v1888_v51  ;;  %v2497_v39 = vadd.f32 %v6295_v28, %v2496_v42  ;;  %vm1410_vm3 = vcmp.ne.f32.partialorder %v6263_v44, %v6263_v44 }
 0x3cf   :  { %v6293_v23 = vpop.xlane.xlu2 %2596  ;;  %v3393_v18 = vsel %vm1946_vm5, %v7442_v14, %v1920_v24  ;;  %v2504_v24 = vand.u32 2147483648, %v7435_v48 }
 0x3d1   :  { %v6309_v63 = vpop.xlane.xlu1 %2593 }
 0x3d2   :  { %v2770_v22 = vsub.f32 %v2690_v31, %v6309_v63 }
 0x3d4   :  { %3963 = vrcp.f32 %v2770_v22  ;;  %vm3129_vm13 = vweird.f32 %v2770_v22 }
 0x3d5   :  { %3965 = vlog2.f32 %v1666_v6  ;;  %v3135_v6 = vand.u32 2147483648, %v2770_v22 }
 0x3d6   :  { %3967 = vrcp.f32 %v5867_v62 }
 0x3d7   :  { %v3306_v53 = vpop.permute.xlu2 %3305 }
 0x3d8   :  { %v3427_v13 = vsel %vm3419_vm6, %v3394_v33, %v3306_v53  ;;  %v3133_v33 = vand.u32 2147483647, %v2770_v22 }
 0x3d9   :  { %v3460_v26 = vsel %vm3452_vm9, %v3427_v13, 0.0  ;;  %v2693_v30 = vpop.xlane.xlu1 %2692  ;;  %v1670_v13 = vadd.f32 1.0, %v1669_v5 }
 0x3da   :  { %2608 = vmin.xlane.f32.xlu0 %v2607_v8  ;;  %3493 = vst.msk [vmem:[%s7230_s8 + $0x38] sm:$0xff] %vm3485_vm10, %v3460_v26  ;;  %v3964_v37 = vpop.eup %3963  ;;  %v6346_v31 = vsub.f32 %v2693_v30, %v6293_v23  ;;  %v2502_v8 = vand.u32 2147483647, %v7435_v48  ;;  %v3136_v30 = vor.u32 1.1754944e-38, %v3135_v6  ;;  %v2703_v48 = vsel %vm1946_vm5, %v6312_v3, -inf }
 0x3db   :  { %v3125_v49 = vmul.f32 %v3964_v37, %v2770_v22  ;;  %v3966_v27 = vpop.eup %3965  ;;  %vm3130_vm11 = vweird.f32 %v3964_v37  ;;  %vm3134_vm15 = vcmp.eq.f32.partialorder %v3133_v33, 8.507059e+37  ;;  %v7446_v22 = vld [vmem:[#allocation14_spill] sm:$0xff] }
 0x3dc   :  { %v3304_v1 = vpop.permute.xlu0 %3303  ;;  %v3968_v56 = vpop.eup %3967  ;;  %v1668_v14 = vmul.f32 0.6931472, %v3966_v27  ;;  %vm3131_vm14 = vmor %vm3129_vm13, %vm3130_vm11  ;;  %vm2503_vm0 = vcmp.eq.f32.partialorder %v2502_v8, 8.507059e+37  ;;  %v1671_v27 = vmul.f32 %v6300_v61, %v1670_v13  ;;  %v2998_v61 = vand.u32 2147483647, %v5867_v62 }
 0x3dd   :  { %v3426_v54 = vsel %vm3419_vm6, %v3393_v18, %v3304_v1  ;;  %v3126_v29 = vsub.f32 1.0, %v3125_v49  ;;  %v2501_v18 = vsel %vm6363_vm12, %v6295_v28, %v2497_v39  ;;  %v2505_v1 = vor.u32 1.1754944e-38, %v2504_v24 }
 0x3de   :  { %v3459_v51 = vsel %vm3452_vm9, %v3426_v54, 0.0  ;;  %v2990_v42 = vmul.f32 %v3968_v56, %v5867_v62  ;;  %v2738_v54 = vsub.f32 %v6014_v11, %v6309_v63  ;;  %v6377_v49 = vadd.f32 -10.0, %v7446_v22  ;;  %v7448_v11 = vld [vmem:[#allocation58_spill] sm:$0xff] }
 0x3df   :  { %3492 = vst.msk [vmem:[%s7230_s8 + $0x30] sm:$0xff] %vm3485_vm10, %v3459_v51  ;;  %v3127_v34 = vmul.f32 %v3964_v37, %v3126_v29  ;;  %v2506_v28 = vsel %vm2503_vm0, %v2505_v1, %v2501_v18  ;;  %v7447_v29 = vld [vmem:[#allocation16_spill] sm:$0xff]  ;;  %v1674_v6 = vsel %vm1673_vm1, %v1671_v27, %v1668_v14  ;;  %vm2995_vm2 = vweird.f32 %v3968_v56 }
 0x3e0   :  { %v2991_v24 = vsub.f32 1.0, %v2990_v42  ;;  %v6386_v63 = vmul.f32 %v2506_v28, %v7448_v11  ;;  %v1475_v8 = vand.u32 2147483647, %v6377_v49  ;;  %vm2996_vm7 = vmor %vm2994_vm4, %vm2995_vm2  ;;  %v3001_v42 = vor.u32 1.1754944e-38, %v3000_v21  ;;  %v7450_v28 = vld [vmem:[#allocation19_spill] sm:$0xff] }
 0x3e1   :  { %v3128_v26 = vadd.f32 %v3964_v37, %v3127_v34  ;;  %vm2999_vm8 = vcmp.eq.f32.partialorder %v2998_v61, 8.507059e+37 }
 0x3e2   :  { %2707 = vmax.xlane.f32.xlu0 %v2706_v47  ;;  %v6380_v47 = vadd.f32 -10.0, %v7447_v29  ;;  %v2613_v53 = vsel %vm1946_vm5, %v6386_v63, inf  ;;  %v1507_v13 = vsub.f32 0.0, %v1475_v8 }
 0x3e3   :  { %v3132_v51 = vsel %vm3131_vm14, %v3964_v37, %v3128_v26  ;;  %v1378_v37 = vmax.f32 %v6263_v44, 0.0  ;;  %v2992_v26 = vmul.f32 %v3968_v56, %v2991_v24 }
 0x3e4   :  { %v3137_v5 = vsel %vm3134_vm15, %v3136_v30, %v3132_v51  ;;  %v1476_v34 = vand.u32 2147483647, %v6380_v47  ;;  %v7449_v30 = vld [vmem:[#allocation60_spill] sm:$0xff]  ;;  %v1548_v51 = vmul.f32 1.442695, %v1507_v13 }
 0x3e5   :  { %v6382_v39 = vmul.f32 %v3137_v5, %v2738_v54  ;;  %v1890_v33 = vadd.f32 %v1674_v6, %v1378_v37  ;;  %v2993_v18 = vadd.f32 %v3968_v56, %v2992_v26 }
 0x3e6   :  { %2704 = vmax.xlane.f32.xlu2 %v2703_v48  ;;  %v1508_v14 = vsub.f32 0.0, %v1476_v34  ;;  %v2729_v48 = vsub.f32 %v7449_v30, %v5858_v41  ;;  %v2610_v41 = vsel %vm1946_vm5, %v6343_v38, inf  ;;  %3969 = vpow2.f32 %v1548_v51 }
 0x3e7   :  { %v1922_v1 = vsel %vm1410_vm3, %v6263_v44, %v1890_v33  ;;  %v2997_v54 = vsel %vm2996_vm7, %v3968_v56, %v2993_v18  ;;  %v7451_v56 = vld [vmem:[#allocation68_spill] sm:$0xff]  ;;  %v7452_v33 = vld [vmem:[#allocation18_spill] sm:$0xff]  ;;  %vm3039_vm3 = vweird.f32 %v5941_v43  ;;  %vm3009_vm7 = vweird.f32 %v5897_v12 }
 0x3e8   :  { %v3002_v22 = vsel %vm2999_vm8, %v3001_v42, %v2997_v54  ;;  %v1550_v5 = vmul.f32 1.442695, %v1508_v14  ;;  %v3395_v29 = vsel %vm1946_vm5, %v7450_v28, %v1922_v1  ;;  %vm2513_vm11 = vweird.f32 %v7451_v56 }
 0x3e9   :  { %v6403_v24 = vmul.f32 %v3002_v22, %v2729_v48 }
 0x3ea   :  { %3971 = vpow2.f32 %v1550_v5 }
 0x3eb   :  { %3973 = vrcp.f32 %v7451_v56 }
 0x3ec   :  { %v3970_v6 = vpop.eup %3969  ;;  %3975 = vrcp.f32 %v5941_v43 }
 0x3ed   :  { %v1675_v8 = vadd.f32 1.0, %v3970_v6  ;;  %3977 = vrcp.f32 %v5897_v12  ;;  %v1678_v21 = vmul.f32 -0.5, %v3970_v6  ;;  %v1681_v5 = vand.u32 2147483647, %v3970_v6 }
 0x3ee   :  { %2614 = vmin.xlane.f32.xlu2 %v2613_v53  ;;  %v6421_v53 = vadd.f32 -10.0, %v7452_v33 }
 0x3ef   :  { %3979 = vlog2.f32 %v1675_v8  ;;  %v1679_v22 = vadd.f32 1.0, %v1678_v21  ;;  %vm6446_vm13 = vcmp.lt.f32.partialorder %v1681_v5, 0.0004427343  ;;  %v3043_v5 = vand.u32 2147483647, %v5941_v43 }
 0x3f0   :  { %v3972_v37 = vpop.eup %3971  ;;  %v1477_v13 = vand.u32 2147483647, %v6421_v53 }
 0x3f1   :  { %v3308_v27 = vpop.permute.xlu1 %3307  ;;  %v6418_v34 = vpop.eup %3973  ;;  %v1684_v26 = vadd.f32 1.0, %v3972_v37  ;;  %v1687_v1 = vmul.f32 -0.5, %v3972_v37  ;;  %vm3044_vm8 = vcmp.eq.f32.partialorder %v3043_v5, 8.507059e+37  ;;  %v7461_v5 = vld [vmem:[#allocation59_spill] sm:$0xff] }
 0x3f2   :  { %v3428_v62 = vsel %vm3419_vm6, %v3395_v29, %v3308_v27  ;;  %v2509_v61 = vmul.f32 %v6418_v34, %v7451_v56  ;;  %v6430_v14 = vpop.eup %3975  ;;  %v1509_v30 = vsub.f32 0.0, %v1477_v13  ;;  %vm2514_vm12 = vweird.f32 %v6418_v34 }
 0x3f3   :  { %v3461_v44 = vsel %vm3452_vm9, %v3428_v62, 0.0  ;;  %3981 = vlog2.f32 %v1684_v26  ;;  %v6432_v42 = vpop.eup %3977  ;;  %v3035_v51 = vmul.f32 %v6430_v14, %v5941_v43  ;;  %v1688_v29 = vadd.f32 1.0, %v1687_v1  ;;  %vm6452_vm14 = vmor %vm2513_vm11, %vm2514_vm12 }
 0x3f4   :  { %3494 = vst.msk [vmem:[%s7230_s8 + $0x40] sm:$0xff] %vm3485_vm10, %v3461_v44  ;;  %2611 = vmin.xlane.f32.xlu1 %v2610_v41  ;;  %v2510_v18 = vsub.f32 1.0, %v2509_v61  ;;  %v1552_v27 = vmul.f32 1.442695, %v1509_v30  ;;  %v1690_v44 = vand.u32 2147483647, %v3972_v37  ;;  %v1680_v26 = vmul.f32 %v3970_v6, %v1679_v22 }
 0x3f5   :  { %v3980_v48 = vpop.eup %3979  ;;  %v2519_v41 = vand.u32 2147483648, %v7451_v56  ;;  %v3036_v8 = vsub.f32 1.0, %v3035_v51  ;;  %v2517_v13 = vand.u32 2147483647, %v7451_v56  ;;  %v1689_v1 = vmul.f32 %v3972_v37, %v1688_v29 }
 0x3f6   :  { %3315 = vrot.lane.b32.xlu0 %v5884_v32, %s4114_s6  ;;  %v2709_v32 = vsel %vm1946_vm5, %v6386_v63, -inf  ;;  %v2511_v28 = vmul.f32 %v6418_v34, %v2510_v18  ;;  %v6439_v62 = vmul.f32 0.6931472, %v3980_v48  ;;  %3983 = vpow2.f32 %v1552_v27 }
 0x3f7   :  { %vm6461_vm15 = vcmp.lt.f32.partialorder %v1690_v44, 0.0004427343  ;;  %v2520_v56 = vor.u32 1.1754944e-38, %v2519_v41  ;;  %3985 = vrcp.f32 %v6182_v60  ;;  %v3045_v37 = vand.u32 2147483648, %v5941_v43  ;;  %v7459_v44 = vld [vmem:[#allocation62_spill] sm:$0xff] }
 0x3f8   :  { %v2512_v18 = vadd.f32 %v6418_v34, %v2511_v28  ;;  %v1683_v6 = vsel %vm6446_vm13, %v1680_v26, %v6439_v62  ;;  %3987 = vrcp.f32 %v6346_v31  ;;  %v3037_v22 = vmul.f32 %v6430_v14, %v3036_v8 }
 0x3f9   :  { %v3982_v54 = vpop.eup %3981  ;;  %vm3040_vm0 = vweird.f32 %v6430_v14  ;;  %vm2518_vm1 = vcmp.eq.f32.partialorder %v2517_v13, 8.507059e+37  ;;  %vm3010_vm2 = vweird.f32 %v6432_v42  ;;  %v3013_v27 = vand.u32 2147483647, %v5897_v12 }
 0x3fa   :  { %v2516_v28 = vsel %vm6452_vm14, %v6418_v34, %v2512_v18  ;;  %v3038_v29 = vadd.f32 %v6430_v14, %v3037_v22  ;;  %v3015_v62 = vand.u32 2147483648, %v5897_v12  ;;  %v2732_v41 = vsub.f32 %v7459_v44, %v5932_v52  ;;  %vm3041_vm4 = vmor %vm3039_vm3, %vm3040_vm0 }
 0x3fb   :  { %v2521_v61 = vsel %vm2518_vm1, %v2520_v56, %v2516_v28  ;;  %vm3011_vm11 = vmor %vm3009_vm7, %vm3010_vm2  ;;  %vm3014_vm12 = vcmp.eq.f32.partialorder %v3013_v27, 8.507059e+37  ;;  %v1380_v30 = vmax.f32 %v6380_v47, 0.0  ;;  %vm1411_vm13 = vcmp.ne.f32.partialorder %v6377_v49, %v6377_v49 }
 0x3fc   :  { %2710 = vmax.xlane.f32.xlu1 %v2709_v32  ;;  %v1686_v32 = vmul.f32 0.6931472, %v3982_v54  ;;  %v6486_v8 = vpop.eup %3983  ;;  %v3042_v26 = vsel %vm3041_vm4, %v6430_v14, %v3038_v29  ;;  %v3016_v43 = vor.u32 1.1754944e-38, %v3015_v62  ;;  %v1379_v14 = vmax.f32 %v6377_v49, 0.0 }
 0x3fd   :  { %v6489_v13 = vpop.eup %3985  ;;  %vm1412_vm14 = vcmp.ne.f32.partialorder %v6380_v47, %v6380_v47  ;;  %vm3144_vm4 = vweird.f32 %v6346_v31 }
 0x3fe   :  { %v1692_v51 = vsel %vm6461_vm15, %v1689_v1, %v1686_v32  ;;  %v3046_v32 = vor.u32 1.1754944e-38, %v3045_v37  ;;  %vm3099_vm15 = vweird.f32 %v6182_v60  ;;  %vm3100_vm0 = vweird.f32 %v6489_v13 }
 0x3ff   :  { %vm6550_vm1 = vmor %vm3099_vm15, %vm3100_vm0 }
 0x400   :  { %v3047_v52 = vsel %vm3044_vm8, %v3046_v32, %v3042_v26  ;;  %v1693_v26 = vadd.f32 1.0, %v6486_v8 }
 0x401   :  { %v3048_v56 = vmul.f32 %v3047_v52, %v2732_v41 }
 0x406   :  { %3317 = vrot.lane.b32.xlu2 %v5913_v25, %s4114_s6  ;;  %v3005_v25 = vmul.f32 %v6432_v42, %v5897_v12  ;;  %v6496_v12 = vpop.eup %3987 }
 0x407   :  { %v6444_v33 = vpop.xlane.xlu0 %2599  ;;  %v3140_v29 = vmul.f32 %v6496_v12, %v6346_v31  ;;  %vm3145_vm2 = vweird.f32 %v6496_v12 }
 0x408   :  { %v3006_v21 = vsub.f32 1.0, %v3005_v25  ;;  %vm3146_vm7 = vmor %vm3144_vm4, %vm3145_vm2  ;;  %vm1413_vm4 = vcmp.ne.f32.partialorder %v6421_v53, %v6421_v53 }
 0x40a   :  { %v3007_v25 = vmul.f32 %v6432_v42, %v3006_v21  ;;  %v7460_v21 = vld [vmem:[#allocation61_spill] sm:$0xff] }
 0x40b   :  { %v2730_v18 = vsub.f32 %v7460_v21, %v5860_v50  ;;  %v6503_v50 = vmul.f32 %v2521_v61, %v7461_v5  ;;  %v3141_v61 = vsub.f32 1.0, %v3140_v29 }
 0x40c   :  { %v3008_v34 = vadd.f32 %v6432_v42, %v3007_v25  ;;  %v1892_v25 = vadd.f32 %v1692_v51, %v1380_v30 }
 0x40d   :  { %v2616_v27 = vsel %vm1946_vm5, %v6503_v50, inf }
 0x40e   :  { %v3012_v1 = vsel %vm3011_vm11, %v6432_v42, %v3008_v34  ;;  %v1891_v42 = vadd.f32 %v1683_v6, %v1379_v14  ;;  %v1924_v6 = vsel %vm1412_vm14, %v6380_v47, %v1892_v25  ;;  %v3148_v25 = vand.u32 2147483647, %v6346_v31 }
 0x40f   :  { %v2699_v54 = vpop.xlane.xlu0 %2698  ;;  %v3017_v22 = vsel %vm3014_vm12, %v3016_v43, %v3012_v1  ;;  %v7462_v43 = vld [vmem:[#allocation21_spill] sm:$0xff] }
 0x410   :  { %v6456_v48 = vpop.xlane.xlu2 %2695  ;;  %v6505_v28 = vmul.f32 %v3017_v22, %v2730_v18  ;;  %v1923_v41 = vsel %vm1411_vm13, %v6377_v49, %v1891_v42  ;;  %v7463_v18 = vld [vmem:[#allocation23_spill] sm:$0xff]  ;;  %v3105_v22 = vand.u32 2147483648, %v6182_v60  ;;  %v3142_v42 = vmul.f32 %v6496_v12, %v3141_v61 }
 0x411   :  { %v3396_v21 = vsel %vm1946_vm5, %v7462_v43, %v1923_v41  ;;  %v3397_v49 = vsel %vm1946_vm5, %v7463_v18, %v1924_v6  ;;  %v7466_v41 = vld [vmem:[#allocation64_spill] sm:$0xff]  ;;  %v2739_v43 = vsub.f32 %v6054_v15, %v6293_v23  ;;  %vm3149_vm8 = vcmp.eq.f32.partialorder %v3148_v25, 8.507059e+37 }
 0x412   :  { %v3106_v29 = vor.u32 1.1754944e-38, %v3105_v22  ;;  %v2736_v6 = vsub.f32 %v7466_v41, %v6130_v17 }
 0x415   :  { %3319 = vrot.lane.b32.xlu1 %v6403_v24, %s4114_s6  ;;  %v3095_v24 = vmul.f32 %v6489_v13, %v6182_v60 }
 0x417   :  { %v3096_v62 = vsub.f32 1.0, %v3095_v24 }
 0x418   :  { %v6500_v37 = vpop.xlane.xlu2 %2605 }
 0x419   :  { %v3097_v1 = vmul.f32 %v6489_v13, %v3096_v62 }
 0x41c   :  { %v6517_v44 = vpop.xlane.xlu1 %2602 }
 0x41d   :  { %v6522_v51 = vsub.f32 %v2699_v54, %v6517_v44  ;;  %3325 = vrot.lane.b32.xlu1 %v3048_v56, %s4114_s6  ;;  %v3098_v54 = vadd.f32 %v6489_v13, %v3097_v1  ;;  %v3103_v56 = vand.u32 2147483647, %v6182_v60 }
 0x41f   :  { %3989 = vrcp.f32 %v6522_v51  ;;  %v3102_v60 = vsel %vm6550_vm1, %v6489_v13, %v3098_v54  ;;  %vm3104_vm3 = vcmp.eq.f32.partialorder %v3103_v56, 8.507059e+37  ;;  %v3178_v15 = vand.u32 2147483647, %v6522_v51 }
 0x420   :  { %2617 = vmin.xlane.f32.xlu0 %v2616_v27  ;;  %v3312_v34 = vpop.permute.xlu2 %3311  ;;  %3991 = vrcp.f32 %v6277_v46  ;;  %v3150_v27 = vand.u32 2147483648, %v6346_v31  ;;  %v3107_v61 = vsel %vm3104_vm3, %v3106_v29, %v3102_v60  ;;  %v1696_v31 = vmul.f32 -0.5, %v6486_v8  ;;  %v7467_v29 = vld [vmem:[#allocation20_spill] sm:$0xff] }
 0x421   :  { %v3430_v52 = vsel %vm3419_vm6, %v3397_v49, %v3312_v34  ;;  %3993 = vlog2.f32 %v1693_v26  ;;  %v6572_v17 = vmul.f32 %v3107_v61, %v2736_v6  ;;  %vm3174_vm12 = vweird.f32 %v6522_v51 }
 0x422   :  { %v3310_v32 = vpop.permute.xlu0 %3309  ;;  %v3463_v30 = vsel %vm3452_vm9, %v3430_v52, 0.0  ;;  %v3151_v13 = vor.u32 1.1754944e-38, %v3150_v27  ;;  %v2712_v56 = vsel %vm1946_vm5, %v6503_v50, -inf  ;;  %v1697_v22 = vadd.f32 1.0, %v1696_v31 }
 0x423   :  { %v3429_v47 = vsel %vm3419_vm6, %v3396_v21, %v3310_v32  ;;  %3496 = vst.msk [vmem:[%s7230_s8 + $0x50] sm:$0xff] %vm3485_vm10, %v3463_v30  ;;  %v3143_v32 = vadd.f32 %v6496_v12, %v3142_v42  ;;  %v3180_v30 = vand.u32 2147483648, %v6522_v51  ;;  %vm3179_vm14 = vcmp.eq.f32.partialorder %v3178_v15, 8.507059e+37 }
 0x424   :  { %v3462_v14 = vsel %vm3452_vm9, %v3429_v47, 0.0  ;;  %v2702_v18 = vpop.xlane.xlu1 %2701  ;;  %v6592_v27 = vadd.f32 -10.0, %v7467_v29  ;;  %v1698_v41 = vmul.f32 %v6486_v8, %v1697_v22  ;;  %vm3114_vm1 = vweird.f32 %v6277_v46 }
 0x425   :  { %3495 = vst.msk [vmem:[%s7230_s8 + $0x48] sm:$0xff] %vm3485_vm10, %v3462_v14  ;;  %v3990_v62 = vpop.eup %3989  ;;  %3331 = vrot.lane.b32.xlu1 %v6225_v45, %s4114_s6  ;;  %v3147_v45 = vsel %vm3146_vm7, %v6496_v12, %v3143_v32  ;;  %v6582_v23 = vsub.f32 %v2702_v18, %v6500_v37  ;;  %v1699_v12 = vand.u32 2147483647, %v6486_v8  ;;  %v3181_v25 = vor.u32 1.1754944e-38, %v3180_v30 }
 0x426   :  { %v3992_v34 = vpop.eup %3991  ;;  %v3170_v26 = vmul.f32 %v3990_v62, %v6522_v51  ;;  %v3152_v49 = vsel %vm3149_vm8, %v3151_v13, %v3147_v45  ;;  %vm3175_vm11 = vweird.f32 %v3990_v62  ;;  %v3118_v32 = vand.u32 2147483647, %v6277_v46  ;;  %v7470_v13 = vld [vmem:[#allocation22_spill] sm:$0xff] }
 0x427   :  { %v3110_v47 = vmul.f32 %v3992_v34, %v6277_v46  ;;  %v6577_v52 = vmul.f32 %v3152_v49, %v2739_v43  ;;  %v3994_v1 = vpop.eup %3993  ;;  %vm3176_vm13 = vmor %vm3174_vm12, %vm3175_vm11  ;;  %3995 = vrcp.f32 %v6582_v23  ;;  %vm6597_vm15 = vcmp.lt.f32.partialorder %v1699_v12, 0.0004427343 }
 0x428   :  { %v3171_v21 = vsub.f32 1.0, %v3170_v26  ;;  %v1695_v60 = vmul.f32 0.6931472, %v3994_v1  ;;  %vm3115_vm0 = vweird.f32 %v3992_v34  ;;  %v1381_v26 = vmax.f32 %v6421_v53, 0.0 }
 0x429   :  { %v3111_v24 = vsub.f32 1.0, %v3110_v47  ;;  %v6609_v8 = vadd.f32 -10.0, %v7470_v13  ;;  %vm3116_vm2 = vmor %vm3114_vm1, %vm3115_vm0  ;;  %v2737_v18 = vsub.f32 %v5979_v19, %v6274_v36  ;;  %vm3119_vm3 = vcmp.eq.f32.partialorder %v3118_v32, 8.507059e+37  ;;  %v7472_v13 = vld [vmem:[#allocation24_spill] sm:$0xff] }
 0x42a   :  { %v3172_v14 = vmul.f32 %v3990_v62, %v3171_v21  ;;  %v1701_v61 = vsel %vm6597_vm15, %v1698_v41, %v1695_v60  ;;  %v3195_v29 = vand.u32 2147483648, %v6582_v23  ;;  %vm3189_vm8 = vweird.f32 %v6582_v23 }
 0x42b   :  { %v1893_v31 = vadd.f32 %v1701_v61, %v1381_v26  ;;  %v1479_v1 = vand.u32 2147483647, %v6609_v8  ;;  %v3193_v41 = vand.u32 2147483647, %v6582_v23 }
 0x42c   :  { %v3173_v54 = vadd.f32 %v3990_v62, %v3172_v14 }
 0x42d   :  { %3337 = vrot.lane.b32.xlu1 %v6382_v39, %s4114_s6  ;;  %v2741_v39 = vsub.f32 %v6198_v40, %v6517_v44  ;;  %v1478_v40 = vand.u32 2147483647, %v6592_v27  ;;  %v3996_v21 = vpop.eup %3995  ;;  %v1925_v19 = vsel %vm1413_vm4, %v6421_v53, %v1893_v31  ;;  %v1511_v36 = vsub.f32 0.0, %v1479_v1 }
 0x42e   :  { %v3177_v42 = vsel %vm3176_vm13, %v3990_v62, %v3173_v54  ;;  %v3112_v62 = vmul.f32 %v3992_v34, %v3111_v24  ;;  %v3185_v15 = vmul.f32 %v3996_v21, %v6582_v23  ;;  %v7471_v54 = vld [vmem:[#allocation25_spill] sm:$0xff]  ;;  %vm3190_vm7 = vweird.f32 %v3996_v21 }
 0x42f   :  { %2713 = vmax.xlane.f32.xlu2 %v2712_v56  ;;  %v3182_v51 = vsel %vm3179_vm14, %v3181_v25, %v3177_v42  ;;  %v1510_v30 = vsub.f32 0.0, %v1478_v40  ;;  %v3398_v56 = vsel %vm1946_vm5, %v7471_v54, %v1925_v19  ;;  %v1556_v42 = vmul.f32 1.442695, %v1511_v36  ;;  %vm3191_vm11 = vmor %vm3189_vm8, %vm3190_vm7  ;;  %v7476_v19 = vld [vmem:[#allocation28_spill] sm:$0xff] }
 0x430   :  { %v3183_v43 = vmul.f32 %v3182_v51, %v2741_v39  ;;  %v3113_v45 = vadd.f32 %v3992_v34, %v3112_v62  ;;  %v3186_v12 = vsub.f32 1.0, %v3185_v15  ;;  %v3196_v62 = vor.u32 1.1754944e-38, %v3195_v29 }
 0x431   :  { %vm3194_vm12 = vcmp.eq.f32.partialorder %v3193_v41, 8.507059e+37  ;;  %v6671_v36 = vadd.f32 -10.0, %v7476_v19  ;;  %vm1415_vm4 = vcmp.ne.f32.partialorder %v6609_v8, %v6609_v8 }
 0x432   :  { %v3117_v49 = vsel %vm3116_vm2, %v3992_v34, %v3113_v45  ;;  %v1554_v34 = vmul.f32 1.442695, %v1510_v30 }
 0x433   :  { %v1482_v29 = vand.u32 2147483647, %v6671_v36 }
 0x434   :  { %3321 = vrot.lane.b32.xlu0 %v6505_v28, %s4114_s6  ;;  %v3120_v28 = vand.u32 2147483648, %v6277_v46  ;;  %v6619_v46 = vsub.f32 %v6456_v48, %v6444_v33 }
 0x435   :  { %3343 = vrot.lane.b32.xlu1 %v3183_v43, %s4114_s6  ;;  %v6651_v43 = vadd.f32 -10.0, %v7472_v13  ;;  %v7478_v13 = vld [vmem:[#allocation32_spill] sm:$0xff] }
 0x436   :  { %v3121_v44 = vor.u32 1.1754944e-38, %v3120_v28  ;;  %3997 = vrcp.f32 %v6619_v46  ;;  %vm3159_vm14 = vweird.f32 %v6619_v46 }
 0x437   :  { %3999 = vpow2.f32 %v1554_v34 }
 0x438   :  { %v3122_v47 = vsel %vm3119_vm3, %v3121_v44, %v3117_v49  ;;  %4001 = vpow2.f32 %v1556_v42  ;;  %v1480_v44 = vand.u32 2147483647, %v6651_v43  ;;  %v7475_v49 = vld [vmem:[#allocation26_spill] sm:$0xff]  ;;  %vm1414_vm3 = vcmp.ne.f32.partialorder %v6592_v27, %v6592_v27 }
 0x439   :  { %v3123_v14 = vmul.f32 %v3122_v47, %v2737_v18  ;;  %v6665_v47 = vadd.f32 -10.0, %v7475_v49 }
 0x43c   :  { %3327 = vrot.lane.b32.xlu0 %v6057_v16, %s4114_s6  ;;  %v3314_v48 = vpop.permute.xlu1 %3313  ;;  %v3187_v16 = vmul.f32 %v3996_v21, %v3186_v12  ;;  %v3998_v53 = vpop.eup %3997 }
 0x43d   :  { %v3431_v22 = vsel %vm3419_vm6, %v3398_v56, %v3314_v48  ;;  %v3155_v60 = vmul.f32 %v3998_v53, %v6619_v46  ;;  %v4000_v51 = vpop.eup %3999  ;;  %vm3160_vm13 = vweird.f32 %v3998_v53  ;;  %v1512_v56 = vsub.f32 0.0, %v1480_v44 }
 0x43e   :  { %v3464_v24 = vsel %vm3452_vm9, %v3431_v22, 0.0  ;;  %v3188_v25 = vadd.f32 %v3996_v21, %v3187_v16  ;;  %v4002_v6 = vpop.eup %4001  ;;  %v1702_v32 = vadd.f32 1.0, %v4000_v51  ;;  %vm6660_vm15 = vmor %vm3159_vm14, %vm3160_vm13  ;;  %v1708_v30 = vand.u32 2147483647, %v4000_v51 }
 0x43f   :  { %3497 = vst.msk [vmem:[%s7230_s8 + $0x58] sm:$0xff] %vm3485_vm10, %v3464_v24  ;;  %v3156_v39 = vsub.f32 1.0, %v3155_v60  ;;  %v1711_v61 = vadd.f32 1.0, %v4002_v6  ;;  %v1717_v16 = vand.u32 2147483647, %v4002_v6 }
 0x440   :  { %4003 = vlog2.f32 %v1702_v32  ;;  %vm1709_vm1 = vcmp.lt.f32.partialorder %v1708_v30, 0.0004427343 }
 0x441   :  { %v3157_v28 = vmul.f32 %v3998_v53, %v3156_v39  ;;  %4005 = vlog2.f32 %v1711_v61  ;;  %v1382_v39 = vmax.f32 %v6592_v27, 0.0  ;;  %vm1718_vm2 = vcmp.lt.f32.partialorder %v1717_v16, 0.0004427343 }
 0x442   :  { %v1558_v61 = vmul.f32 1.442695, %v1512_v56  ;;  %v7482_v56 = vld [vmem:[#allocation40_spill] sm:$0xff] }
 0x443   :  { %v3158_v45 = vadd.f32 %v3998_v53, %v3157_v28  ;;  %v1514_v28 = vsub.f32 0.0, %v1482_v29 }
 0x444   :  { %3333 = vrot.lane.b32.xlu0 %v6572_v17, %s4114_s6  ;;  %v3192_v17 = vsel %vm3191_vm11, %v3996_v21, %v3188_v25  ;;  %v1714_v21 = vmul.f32 -0.5, %v4002_v6  ;;  %v2740_v25 = vsub.f32 %v6162_v35, %v6444_v33 }
 0x445   :  { %v3197_v26 = vsel %vm3194_vm12, %v3196_v62, %v3192_v17  ;;  %v3162_v1 = vsel %vm6660_vm15, %v3998_v53, %v3158_v45  ;;  %v1481_v53 = vand.u32 2147483647, %v6665_v47  ;;  %v7479_v45 = vld [vmem:[#allocation34_spill] sm:$0xff] }
 0x446   :  { %v1715_v22 = vadd.f32 1.0, %v1714_v21 }
 0x447   :  { %3323 = vrot.lane.b32.xlu2 %v5994_v58, %s4114_s6  ;;  %v2742_v58 = vsub.f32 %v6232_v9, %v6500_v37  ;;  %v3165_v9 = vand.u32 2147483648, %v6619_v46  ;;  %v4004_v37 = vpop.eup %4003 }
 0x448   :  { %v4006_v15 = vpop.eup %4005  ;;  %v1704_v54 = vmul.f32 0.6931472, %v4004_v37  ;;  %v1716_v32 = vmul.f32 %v4002_v6, %v1715_v22 }
 0x449   :  { %v3198_v23 = vmul.f32 %v3197_v26, %v2742_v58  ;;  %v3166_v12 = vor.u32 1.1754944e-38, %v3165_v9  ;;  %v1713_v60 = vmul.f32 0.6931472, %v4006_v15  ;;  %v1383_v26 = vmax.f32 %v6609_v8, 0.0  ;;  %v7480_v15 = vld [vmem:[#allocation36_spill] sm:$0xff] }
 0x44a   :  { %v1513_v58 = vsub.f32 0.0, %v1481_v53  ;;  %v6692_v9 = vadd.f32 -10.0, %v7479_v45  ;;  %v6703_v19 = vadd.f32 -10.0, %v7480_v15 }
 0x44b   :  { %v1719_v33 = vsel %vm1718_vm2, %v1716_v32, %v1713_v60 }
 0x44c   :  { %3339 = vrot.lane.b32.xlu0 %v6577_v52, %s4114_s6  ;;  %v1705_v52 = vmul.f32 -0.5, %v4000_v51  ;;  %v1895_v44 = vadd.f32 %v1719_v33, %v1383_v26  ;;  %v1485_v30 = vand.u32 2147483647, %v6692_v9 }
 0x44d   :  { %v6654_v40 = vpop.xlane.xlu0 %2608 }
 0x44e   :  { %v1706_v31 = vadd.f32 1.0, %v1705_v52  ;;  %v6689_v52 = vadd.f32 -10.0, %v7478_v13 }
 0x44f   :  { %3329 = vrot.lane.b32.xlu2 %v6159_v10, %s4114_s6  ;;  %v3163_v10 = vand.u32 2147483647, %v6619_v46  ;;  %v7477_v46 = vld [vmem:[#allocation30_spill] sm:$0xff] }
 0x450   :  { %v6674_v34 = vadd.f32 -10.0, %v7477_v46  ;;  %v1707_v42 = vmul.f32 %v4000_v51, %v1706_v31  ;;  %v1562_v31 = vmul.f32 1.442695, %v1514_v28 }
 0x451   :  { %vm3164_vm0 = vcmp.eq.f32.partialorder %v3163_v10, 8.507059e+37  ;;  %v1560_v10 = vmul.f32 1.442695, %v1513_v58 }
 0x452   :  { %v1483_v41 = vand.u32 2147483647, %v6674_v34  ;;  %v1710_v17 = vsel %vm1709_vm1, %v1707_v42, %v1704_v54  ;;  %v1927_v42 = vsel %vm1415_vm4, %v6609_v8, %v1895_v44 }
 0x453   :  { %v1894_v35 = vadd.f32 %v1710_v17, %v1382_v39  ;;  %v1486_v17 = vand.u32 2147483647, %v6703_v19  ;;  %v7484_v39 = vld [vmem:[#allocation29_spill] sm:$0xff] }
 0x454   :  { %3345 = vrot.lane.b32.xlu0 %v3198_v23, %s4114_s6  ;;  %v1515_v23 = vsub.f32 0.0, %v1483_v41 }
 0x455   :  { %v2708_v51 = vpop.xlane.xlu0 %2707  ;;  %v1926_v18 = vsel %vm1414_vm3, %v6592_v27, %v1894_v35  ;;  %v7483_v27 = vld [vmem:[#allocation27_spill] sm:$0xff]  ;;  %v1517_v35 = vsub.f32 0.0, %v1485_v30 }
 0x456   :  { %v1564_v49 = vmul.f32 1.442695, %v1515_v23  ;;  %v3399_v22 = vsel %vm1946_vm5, %v7483_v27, %v1926_v18  ;;  %v2743_v18 = vsub.f32 %v6312_v3, %v6654_v40 }
 0x457   :  { %3335 = vrot.lane.b32.xlu2 %v3123_v14, %s4114_s6  ;;  %v3167_v14 = vsel %vm3164_vm0, %v3166_v12, %v3162_v1  ;;  %v1484_v1 = vand.u32 2147483647, %v6689_v52  ;;  %v7481_v12 = vld [vmem:[#allocation38_spill] sm:$0xff]  ;;  %v1568_v3 = vmul.f32 1.442695, %v1517_v35 }
 0x458   :  { %v3168_v62 = vmul.f32 %v3167_v14, %v2740_v25  ;;  %v6708_v54 = vadd.f32 -10.0, %v7481_v12  ;;  %v1385_v12 = vmax.f32 %v6665_v47, 0.0 }
 0x459   :  { %v2705_v48 = vpop.xlane.xlu2 %2704  ;;  %v1516_v60 = vsub.f32 0.0, %v1484_v1 }
 0x45a   :  { %v6677_v24 = vsub.f32 %v2705_v48, %v6654_v40  ;;  %v6711_v48 = vadd.f32 -10.0, %v7482_v56  ;;  %v1487_v33 = vand.u32 2147483647, %v6708_v54 }
 0x45b   :  { %v1566_v30 = vmul.f32 1.442695, %v1516_v60 }
 0x45c   :  { %4007 = vrcp.f32 %v6677_v24  ;;  %v3210_v25 = vand.u32 2147483648, %v6677_v24  ;;  %v3208_v41 = vand.u32 2147483647, %v6677_v24  ;;  %vm3204_vm8 = vweird.f32 %v6677_v24 }
 0x45d   :  { %4009 = vpow2.f32 %v1558_v61  ;;  %v1488_v23 = vand.u32 2147483647, %v6711_v48  ;;  %v1519_v40 = vsub.f32 0.0, %v1487_v33 }
 0x45e   :  { %4011 = vpow2.f32 %v1564_v49  ;;  %v3211_v44 = vor.u32 1.1754944e-38, %v3210_v25  ;;  %vm3209_vm12 = vcmp.eq.f32.partialorder %v3208_v41, 8.507059e+37  ;;  %v7486_v25 = vld [vmem:[#allocation43_spill] sm:$0xff] }
 0x45f   :  { %3341 = vrot.lane.b32.xlu2 %v3168_v62, %s4114_s6  ;;  %v3400_v62 = vsel %vm1946_vm5, %v7484_v39, %v1927_v42  ;;  %v1520_v56 = vsub.f32 0.0, %v1488_v23  ;;  %v6761_v60 = vadd.f32 -10.0, %v7486_v25  ;;  %v1572_v41 = vmul.f32 1.442695, %v1519_v40 }
 0x461   :  { %v6694_v37 = vpop.xlane.xlu2 %2614  ;;  %v1574_v39 = vmul.f32 1.442695, %v1520_v56 }
 0x462   :  { %v4008_v6 = vpop.eup %4007 }
 0x463   :  { %v3200_v21 = vmul.f32 %v4008_v6, %v6677_v24  ;;  %vm3205_vm7 = vweird.f32 %v4008_v6  ;;  %v6730_v58 = vpop.eup %4009 }
 0x464   :  { %vm3206_vm11 = vmor %vm3204_vm8, %vm3205_vm7  ;;  %v1720_v1 = vadd.f32 1.0, %v6730_v58  ;;  %vm1416_vm8 = vcmp.ne.f32.partialorder %v6651_v43, %v6651_v43 }
 0x465   :  { %v3201_v46 = vsub.f32 1.0, %v3200_v21  ;;  %v7485_v21 = vld [vmem:[#allocation42_spill] sm:$0xff] }
 0x466   :  { %v6741_v24 = vadd.f32 -10.0, %v7485_v21  ;;  %v1490_v21 = vand.u32 2147483647, %v6761_v60 }
 0x467   :  { %v3202_v53 = vmul.f32 %v4008_v6, %v3201_v46  ;;  %v6725_v8 = vpop.xlane.xlu1 %2611  ;;  %v1384_v46 = vmax.f32 %v6651_v43, 0.0 }
 0x468   :  { %v3316_v14 = vpop.permute.xlu0 %3315  ;;  %v6734_v61 = vsub.f32 %v2708_v51, %v6725_v8  ;;  %v1518_v51 = vsub.f32 0.0, %v1486_v17  ;;  %v1489_v27 = vand.u32 2147483647, %v6741_v24  ;;  %v1522_v25 = vsub.f32 0.0, %v1490_v21 }
 0x469   :  { %v3432_v16 = vsel %vm3419_vm6, %v3399_v22, %v3316_v14  ;;  %v3318_v32 = vpop.permute.xlu2 %3317  ;;  %v3203_v26 = vadd.f32 %v4008_v6, %v3202_v53  ;;  %v1387_v14 = vmax.f32 %v6674_v34, 0.0 }
 0x46a   :  { %v3465_v29 = vsel %vm3452_vm9, %v3432_v16, 0.0  ;;  %v3433_v28 = vsel %vm3419_vm6, %v3400_v62, %v3318_v32  ;;  %4013 = vrcp.f32 %v6734_v61  ;;  %v1570_v42 = vmul.f32 1.442695, %v1518_v51  ;;  %v7487_v32 = vld [vmem:[#allocation47_spill] sm:$0xff] }
 0x46b   :  { %3498 = vst.msk [vmem:[%s7230_s8 + $0x60] sm:$0xff] %vm3485_vm10, %v3465_v29  ;;  %v3466_v13 = vsel %vm3452_vm9, %v3433_v28, 0.0  ;;  %v3207_v45 = vsel %vm3206_vm11, %v4008_v6, %v3203_v26  ;;  %v6751_v6 = vpop.eup %4011  ;;  %4015 = vpow2.f32 %v1560_v10  ;;  %v1388_v10 = vmax.f32 %v6689_v52, 0.0 }
 0x46c   :  { %3499 = vst.msk [vmem:[%s7230_s8 + $0x68] sm:$0xff] %vm3485_vm10, %v3466_v13  ;;  %v3212_v49 = vsel %vm3209_vm12, %v3211_v44, %v3207_v45  ;;  %4017 = vpow2.f32 %v1562_v31  ;;  %v1521_v62 = vsub.f32 0.0, %v1489_v27  ;;  %v6769_v26 = vadd.f32 -10.0, %v7487_v32 }
 0x46d   :  { %v3213_v15 = vmul.f32 %v3212_v49, %v2743_v18  ;;  %4019 = vlog2.f32 %v1720_v1  ;;  %v1723_v28 = vmul.f32 -0.5, %v6730_v58  ;;  %v1747_v23 = vadd.f32 1.0, %v6751_v6 }
 0x46e   :  { %4021 = vpow2.f32 %v1566_v30  ;;  %v1390_v45 = vmax.f32 %v6703_v19, 0.0  ;;  %v3225_v18 = vand.u32 2147483648, %v6734_v61  ;;  %v3223_v1 = vand.u32 2147483647, %v6734_v61 }
 0x46f   :  { %3347 = vrot.lane.b32.xlu2 %v3213_v15, %s4114_s6  ;;  %v2711_v16 = vpop.xlane.xlu1 %2710  ;;  %4023 = vpow2.f32 %v1568_v3  ;;  %v1576_v3 = vmul.f32 1.442695, %v1521_v62  ;;  %v1492_v40 = vand.u32 2147483647, %v6769_v26  ;;  %vm3219_vm14 = vweird.f32 %v6734_v61 }
 0x470   :  { %v4014_v53 = vpop.eup %4013  ;;  %v6764_v31 = vsub.f32 %v2711_v16, %v6694_v37  ;;  %v1726_v32 = vand.u32 2147483647, %v6730_v58  ;;  %vm3224_vm0 = vcmp.eq.f32.partialorder %v3223_v1, 8.507059e+37  ;;  %v1750_v29 = vmul.f32 -0.5, %v6751_v6 }
 0x471   :  { %v3215_v17 = vmul.f32 %v4014_v53, %v6734_v61  ;;  %v6772_v35 = vpop.eup %4015  ;;  %vm3220_vm13 = vweird.f32 %v4014_v53  ;;  %v7488_v61 = vld [vmem:[#allocation45_spill] sm:$0xff] }
 0x472   :  { %4025 = vrcp.f32 %v6764_v31  ;;  %v6776_v13 = vpop.eup %4017  ;;  %vm3221_vm15 = vmor %vm3219_vm14, %vm3220_vm13  ;;  %vm6806_vm1 = vcmp.lt.f32.partialorder %v1726_v32, 0.0004427343  ;;  %vm3234_vm3 = vweird.f32 %v6764_v31  ;;  %vm1419_vm13 = vcmp.ne.f32.partialorder %v6674_v34, %v6674_v34 }
 0x473   :  { %4027 = vpow2.f32 %v1570_v42  ;;  %v3216_v33 = vsub.f32 1.0, %v3215_v17  ;;  %v4020_v51 = vpop.eup %4019  ;;  %v1724_v42 = vadd.f32 1.0, %v1723_v28  ;;  %v6797_v28 = vadd.f32 -10.0, %v7488_v61 }
 0x474   :  { %4029 = vpow2.f32 %v1572_v41  ;;  %v6783_v30 = vpop.eup %4021  ;;  %v3226_v41 = vor.u32 1.1754944e-38, %v3225_v18  ;;  %v1722_v17 = vmul.f32 0.6931472, %v4020_v51  ;;  %v1751_v61 = vadd.f32 1.0, %v1750_v29 }
 0x475   :  { %v3217_v49 = vmul.f32 %v4014_v53, %v3216_v33  ;;  %4031 = vpow2.f32 %v1574_v39  ;;  %v6787_v56 = vpop.eup %4023  ;;  %v2744_v39 = vsub.f32 %v6343_v38, %v6725_v8  ;;  %v1725_v44 = vmul.f32 %v6730_v58, %v1724_v42 }
 0x476   :  { %4033 = vlog2.f32 %v1747_v23  ;;  %v1524_v23 = vsub.f32 0.0, %v1492_v40  ;;  %v1578_v38 = vmul.f32 1.442695, %v1522_v25  ;;  %v3240_v8 = vand.u32 2147483648, %v6764_v31 }
 0x477   :  { %v3218_v27 = vadd.f32 %v4014_v53, %v3217_v49  ;;  %4035 = vpow2.f32 %v1576_v3  ;;  %v3238_v58 = vand.u32 2147483647, %v6764_v31  ;;  %v1491_v42 = vand.u32 2147483647, %v6797_v28 }
 0x478   :  { %v4026_v16 = vpop.eup %4025  ;;  %v1582_v25 = vmul.f32 1.442695, %v1524_v23  ;;  %v2745_v23 = vsub.f32 %v6386_v63, %v6694_v37  ;;  %v1396_v37 = vmax.f32 %v6769_v26, 0.0 }
 0x479   :  { %v6791_v33 = vpop.eup %4027  ;;  %v3222_v62 = vsel %vm3221_vm15, %v4014_v53, %v3218_v27  ;;  %v3230_v49 = vmul.f32 %v4026_v16, %v6764_v31  ;;  %vm3235_vm2 = vweird.f32 %v4026_v16  ;;  %v1728_v27 = vsel %vm6806_vm1, %v1725_v44, %v1722_v17 }
 0x47a   :  { %v3227_v21 = vsel %vm3224_vm0, %v3226_v41, %v3222_v62  ;;  %v6799_v15 = vpop.eup %4029  ;;  %v1774_v1 = vadd.f32 1.0, %v6791_v33  ;;  %v7491_v41 = vld [vmem:[#allocation48_spill] sm:$0xff]  ;;  %vm3236_vm4 = vmor %vm3234_vm3, %vm3235_vm2  ;;  %v1896_v44 = vadd.f32 %v1728_v27, %v1384_v46  ;;  %vm3239_vm7 = vcmp.eq.f32.partialorder %v3238_v58, 8.507059e+37 }
 0x47b   :  { %v3228_v18 = vmul.f32 %v3227_v21, %v2744_v39  ;;  %v3231_v51 = vsub.f32 1.0, %v3230_v49  ;;  %v6803_v22 = vpop.eup %4031  ;;  %v6817_v32 = vadd.f32 -10.0, %v7491_v41  ;;  %v7492_v39 = vld [vmem:[#allocation49_spill] sm:$0xff]  ;;  %v1753_v21 = vand.u32 2147483647, %v6751_v6 }
 0x47c   :  { %v4034_v3 = vpop.eup %4033  ;;  %v6820_v62 = vadd.f32 -10.0, %v7492_v39  ;;  %4037 = vlog2.f32 %v1774_v1  ;;  %v1523_v31 = vsub.f32 0.0, %v1491_v42  ;;  %v1729_v41 = vadd.f32 1.0, %v6772_v35 }
 0x47d   :  { %3349 = vrot.lane.b32.xlu1 %v3228_v18, %s4114_s6  ;;  %v3232_v40 = vmul.f32 %v4026_v16, %v3231_v51  ;;  %v6824_v18 = vpop.eup %4035  ;;  %v3241_v51 = vor.u32 1.1754944e-38, %v3240_v8  ;;  %v1749_v17 = vmul.f32 0.6931472, %v4034_v3  ;;  %4039 = vpow2.f32 %v1582_v25 }
 0x47e   :  { %v1493_v39 = vand.u32 2147483647, %v6817_v32  ;;  %v1752_v46 = vmul.f32 %v6751_v6, %v1751_v61  ;;  %v1494_v1 = vand.u32 2147483647, %v6820_v62  ;;  %v1928_v63 = vsel %vm1416_vm8, %v6651_v43, %v1896_v44 }
 0x47f   :  { %v3233_v49 = vadd.f32 %v4026_v16, %v3232_v40  ;;  %v1777_v40 = vmul.f32 -0.5, %v6791_v33  ;;  %vm6838_vm11 = vcmp.lt.f32.partialorder %v1753_v21, 0.0004427343  ;;  %v1393_v3 = vmax.f32 %v6741_v24, 0.0 }
 0x480   :  { %v1394_v58 = vmax.f32 %v6761_v60, 0.0  ;;  %v1755_v27 = vsel %vm6838_vm11, %v1752_v46, %v1749_v17  ;;  %v1780_v25 = vand.u32 2147483647, %v6791_v33  ;;  %4041 = vlog2.f32 %v1729_v41 }
 0x481   :  { %v3237_v53 = vsel %vm3236_vm4, %v4026_v16, %v3233_v49  ;;  %v1801_v16 = vadd.f32 1.0, %v6824_v18  ;;  %v1778_v6 = vadd.f32 1.0, %v1777_v40  ;;  %v1732_v43 = vmul.f32 -0.5, %v6772_v35 }
 0x482   :  { %v3242_v29 = vsel %vm3239_vm7, %v3241_v51, %v3237_v53  ;;  %v4038_v42 = vpop.eup %4037  ;;  %v1756_v49 = vadd.f32 1.0, %v6783_v30  ;;  %4043 = vpow2.f32 %v1578_v38  ;;  %v1580_v61 = vmul.f32 1.442695, %v1523_v31  ;;  %v7495_v51 = vld [vmem:[#allocation31_spill] sm:$0xff] }
 0x483   :  { %v3243_v8 = vmul.f32 %v3242_v29, %v2745_v23  ;;  %v1525_v21 = vsub.f32 0.0, %v1493_v39  ;;  %v3401_v44 = vsel %vm1946_vm5, %v7495_v51, %v1928_v63  ;;  %v6853_v53 = vpop.eup %4039  ;;  %v1526_v29 = vsub.f32 0.0, %v1494_v1 }
 0x484   :  { %v1899_v40 = vadd.f32 %v1755_v27, %v1387_v14  ;;  %4045 = vlog2.f32 %v1801_v16  ;;  %v1779_v38 = vmul.f32 %v6791_v33, %v1778_v6  ;;  %v1804_v31 = vmul.f32 -0.5, %v6824_v18 }
 0x485   :  { %3351 = vrot.lane.b32.xlu0 %v3243_v8, %s4114_s6  ;;  %v1776_v8 = vmul.f32 0.6931472, %v4038_v42  ;;  %vm6865_vm12 = vcmp.lt.f32.partialorder %v1780_v25, 0.0004427343  ;;  %v1733_v46 = vadd.f32 1.0, %v1732_v43  ;;  %4047 = vlog2.f32 %v1756_v49 }
 0x486   :  { %v1738_v14 = vadd.f32 1.0, %v6776_v13  ;;  %4049 = vpow2.f32 %v1580_v61  ;;  %v1759_v33 = vmul.f32 -0.5, %v6783_v30  ;;  %v1765_v1 = vadd.f32 1.0, %v6787_v56  ;;  %v4042_v63 = vpop.eup %4041 }
 0x487   :  { %v3320_v23 = vpop.permute.xlu1 %3319  ;;  %v1584_v16 = vmul.f32 1.442695, %v1525_v21  ;;  %v1931_v27 = vsel %vm1419_vm13, %v6674_v34, %v1899_v40  ;;  %v1828_v6 = vadd.f32 1.0, %v6853_v53  ;;  %v6879_v25 = vmul.f32 1.442695, %v1526_v29  ;;  %v7498_v34 = vld [vmem:[#allocation37_spill] sm:$0xff] }
 0x488   :  { %v3434_v17 = vsel %vm3419_vm6, %v3401_v44, %v3320_v23  ;;  %v6877_v42 = vpop.eup %4043  ;;  %v1782_v43 = vsel %vm6865_vm12, %v1779_v38, %v1776_v8  ;;  %v1805_v49 = vadd.f32 1.0, %v1804_v31  ;;  %v1735_v61 = vand.u32 2147483647, %v6772_v35 }
 0x489   :  { %v3467_v41 = vsel %vm3452_vm9, %v3434_v17, 0.0  ;;  %v1807_v44 = vand.u32 2147483647, %v6824_v18  ;;  %v1734_v23 = vmul.f32 %v6772_v35, %v1733_v46  ;;  %v1762_v21 = vand.u32 2147483647, %v6783_v30 }
 0x48a   :  { %3500 = vst.msk [vmem:[%s7230_s8 + $0x70] sm:$0xff] %vm3485_vm10, %v3467_v41  ;;  %v4046_v51 = vpop.eup %4045  ;;  %4051 = vlog2.f32 %v1738_v14  ;;  %v3404_v17 = vsel %vm1946_vm5, %v7498_v34, %v1931_v27  ;;  %v1731_v29 = vmul.f32 0.6931472, %v4042_v63  ;;  %v1760_v41 = vadd.f32 1.0, %v1759_v33 }
 0x48b   :  { %4053 = vlog2.f32 %v1765_v1  ;;  %v4048_v39 = vpop.eup %4047  ;;  %v1902_v38 = vadd.f32 %v1782_v43, %v1390_v45  ;;  %v1783_v31 = vadd.f32 1.0, %v6799_v15  ;;  %v1803_v14 = vmul.f32 0.6931472, %v4046_v51 }
 0x48c   :  { %4055 = vlog2.f32 %v1828_v6  ;;  %v6893_v35 = vpop.eup %4049  ;;  %v1806_v27 = vmul.f32 %v6824_v18, %v1805_v49  ;;  %v1831_v63 = vmul.f32 -0.5, %v6853_v53  ;;  %vm6902_vm14 = vcmp.lt.f32.partialorder %v1807_v44, 0.0004427343 }
 0x48d   :  { %4057 = vpow2.f32 %v1584_v16  ;;  %vm6906_vm15 = vcmp.lt.f32.partialorder %v1735_v61, 0.0004427343  ;;  %v1741_v1 = vmul.f32 -0.5, %v6776_v13  ;;  %vm1422_vm0 = vcmp.ne.f32.partialorder %v6703_v19, %v6703_v19 }
 0x48e   :  { %v1737_v18 = vsel %vm6906_vm15, %v1734_v23, %v1731_v29  ;;  %v1758_v16 = vmul.f32 0.6931472, %v4048_v39  ;;  %v1768_v6 = vmul.f32 -0.5, %v6787_v56  ;;  %v1934_v49 = vsel %vm1422_vm0, %v6703_v19, %v1902_v38  ;;  %v7505_v38 = vld [vmem:[#allocation44_spill] sm:$0xff] }
 0x48f   :  { %v3326_v40 = vpop.permute.xlu1 %3325  ;;  %vm6920_vm1 = vcmp.lt.f32.partialorder %v1762_v21, 0.0004427343  ;;  %4059 = vlog2.f32 %v1783_v31  ;;  %v1786_v51 = vmul.f32 -0.5, %v6799_v15  ;;  %v1809_v23 = vsel %vm6902_vm14, %v1806_v27, %v1803_v14 }
 0x490   :  { %v3437_v8 = vsel %vm3419_vm6, %v3404_v17, %v3326_v40  ;;  %v4052_v43 = vpop.eup %4051  ;;  %v1832_v34 = vadd.f32 1.0, %v1831_v63  ;;  %v1761_v17 = vmul.f32 %v6783_v30, %v1760_v41  ;;  %v1744_v40 = vand.u32 2147483647, %v6776_v13 }
 0x491   :  { %v3470_v46 = vsel %vm3452_vm9, %v3437_v8, 0.0  ;;  %v4054_v44 = vpop.eup %4053  ;;  %v1897_v21 = vadd.f32 %v1737_v18, %v1385_v12  ;;  %v1834_v29 = vand.u32 2147483647, %v6853_v53  ;;  %v1742_v39 = vadd.f32 1.0, %v1741_v1 }
 0x492   :  { %3503 = vst.msk [vmem:[%s7230_s8 + $0x88] sm:$0xff] %vm3485_vm10, %v3470_v46  ;;  %v4056_v19 = vpop.eup %4055  ;;  %v1771_v8 = vand.u32 2147483647, %v6787_v56  ;;  %v3407_v31 = vsel %vm1946_vm5, %v7505_v38, %v1934_v49  ;;  %v1764_v14 = vsel %vm6920_vm1, %v1761_v17, %v1758_v16  ;;  %v1740_v30 = vmul.f32 0.6931472, %v4052_v43  ;;  %v7514_v38 = vld [vmem:[#allocation33_spill] sm:$0xff] }
 0x493   :  { %v1769_v41 = vadd.f32 1.0, %v1768_v6  ;;  %v6937_v27 = vpop.eup %4057  ;;  %v1905_v63 = vadd.f32 %v1809_v23, %v1393_v3  ;;  %v1787_v45 = vadd.f32 1.0, %v1786_v51  ;;  %v1767_v33 = vmul.f32 0.6931472, %v4054_v44  ;;  %v6945_v43 = vpop.xlane.xlu0 %2617 }
 0x494   :  { %v1830_v18 = vmul.f32 0.6931472, %v4056_v19  ;;  %v1833_v49 = vmul.f32 %v6853_v53, %v1832_v34  ;;  %v1792_v16 = vadd.f32 1.0, %v6803_v22  ;;  %vm1417_vm2 = vcmp.ne.f32.partialorder %v6665_v47, %v6665_v47 }
 0x495   :  { %v4060_v6 = vpop.eup %4059  ;;  %vm6953_vm3 = vcmp.lt.f32.partialorder %v1834_v29, 0.0004427343  ;;  %v1743_v61 = vmul.f32 %v6776_v13, %v1742_v39  ;;  %v1789_v53 = vand.u32 2147483647, %v6799_v15  ;;  %vm1425_vm4 = vcmp.ne.f32.partialorder %v6741_v24, %v6741_v24 }
 0x496   :  { %v1929_v51 = vsel %vm1417_vm2, %v6665_v47, %v1897_v21  ;;  %v1900_v44 = vadd.f32 %v1764_v14, %v1388_v10  ;;  %vm6964_vm7 = vcmp.lt.f32.partialorder %v1744_v40, 0.0004427343  ;;  %v1937_v34 = vsel %vm1425_vm4, %v6741_v24, %v1905_v63 }
 0x497   :  { %v3332_v46 = vpop.permute.xlu1 %3331  ;;  %v1746_v17 = vsel %vm6964_vm7, %v1743_v61, %v1740_v30  ;;  %v1770_v13 = vmul.f32 %v6787_v56, %v1769_v41  ;;  %vm6972_vm8 = vcmp.lt.f32.partialorder %v1771_v8, 0.0004427343  ;;  %v1836_v47 = vsel %vm6953_vm3, %v1833_v49, %v1830_v18 }
 0x498   :  { %v3440_v12 = vsel %vm3419_vm6, %v3407_v31, %v3332_v46  ;;  %v1785_v21 = vmul.f32 0.6931472, %v4060_v6  ;;  %v1788_v10 = vmul.f32 %v6799_v15, %v1787_v45  ;;  %4061 = vlog2.f32 %v1792_v16 }
 0x499   :  { %v3473_v1 = vsel %vm3452_vm9, %v3440_v12, 0.0  ;;  %vm6979_vm11 = vcmp.lt.f32.partialorder %v1789_v53, 0.0004427343  ;;  %v1773_v24 = vsel %vm6972_vm8, %v1770_v13, %v1767_v33  ;;  %v1810_v56 = vadd.f32 1.0, %v6877_v42 }
 0x49a   :  { %3506 = vst.msk [vmem:[%s7230_s8 + $0xa0] sm:$0xff] %vm3485_vm10, %v3473_v1  ;;  %v1795_v29 = vmul.f32 -0.5, %v6803_v22  ;;  %4063 = vpow2.f32 %v6879_v25  ;;  %v3410_v39 = vsel %vm1946_vm5, %v5037_v59, %v1937_v34  ;;  %v3402_v15 = vsel %vm1946_vm5, %v7514_v38, %v1929_v51  ;;  %v7517_v51 = vld [vmem:[#allocation39_spill] sm:$0xff] }
 0x49b   :  { %vm1420_vm12 = vcmp.ne.f32.partialorder %v6689_v52, %v6689_v52  ;;  %v1908_v46 = vadd.f32 %v1836_v47, %v1396_v37  ;;  %v7515_v25 = vmax.f32 %v6671_v36, 0.0  ;;  %v1791_v63 = vsel %vm6979_vm11, %v1788_v10, %v1785_v21 }
 0x49c   :  { %v1932_v30 = vsel %vm1420_vm12, %v6689_v52, %v1900_v44  ;;  %v7516_v45 = vmax.f32 %v6692_v9, 0.0  ;;  %4065 = vlog2.f32 %v1810_v56  ;;  %v1813_v37 = vmul.f32 -0.5, %v6877_v42 }
 0x49d   :  { %v1898_v41 = vadd.f32 %v1746_v17, %v7515_v25  ;;  %v1796_v1 = vadd.f32 1.0, %v1795_v29  ;;  %v1819_v18 = vadd.f32 1.0, %v6893_v35  ;;  %vm1428_vm13 = vcmp.ne.f32.partialorder %v6769_v26, %v6769_v26  ;;  %v7521_v29 = vld [vmem:[#allocation35_spill] sm:$0xff] }
 0x49e   :  { %v1901_v33 = vadd.f32 %v1773_v24, %v7516_v45  ;;  %v4062_v49 = vpop.eup %4061  ;;  %v1798_v6 = vand.u32 2147483647, %v6803_v22  ;;  %v1940_v61 = vsel %vm1428_vm13, %v6769_v26, %v1908_v46  ;;  %vm1418_vm14 = vcmp.ne.f32.partialorder %v6671_v36, %v6671_v36  ;;  %v7522_v46 = vld [vmem:[#allocation41_spill] sm:$0xff] }
 0x49f   :  { %v3338_v8 = vpop.permute.xlu1 %3337  ;;  %vm1421_vm15 = vcmp.ne.f32.partialorder %v6692_v9, %v6692_v9  ;;  %v3405_v44 = vsel %vm1946_vm5, %v7517_v51, %v1932_v30  ;;  %v1930_v23 = vsel %vm1418_vm14, %v6671_v36, %v1898_v41  ;;  %v7518_v26 = vmax.f32 %v6708_v54, 0.0 }
 0x4a0   :  { %v3443_v31 = vsel %vm3419_vm6, %v3410_v39, %v3338_v8  ;;  %v7025_v53 = vpop.eup %4063  ;;  %v1933_v17 = vsel %vm1421_vm15, %v6692_v9, %v1901_v33  ;;  %v1814_v13 = vadd.f32 1.0, %v1813_v37  ;;  %v1794_v19 = vmul.f32 0.6931472, %v4062_v49  ;;  %v7525_v49 = vld [vmem:[#allocation46_spill] sm:$0xff] }
 0x4a1   :  { %v3476_v59 = vsel %vm3452_vm9, %v3443_v31, 0.0  ;;  %v1903_v34 = vadd.f32 %v1791_v63, %v7518_v26  ;;  %v1797_v47 = vmul.f32 %v6803_v22, %v1796_v1  ;;  %v3413_v21 = vsel %vm1946_vm5, %v7425_v7, %v1940_v61 }
 0x4a2   :  { %v2714_v14 = vpop.xlane.xlu2 %2713  ;;  %3509 = vst.msk [vmem:[%s7230_s8 + $0xb8] sm:$0xff] %vm3485_vm10, %v3476_v59  ;;  %vm7040_vm0 = vcmp.lt.f32.partialorder %v1798_v6, 0.0004427343  ;;  %v1837_v36 = vadd.f32 1.0, %v6937_v27  ;;  %v1822_v24 = vmul.f32 -0.5, %v6893_v35  ;;  %v4066_v56 = vpop.eup %4065  ;;  %v3403_v39 = vsel %vm1946_vm5, %v7521_v29, %v1930_v23 }
 0x4a3   :  { %v7002_v12 = vsub.f32 %v2714_v14, %v6945_v43  ;;  %vm1423_vm1 = vcmp.ne.f32.partialorder %v6708_v54, %v6708_v54  ;;  %v1816_v7 = vand.u32 2147483647, %v6877_v42  ;;  %v3406_v14 = vsel %vm1946_vm5, %v7522_v46, %v1933_v17 }
 0x4a4   :  { %v1935_v31 = vsel %vm1423_vm1, %v6708_v54, %v1903_v34  ;;  %v1815_v59 = vmul.f32 %v6877_v42, %v1814_v13  ;;  %v1800_v63 = vsel %vm7040_vm0, %v1797_v47, %v1794_v19  ;;  %v1812_v45 = vmul.f32 0.6931472, %v4066_v56 }
 0x4a5   :  { %4067 = vrcp.f32 %v7002_v12  ;;  %v1823_v33 = vadd.f32 1.0, %v1822_v24  ;;  %vm7072_vm2 = vcmp.lt.f32.partialorder %v1816_v7, 0.0004427343  ;;  %v1840_v42 = vmul.f32 -0.5, %v6937_v27 }
 0x4a6   :  { %v3322_v52 = vpop.permute.xlu0 %3321  ;;  %4069 = vlog2.f32 %v1819_v18  ;;  %v3255_v6 = vand.u32 2147483648, %v7002_v12  ;;  %vm1424_vm3 = vcmp.ne.f32.partialorder %v6711_v48, %v6711_v48  ;;  %v3253_v51 = vand.u32 2147483647, %v7002_v12 }
 0x4a7   :  { %v3435_v16 = vsel %vm3419_vm6, %v3402_v15, %v3322_v52  ;;  %v3344_v10 = vpop.permute.xlu1 %3343  ;;  %4071 = vlog2.f32 %v1837_v36  ;;  %v1818_v26 = vsel %vm7072_vm2, %v1815_v59, %v1812_v45  ;;  %v1824_v17 = vmul.f32 %v6893_v35, %v1823_v33 }
 0x4a8   :  { %v3468_v3 = vsel %vm3452_vm9, %v3435_v16, 0.0  ;;  %v3446_v9 = vsel %vm3419_vm6, %v3413_v21, %v3344_v10  ;;  %v3408_v16 = vsel %vm1946_vm5, %v7525_v49, %v1935_v31  ;;  %v1825_v13 = vand.u32 2147483647, %v6893_v35 }
 0x4a9   :  { %3501 = vst.msk [vmem:[%s7230_s8 + $0x78] sm:$0xff] %vm3485_vm10, %v3468_v3  ;;  %v3479_v38 = vsel %vm3452_vm9, %v3446_v9, 0.0  ;;  %v1846_v3 = vadd.f32 1.0, %v7025_v53  ;;  %vm3249_vm7 = vweird.f32 %v7002_v12  ;;  %v1841_v21 = vadd.f32 1.0, %v1840_v42  ;;  %v7531_v42 = vld [vmem:[#allocation50_spill] sm:$0xff] }
 0x4aa   :  { %v3324_v22 = vpop.permute.xlu2 %3323  ;;  %3512 = vst.msk [vmem:[%s7230_s8 + $0xd0] sm:$0xff] %vm3485_vm10, %v3479_v38  ;;  %v1843_v10 = vand.u32 2147483647, %v6937_v27  ;;  %v3256_v24 = vor.u32 1.1754944e-38, %v3255_v6  ;;  %v1849_v56 = vmul.f32 -0.5, %v7025_v53  ;;  %v2746_v9 = vsub.f32 %v6503_v50, %v6945_v43 }
 0x4ab   :  { %v4068_v8 = vpop.eup %4067  ;;  %v3436_v15 = vsel %vm3419_vm6, %v3403_v39, %v3324_v22  ;;  %4073 = vlog2.f32 %v1846_v3  ;;  %vm3254_vm11 = vcmp.eq.f32.partialorder %v3253_v51, 8.507059e+37  ;;  %v1906_v22 = vadd.f32 %v1818_v26, %v1394_v58 }
 0x4ac   :  { %v3245_v30 = vmul.f32 %v4068_v8, %v7002_v12  ;;  %v3469_v41 = vsel %vm3452_vm9, %v3436_v15, 0.0  ;;  %v4070_v52 = vpop.eup %4069  ;;  %vm3250_vm4 = vweird.f32 %v4068_v8  ;;  %vm7108_vm12 = vcmp.lt.f32.partialorder %v1825_v13, 0.0004427343 }
 0x4ad   :  { %3502 = vst.msk [vmem:[%s7230_s8 + $0x80] sm:$0xff] %vm3485_vm10, %v3469_v41  ;;  %v1821_v34 = vmul.f32 0.6931472, %v4070_v52  ;;  %v4072_v40 = vpop.eup %4071  ;;  %vm3251_vm8 = vmor %vm3249_vm7, %vm3250_vm4  ;;  %v1842_v15 = vmul.f32 %v6937_v27, %v1841_v21  ;;  %vm7122_vm13 = vcmp.lt.f32.partialorder %v1843_v10, 0.0004427343  ;;  %vm1426_vm14 = vcmp.ne.f32.partialorder %v6761_v60, %v6761_v60 }
 0x4ae   :  { %v3328_v25 = vpop.permute.xlu0 %3327  ;;  %v3246_v37 = vsub.f32 1.0, %v3245_v30  ;;  %v1850_v46 = vadd.f32 1.0, %v1849_v56  ;;  %v1395_v30 = vmax.f32 %v6797_v28, 0.0  ;;  %vm1427_vm0 = vcmp.ne.f32.partialorder %v6797_v28, %v6797_v28 }
 0x4af   :  { %v3438_v54 = vsel %vm3419_vm6, %v3405_v44, %v3328_v25  ;;  %v7526_v44 = vmax.f32 %v6711_v48, 0.0  ;;  %v1827_v27 = vsel %vm7108_vm12, %v1824_v17, %v1821_v34  ;;  %v1938_v25 = vsel %vm1426_vm14, %v6761_v60, %v1906_v22 }
 0x4b0   :  { %v3471_v1 = vsel %vm3452_vm9, %v3438_v54, 0.0  ;;  %v3247_v61 = vmul.f32 %v4068_v8, %v3246_v37  ;;  %v1397_v54 = vmax.f32 %v6817_v32, 0.0  ;;  %v1907_v33 = vadd.f32 %v1827_v27, %v1395_v30 }
 0x4b1   :  { %3504 = vst.msk [vmem:[%s7230_s8 + $0x90] sm:$0xff] %vm3485_vm10, %v3471_v1  ;;  %v1904_v23 = vadd.f32 %v1800_v63, %v7526_v44  ;;  %v3411_v52 = vsel %vm1946_vm5, %v5085_v0, %v1938_v25  ;;  %v1851_v18 = vmul.f32 %v7025_v53, %v1850_v46  ;;  %vm1429_vm1 = vcmp.ne.f32.partialorder %v6817_v32, %v6817_v32 }
 0x4b2   :  { %v3330_v19 = vpop.permute.xlu2 %3329  ;;  %v3248_v47 = vadd.f32 %v4068_v8, %v3247_v61  ;;  %v1398_v3 = vmax.f32 %v6820_v62, 0.0  ;;  %vm1430_vm2 = vcmp.ne.f32.partialorder %v6820_v62, %v6820_v62 }
 0x4b3   :  { %v3439_v36 = vsel %vm3419_vm6, %v3406_v14, %v3330_v19  ;;  %v1936_v58 = vsel %vm1424_vm3, %v6711_v48, %v1904_v23  ;;  %v4074_v14 = vpop.eup %4073  ;;  %v1852_v48 = vand.u32 2147483647, %v7025_v53  ;;  %v1939_v53 = vsel %vm1427_vm0, %v6797_v28, %v1907_v33 }
 0x4b4   :  { %v3472_v35 = vsel %vm3452_vm9, %v3439_v36, 0.0  ;;  %v3252_v39 = vsel %vm3251_vm8, %v4068_v8, %v3248_v47  ;;  %v1839_v8 = vmul.f32 0.6931472, %v4072_v40  ;;  %v3409_v41 = vsel %vm1946_vm5, %v4985_v55, %v1936_v58  ;;  %v7532_v47 = vld [vmem:[#allocation52_spill] sm:$0xff] }
 0x4b5   :  { %3505 = vst.msk [vmem:[%s7230_s8 + $0x98] sm:$0xff] %vm3485_vm10, %v3472_v35  ;;  %v3257_v7 = vsel %vm3254_vm11, %v3256_v24, %v3252_v39  ;;  %v1848_v1 = vmul.f32 0.6931472, %v4074_v14  ;;  %v7145_v55 = vadd.f32 -10.0, %v7531_v42  ;;  %vm1853_vm15 = vcmp.lt.f32.partialorder %v1852_v48, 0.0004427343 }
 0x4b6   :  { %v3334_v29 = vpop.permute.xlu0 %3333  ;;  %v3258_v43 = vmul.f32 %v3257_v7, %v2746_v9  ;;  %v1845_v63 = vsel %vm7122_vm13, %v1842_v15, %v1839_v8  ;;  %v3412_v44 = vsel %vm1946_vm5, %v7420_v20, %v1939_v53  ;;  %v3666_v21 = vadd.f32 -10.0, %v7532_v47 }
 0x4b7   :  { %v3441_v12 = vsel %vm3419_vm6, %v3408_v16, %v3334_v29  ;;  %v1909_v16 = vadd.f32 %v1845_v63, %v1397_v54  ;;  %v1854_v6 = vsel %vm1853_vm15, %v1851_v18, %v1848_v1  ;;  %v1495_v61 = vand.u32 2147483647, %v7145_v55 }
 0x4b8   :  { %v3474_v50 = vsel %vm3452_vm9, %v3441_v12, 0.0  ;;  %3353 = vrot.lane.b32.xlu2 %v3258_v43, %s4114_s6  ;;  %v1910_v34 = vadd.f32 %v1854_v6, %v1398_v3  ;;  %v1496_v40 = vand.u32 2147483647, %v3666_v21  ;;  %v1399_v48 = vmax.f32 %v7145_v55, 0.0 }
 0x4b9   :  { %3507 = vst.msk [vmem:[%s7230_s8 + $0xa8] sm:$0xff] %vm3485_vm10, %v3474_v50  ;;  %v1941_v51 = vsel %vm1429_vm1, %v6817_v32, %v1909_v16  ;;  %v1527_v19 = vsub.f32 0.0, %v1495_v61  ;;  %vm1431_vm7 = vcmp.ne.f32.partialorder %v7145_v55, %v7145_v55  ;;  %v1400_v33 = vmax.f32 %v3666_v21, 0.0 }
 0x4ba   :  { %v3336_v59 = vpop.permute.xlu2 %3335  ;;  %v3414_v28 = vsel %vm1946_vm5, %v7428_v2, %v1941_v51  ;;  %v1942_v2 = vsel %vm1430_vm2, %v6820_v62, %v1910_v34  ;;  %v1528_v29 = vsub.f32 0.0, %v1496_v40  ;;  %vm1432_vm8 = vcmp.ne.f32.partialorder %v3666_v21, %v3666_v21 }
 0x4bb   :  { %v3442_v45 = vsel %vm3419_vm6, %v3409_v41, %v3336_v59  ;;  %v1588_v32 = vmul.f32 1.442695, %v1527_v19  ;;  %v3415_v36 = vsel %vm1946_vm5, %v7438_v4, %v1942_v2  ;;  %v7533_v4 = vld [vmem:[#allocation53_spill] sm:$0xff] }
 0x4bc   :  { %v3475_v60 = vsel %vm3452_vm9, %v3442_v45, 0.0  ;;  %v1590_v35 = vmul.f32 1.442695, %v1528_v29  ;;  %v3667_v7 = vadd.f32 -10.0, %v7533_v4 }
 0x4bd   :  { %3508 = vst.msk [vmem:[%s7230_s8 + $0xb0] sm:$0xff] %vm3485_vm10, %v3475_v60  ;;  %4075 = vpow2.f32 %v1588_v32 }
 0x4be   :  { %v3340_v37 = vpop.permute.xlu0 %3339  ;;  %4077 = vpow2.f32 %v1590_v35  ;;  %v1497_v15 = vand.u32 2147483647, %v3667_v7  ;;  %vm1433_vm12 = vcmp.ne.f32.partialorder %v3667_v7, %v3667_v7 }
 0x4bf   :  { %v3444_v49 = vsel %vm3419_vm6, %v3411_v52, %v3340_v37 }
 0x4c0   :  { %v3477_v0 = vsel %vm3452_vm9, %v3444_v49, 0.0  ;;  %v1529_v46 = vsub.f32 0.0, %v1497_v15 }
 0x4c1   :  { %3510 = vst.msk [vmem:[%s7230_s8 + $0xc0] sm:$0xff] %vm3485_vm10, %v3477_v0 }
 0x4c2   :  { %v3342_v23 = vpop.permute.xlu2 %3341  ;;  %v1592_v59 = vmul.f32 1.442695, %v1529_v46 }
 0x4c3   :  { %v3445_v26 = vsel %vm3419_vm6, %v3412_v44, %v3342_v23  ;;  %v4076_v39 = vpop.eup %4075 }
 0x4c4   :  { %v3478_v13 = vsel %vm3452_vm9, %v3445_v26, 0.0  ;;  %v1855_v62 = vadd.f32 1.0, %v4076_v39  ;;  %v4078_v12 = vpop.eup %4077  ;;  %v1858_v22 = vmul.f32 -0.5, %v4076_v39  ;;  %v1861_v8 = vand.u32 2147483647, %v4076_v39 }
 0x4c5   :  { %3511 = vst.msk [vmem:[%s7230_s8 + $0xc8] sm:$0xff] %vm3485_vm10, %v3478_v13  ;;  %v1864_v38 = vadd.f32 1.0, %v4078_v12  ;;  %v1867_v27 = vmul.f32 -0.5, %v4078_v12  ;;  %v1870_v41 = vand.u32 2147483647, %v4078_v12 }
 0x4c6   :  { %v3346_v17 = vpop.permute.xlu0 %3345  ;;  %4079 = vlog2.f32 %v1855_v62  ;;  %v1859_v50 = vadd.f32 1.0, %v1858_v22  ;;  %vm1862_vm3 = vcmp.lt.f32.partialorder %v1861_v8, 0.0004427343 }
 0x4c7   :  { %v3447_v10 = vsel %vm3419_vm6, %v3414_v28, %v3346_v17  ;;  %4081 = vlog2.f32 %v1864_v38  ;;  %v1868_v30 = vadd.f32 1.0, %v1867_v27  ;;  %vm1871_vm4 = vcmp.lt.f32.partialorder %v1870_v41, 0.0004427343 }
 0x4c8   :  { %v3480_v20 = vsel %vm3452_vm9, %v3447_v10, 0.0  ;;  %v1860_v31 = vmul.f32 %v4076_v39, %v1859_v50  ;;  %4083 = vpow2.f32 %v1592_v59  ;;  %v1401_v28 = vmax.f32 %v3667_v7, 0.0 }
 0x4c9   :  { %3513 = vst.msk [vmem:[%s7230_s8 + $0xd8] sm:$0xff] %vm3485_vm10, %v3480_v20  ;;  %v1869_v45 = vmul.f32 %v4078_v12, %v1868_v30 }
 0x4ca   :  { %v3348_v24 = vpop.permute.xlu2 %3347 }
 0x4cb   :  { %v3448_v56 = vsel %vm3419_vm6, %v3415_v36, %v3348_v24 }
 0x4cc   :  { %v3481_v9 = vsel %vm3452_vm9, %v3448_v56, 0.0  ;;  %v4080_v43 = vpop.eup %4079 }
 0x4cd   :  { %3514 = vst.msk [vmem:[%s7230_s8 + $0xe0] sm:$0xff] %vm3485_vm10, %v3481_v9  ;;  %v1857_v58 = vmul.f32 0.6931472, %v4080_v43  ;;  %v4082_v25 = vpop.eup %4081 }
 0x4ce   :  { %v1866_v54 = vmul.f32 0.6931472, %v4082_v25  ;;  %v4084_v16 = vpop.eup %4083 }
 0x4cf   :  { %v1863_v14 = vsel %vm1862_vm3, %v1860_v31, %v1857_v58  ;;  %v1873_v53 = vadd.f32 1.0, %v4084_v16  ;;  %v1876_v61 = vmul.f32 -0.5, %v4084_v16  ;;  %v1879_v23 = vand.u32 2147483647, %v4084_v16 }
 0x4d0   :  { %v1911_v63 = vadd.f32 %v1863_v14, %v1399_v48  ;;  %v1872_v37 = vsel %vm1871_vm4, %v1869_v45, %v1866_v54 }
 0x4d1   :  { %v1912_v42 = vadd.f32 %v1872_v37, %v1400_v33  ;;  %4085 = vlog2.f32 %v1873_v53  ;;  %v1877_v51 = vadd.f32 1.0, %v1876_v61  ;;  %vm1880_vm11 = vcmp.lt.f32.partialorder %v1879_v23, 0.0004427343 }
 0x4d2   :  { %v1943_v52 = vsel %vm1431_vm7, %v7145_v55, %v1911_v63 }
 0x4d3   :  { %v3416_v60 = vsel %vm1946_vm5, %v7443_v57, %v1943_v52  ;;  %v1944_v0 = vsel %vm1432_vm8, %v3666_v21, %v1912_v42  ;;  %v1878_v34 = vmul.f32 %v4084_v16, %v1877_v51 }
 0x4d4   :  { %v3417_v55 = vsel %vm1946_vm5, %v7448_v11, %v1944_v0 }
 0x4d7   :  { %v4086_v44 = vpop.eup %4085 }
 0x4d8   :  { %v1875_v26 = vmul.f32 0.6931472, %v4086_v44 }
 0x4da   :  { %v1881_v11 = vsel %vm1880_vm11, %v1878_v34, %v1875_v26 }
 0x4db   :  { %v1913_v17 = vadd.f32 %v1881_v11, %v1401_v28 }
 0x4dd   :  { %v1945_v13 = vsel %vm1433_vm12, %v3667_v7, %v1913_v17 }
 0x4de   :  { %v3418_v19 = vsel %vm1946_vm5, %v7461_v5, %v1945_v13 }
 0x4ef   :  { %v3350_v1 = vpop.permute.xlu1 %3349 }
 0x4f0   :  { %v3449_v18 = vsel %vm3419_vm6, %v3416_v60, %v3350_v1 }
 0x4f1   :  { %v3482_v49 = vsel %vm3452_vm9, %v3449_v18, 0.0 }
 0x4f2   :  { %3515 = vst.msk [vmem:[%s7230_s8 + $0xe8] sm:$0xff] %vm3485_vm10, %v3482_v49 }
 0x4f7   :  { %v3352_v6 = vpop.permute.xlu0 %3351 }
 0x4f8   :  { %v3450_v57 = vsel %vm3419_vm6, %v3417_v55, %v3352_v6 }
 0x4f9   :  { %v3483_v3 = vsel %vm3452_vm9, %v3450_v57, 0.0 }
 0x4fa   :  { %3516 = vst.msk [vmem:[%s7230_s8 + $0xf0] sm:$0xff] %vm3485_vm10, %v3483_v3 }
 0x512   :  { %v3354_v47 = vpop.permute.xlu2 %3353 }
 0x513   :  { %v3451_v21 = vsel %vm3419_vm6, %v3418_v19, %v3354_v47 }
 0x514   :  { %v3484_v10 = vsel %vm3452_vm9, %v3451_v21, 0.0 }
 0x515   :  { %3517 = vst.msk [vmem:[%s7230_s8 + $0xf8] sm:$0xff] %vm3485_vm10, %v3484_v10 }
 0x516   :  { %4112 = dma.done.wait [#allocation3], 4096  }
 0x517   :  { %4113 = vsyncadd [#allocation3], 4294963200 }
 0x518   :  { %3539 = vsyncpa [#allocation3], 1 }

</bundles_post_ra>
